<compile_context>
chip_gen: v7x
topology: tpu7x:2x2x1
jax: 0.10.0
libtpu: 0.0.40
codegen_flags: <defaults>
</compile_context>

<pallas_src>
import functools

import jax
import jax.numpy as jnp
from jax import lax
from jax.experimental import pallas as pl
from jax.experimental.pallas import tpu as pltpu


# ----------------------------------------------------------------------------
# Static layer configuration (mirrors the PyTorch nn.Sequential exactly)
# ----------------------------------------------------------------------------
LAYER_SPECS = (
    dict(name="e1", kind="conv",  k=3, stride=1, pad=0, bias=False, bn=True,  act="relu", emit=None),
    dict(name="e2", kind="conv",  k=3, stride=1, pad=1, bias=False, bn=True,  act="relu", emit=None),
    dict(name="e3", kind="conv",  k=4, stride=2, pad=1, bias=False, bn=True,  act="relu", emit=None),
    dict(name="e4", kind="conv",  k=3, stride=1, pad=1, bias=False, bn=True,  act="relu", emit=None),
    dict(name="e5", kind="conv",  k=3, stride=1, pad=1, bias=False, bn=True,  act="relu", emit=None),
    dict(name="e6", kind="conv",  k=1, stride=1, pad=0, bias=True,  bn=False, act="none", emit="z"),
    dict(name="d1", kind="convT", k=1, stride=1, pad=0, bias=True,  bn=True,  act="relu", emit=None),
    dict(name="d2", kind="convT", k=3, stride=1, pad=1, bias=False, bn=True,  act="relu", emit=None),
    dict(name="d3", kind="convT", k=3, stride=1, pad=1, bias=False, bn=True,  act="relu", emit=None),
    dict(name="d4", kind="convT", k=4, stride=2, pad=1, bias=False, bn=True,  act="relu", emit=None),
    dict(name="d5", kind="convT", k=3, stride=1, pad=1, bias=False, bn=True,  act="relu", emit=None),
    dict(name="d6", kind="convT", k=3, stride=1, pad=0, bias=False, bn=True,  act="tanh", emit="xr"),
)


def _out_len(l_in, spec):
    if spec["kind"] == "conv":
        return (l_in + 2 * spec["pad"] - spec["k"]) // spec["stride"] + 1
    return (l_in - 1) * spec["stride"] - 2 * spec["pad"] + spec["k"]


# ----------------------------------------------------------------------------
# In-kernel helpers
# ----------------------------------------------------------------------------
def _selection_matrix(l_in, l_out, stride, offset, transposed):
    """0/1 matrix S of shape (l_in, l_out): the im2col shift done on the MXU.

    conv : S[l, t] = 1  iff  l == t*stride + offset    (offset = k - pad)
    convT: S[l, t] = 1  iff  t == l*stride + offset
    Out-of-range indices simply yield all-zero rows/cols, which implements
    zero padding (conv) and output cropping (convT) with no explicit pad,
    zero-insertion or strided slice.
    """
    rows = lax.broadcasted_iota(jnp.int32, (l_in, l_out), 0)
    cols = lax.broadcasted_iota(jnp.int32, (l_in, l_out), 1)
    if transposed:
        hit = cols == rows * stride + offset
    else:
        hit = rows == cols * stride + offset
    return hit.astype(jnp.float32)


def _fused_autoencoder_kernel(*refs, specs, n_batch):
    # refs = (x_ref, *param_refs..., z_ref, xr_ref)
    x_ref = refs[0]
    z_ref, xr_ref = refs[-2], refs[-1]
    p_refs = refs[1:-2]

    # Per-sample activations, VMEM/vreg resident across all 12 layers.
    hs = [x_ref[i] for i in range(n_batch)]          # each (C, L) f32
    idx = 0
    for spec in specs:
        ksz, stride, pad = spec["k"], spec["stride"], spec["pad"]
        transposed = spec["kind"] == "convT"
        w_ref = p_refs[idx]; idx += 1                # (K, C_out, C_in)
        bias = None
        gamma = beta = None
        if spec["bias"]:
            bias = p_refs[idx][...]; idx += 1        # (C_out, 1)
        if spec["bn"]:
            gb = p_refs[idx][...]; idx += 1          # (C_out, 2) = [gamma|beta]
            gamma, beta = gb[:, 0:1], gb[:, 1:2]

        c_out = w_ref.shape[1]
        l_in = hs[0].shape[1]
        l_out = _out_len(l_in, spec)

        # ---- conv / transposed conv as K shifted MXU matmuls ----
        ys = []
        for h in hs:
            acc = jnp.zeros((c_out, l_out), jnp.float32)
            for k in range(ksz):
                sel = _selection_matrix(l_in, l_out, stride, k - pad, transposed)
                shifted = jnp.dot(h, sel, preferred_element_type=jnp.float32)
                acc = acc + jnp.dot(w_ref[k], shifted,
                                    preferred_element_type=jnp.float32)
            if bias is not None:
                acc = acc + bias
            ys.append(acc)

        # ---- folded BatchNorm1d (train mode batch stats, biased variance) ----
        if spec["bn"]:
            inv_cnt = 1.0 / float(n_batch * l_out)
            ssum = ys[0].sum(axis=1, keepdims=True)
            ssq = (ys[0] * ys[0]).sum(axis=1, keepdims=True)
            for y in ys[1:]:
                ssum = ssum + y.sum(axis=1, keepdims=True)
                ssq = ssq + (y * y).sum(axis=1, keepdims=True)
            mean = ssum * inv_cnt
            var = jnp.maximum(ssq * inv_cnt - mean * mean, 0.0)
            scale = gamma * lax.rsqrt(var + 1e-5)    # EUP rsqrt
            shift = beta - mean * scale
            ys = [y * scale + shift for y in ys]     # single elementwise pass

        # ---- activation ----
        if spec["act"] == "relu":
            ys = [jnp.maximum(y, 0.0) for y in ys]
        elif spec["act"] == "tanh":
            ys = [jnp.tanh(y) for y in ys]

        if spec["emit"] == "z":
            for i in range(n_batch):
                z_ref[i, :, :] = ys[i]
        hs = ys

    for i in range(n_batch):
        xr_ref[i, :, :] = hs[i]


# ----------------------------------------------------------------------------
# Wrapper: one pallas_call for the whole network
# ----------------------------------------------------------------------------
def _flatten_params(params):
    flat = []
    for spec in LAYER_SPECS:
        nm = spec["name"]
        flat.append(params[nm + "_w"])
        if spec["bias"]:
            flat.append(params[nm + "_b"])
        if spec["bn"]:
            flat.append(params[nm + "_bn"])
    return flat


def bogi_autoencoder_forward(x, params):
    n, _, l = x.shape
    lengths = []
    cur = l
    for spec in LAYER_SPECS:
        cur = _out_len(cur, spec)
        lengths.append(cur)
    l_z, l_rec = lengths[5], lengths[-1]
    emb = params["e6_w"].shape[1]
    out_ch = params["d6_w"].shape[1]

    flat = [x] + _flatten_params(params)
    vmem = pl.BlockSpec(memory_space=pltpu.MemorySpace.VMEM)
    kernel = functools.partial(_fused_autoencoder_kernel,
                               specs=LAYER_SPECS, n_batch=n)
    z, x_rec = pl.pallas_call(
        kernel,
        out_shape=(jax.ShapeDtypeStruct((n, emb, l_z), jnp.float32),
                   jax.ShapeDtypeStruct((n, out_ch, l_rec), jnp.float32)),
        in_specs=[vmem] * len(flat),
        out_specs=(vmem, vmem),
    )(*flat)
    return z, x_rec


# ----------------------------------------------------------------------------
# Parameters (deterministic init, pre-packed for the kernel)
# ----------------------------------------------------------------------------
def pack_conv_weight(w):
    # torch Conv1d weight (C_out, C_in, K) -> (K, C_out, C_in)
    return jnp.transpose(w, (2, 0, 1))


def pack_convtranspose_weight(w):
    # torch ConvTranspose1d weight (C_in, C_out, K) -> (K, C_out, C_in)
    return jnp.transpose(w, (2, 1, 0))


def init_params(key, in_ch, ch, emb):
    chans = {"e1": (in_ch, ch), "e2": (ch, ch), "e3": (ch, ch), "e4": (ch, ch),
             "e5": (ch, ch), "e6": (ch, emb),
             "d1": (emb, ch), "d2": (ch, ch), "d3": (ch, ch), "d4": (ch, ch),
             "d5": (ch, ch), "d6": (ch, in_ch)}
    keys = jax.random.split(key, 2 * len(LAYER_SPECS))
    params = {}
    for i, spec in enumerate(LAYER_SPECS):
        nm = spec["name"]
        c_in, c_out = chans[nm]
        k = spec["k"]
        if spec["kind"] == "conv":
            w = 0.1 * jax.random.normal(keys[2 * i], (c_out, c_in, k), jnp.float32)
            params[nm + "_w"] = pack_conv_weight(w)
        else:
            w = 0.1 * jax.random.normal(keys[2 * i], (c_in, c_out, k), jnp.float32)
            params[nm + "_w"] = pack_convtranspose_weight(w)
        if spec["bias"]:
            params[nm + "_b"] = 0.1 * jax.random.normal(
                keys[2 * i + 1], (c_out, 1), jnp.float32)
        if spec["bn"]:  # PyTorch default init: gamma=1, beta=0
            params[nm + "_bn"] = jnp.concatenate(
                [jnp.ones((c_out, 1), jnp.float32),
                 jnp.zeros((c_out, 1), jnp.float32)], axis=1)
    return params


# ----------------------------------------------------------------------------
# Pure-JAX reference (lax.conv) with identical train-mode BN semantics
# ----------------------------------------------------------------------------
def reference_forward(x, params):
    h, z = x, None
    for spec in LAYER_SPECS:
        nm = spec["name"]
        k, s, p = spec["k"], spec["stride"], spec["pad"]
        w = jnp.transpose(params[nm + "_w"], (1, 2, 0))      # (C_out, C_in, K)
        if spec["kind"] == "conv":
            h = lax.conv_general_dilated(
                h, w, (s,), [(p, p)],
                dimension_numbers=("NCH", "OIH", "NCH"),
                precision=lax.Precision.HIGHEST)
        else:
            h = lax.conv_general_dilated(
                h, jnp.flip(w, axis=2), (1,), [(k - 1 - p, k - 1 - p)],
                lhs_dilation=(s,),
                dimension_numbers=("NCH", "OIH", "NCH"),
                precision=lax.Precision.HIGHEST)
        if spec["bias"]:
            h = h + params[nm + "_b"][None, :, :]
        if spec["bn"]:
            gb = params[nm + "_bn"]
            mean = jnp.mean(h, axis=(0, 2), keepdims=True)
            var = jnp.var(h, axis=(0, 2), keepdims=True)
            h = (h - mean) * lax.rsqrt(var + 1e-5)
            h = h * gb[None, :, 0:1] + gb[None, :, 1:2]
        if spec["act"] == "relu":
            h = jnp.maximum(h, 0.0)
        elif spec["act"] == "tanh":
            h = jnp.tanh(h)
        if spec["emit"] == "z":
            z = h
    return z, h


if __name__ == "__main__":
    # Small, forward-consistent shapes (NCL layout, like PyTorch Conv1d inputs).
    N, IN_CH, CH, EMB, L = 2, 4, 8, 16, 16

    key = jax.random.PRNGKey(0)
    kx, kp = jax.random.split(key)
    x = jax.random.normal(kx, (N, IN_CH, L), jnp.float32)
    params = init_params(kp, IN_CH, CH, EMB)

    fwd = jax.jit(bogi_autoencoder_forward)
    z, x_rec = fwd(x, params)
    z, x_rec = jax.block_until_ready((z, x_rec))

    # shape checks mirroring the PyTorch module: z=(N,EMB,L/2-1), x_rec=(N,IN_CH,L)
    assert z.shape == (N, EMB, L // 2 - 1), z.shape
    assert x_rec.shape == (N, IN_CH, L), x_rec.shape
    assert bool(jnp.all(jnp.isfinite(z))) and bool(jnp.all(jnp.isfinite(x_rec)))
    assert bool(jnp.all(jnp.abs(x_rec) <= 1.0))          # tanh output range

    # numerical check against the pure-JAX reference
    z_ref, x_ref = reference_forward(x, params)
    assert bool(jnp.allclose(z, z_ref, atol=2e-3, rtol=2e-3)), \
        float(jnp.max(jnp.abs(z - z_ref)))
    assert bool(jnp.allclose(x_rec, x_ref, atol=2e-3, rtol=2e-3)), \
        float(jnp.max(jnp.abs(x_rec - x_ref)))

    print("KERNEL_OK")
</pallas_src>

<mosaic_0001>
module attributes {stable_mosaic.version = 11 : i64} {
  func.func @_fused_autoencoder_kernel(%arg0: memref<2x4x16xf32, #tpu.memory_space<vmem>>, %arg1: memref<3x8x4xf32, #tpu.memory_space<vmem>>, %arg2: memref<8x2xf32, #tpu.memory_space<vmem>>, %arg3: memref<3x8x8xf32, #tpu.memory_space<vmem>>, %arg4: memref<8x2xf32, #tpu.memory_space<vmem>>, %arg5: memref<4x8x8xf32, #tpu.memory_space<vmem>>, %arg6: memref<8x2xf32, #tpu.memory_space<vmem>>, %arg7: memref<3x8x8xf32, #tpu.memory_space<vmem>>, %arg8: memref<8x2xf32, #tpu.memory_space<vmem>>, %arg9: memref<3x8x8xf32, #tpu.memory_space<vmem>>, %arg10: memref<8x2xf32, #tpu.memory_space<vmem>>, %arg11: memref<1x16x8xf32, #tpu.memory_space<vmem>>, %arg12: memref<16x1xf32, #tpu.memory_space<vmem>>, %arg13: memref<1x8x16xf32, #tpu.memory_space<vmem>>, %arg14: memref<8x1xf32, #tpu.memory_space<vmem>>, %arg15: memref<8x2xf32, #tpu.memory_space<vmem>>, %arg16: memref<3x8x8xf32, #tpu.memory_space<vmem>>, %arg17: memref<8x2xf32, #tpu.memory_space<vmem>>, %arg18: memref<3x8x8xf32, #tpu.memory_space<vmem>>, %arg19: memref<8x2xf32, #tpu.memory_space<vmem>>, %arg20: memref<4x8x8xf32, #tpu.memory_space<vmem>>, %arg21: memref<8x2xf32, #tpu.memory_space<vmem>>, %arg22: memref<3x8x8xf32, #tpu.memory_space<vmem>>, %arg23: memref<8x2xf32, #tpu.memory_space<vmem>>, %arg24: memref<3x4x8xf32, #tpu.memory_space<vmem>>, %arg25: memref<4x2xf32, #tpu.memory_space<vmem>>, %arg26: memref<2x16x7xf32, #tpu.memory_space<vmem>>, %arg27: memref<2x4x16xf32, #tpu.memory_space<vmem>>) attributes {dimension_semantics = [], scalar_prefetch = 0 : i64, scratch_operands = 0 : i64, tpu.core_type = #tpu.core_type<tc>} {
    %c0 = arith.constant 0 : index
    %c0_0 = arith.constant 0 : index
    %c0_1 = arith.constant 0 : index
    %0 = vector.load %arg0[%c0, %c0_0, %c0_1] : memref<2x4x16xf32, #tpu.memory_space<vmem>>, vector<1x4x16xf32>
    %1 = vector.shape_cast %0 : vector<1x4x16xf32> to vector<4x16xf32>
    %c1 = arith.constant 1 : index
    %c0_2 = arith.constant 0 : index
    %c0_3 = arith.constant 0 : index
    %2 = vector.load %arg0[%c1, %c0_2, %c0_3] : memref<2x4x16xf32, #tpu.memory_space<vmem>>, vector<1x4x16xf32>
    %3 = vector.shape_cast %2 : vector<1x4x16xf32> to vector<4x16xf32>
    %c0_4 = arith.constant 0 : index
    %c0_5 = arith.constant 0 : index
    %4 = vector.load %arg2[%c0_4, %c0_5] : memref<8x2xf32, #tpu.memory_space<vmem>>, vector<8x2xf32>
    %5 = vector.extract_strided_slice %4 {offsets = [0, 0], sizes = [8, 1], strides = [1, 1]} : vector<8x2xf32> to vector<8x1xf32>
    %6 = vector.extract_strided_slice %4 {offsets = [0, 1], sizes = [8, 1], strides = [1, 1]} : vector<8x2xf32> to vector<8x1xf32>
    %cst = arith.constant 0.000000e+00 : f32
    %7 = vector.broadcast %cst : f32 to vector<8x14xf32>
    %8 = tpu.iota {dimensions = array<i32: 0>} : vector<16x14xi32>
    %9 = tpu.iota {dimensions = array<i32: 1>} : vector<16x14xi32>
    %c1_i32 = arith.constant 1 : i32
    %10 = vector.broadcast %c1_i32 : i32 to vector<16x14xi32>
    %11 = arith.muli %9, %10 : vector<16x14xi32>
    %c0_i32 = arith.constant 0 : i32
    %12 = vector.broadcast %c0_i32 : i32 to vector<16x14xi32>
    %13 = arith.addi %11, %12 : vector<16x14xi32>
    %14 = arith.cmpi eq, %8, %13 : vector<16x14xi32>
    %15 = arith.extui %14 : vector<16x14xi1> to vector<16x14xi32>
    %16 = arith.sitofp %15 : vector<16x14xi32> to vector<16x14xf32>
    %cst_6 = arith.constant dense<0.000000e+00> : vector<4x14xf32>
    %17 = tpu.matmul %1, %16, %cst_6 {dimension_numbers = #tpu.dot_dimension_numbers<[1], [0], [0], [1], [0, 0, 1, 1], [], []>} : vector<4x16xf32>, vector<16x14xf32>, vector<4x14xf32> -> vector<4x14xf32>
    %c0_7 = arith.constant 0 : index
    %c0_8 = arith.constant 0 : index
    %c0_9 = arith.constant 0 : index
    %18 = vector.load %arg1[%c0_7, %c0_8, %c0_9] : memref<3x8x4xf32, #tpu.memory_space<vmem>>, vector<1x8x4xf32>
    %19 = vector.shape_cast %18 : vector<1x8x4xf32> to vector<8x4xf32>
    %cst_10 = arith.constant dense<0.000000e+00> : vector<8x14xf32>
    %20 = tpu.matmul %19, %17, %cst_10 {dimension_numbers = #tpu.dot_dimension_numbers<[1], [0], [0], [1], [0, 0, 1, 1], [], []>} : vector<8x4xf32>, vector<4x14xf32>, vector<8x14xf32> -> vector<8x14xf32>
    %21 = arith.addf %7, %20 : vector<8x14xf32>
    %22 = tpu.iota {dimensions = array<i32: 0>} : vector<16x14xi32>
    %23 = tpu.iota {dimensions = array<i32: 1>} : vector<16x14xi32>
    %c1_i32_11 = arith.constant 1 : i32
    %24 = vector.broadcast %c1_i32_11 : i32 to vector<16x14xi32>
    %25 = arith.muli %23, %24 : vector<16x14xi32>
    %c1_i32_12 = arith.constant 1 : i32
    %26 = vector.broadcast %c1_i32_12 : i32 to vector<16x14xi32>
    %27 = arith.addi %25, %26 : vector<16x14xi32>
    %28 = arith.cmpi eq, %22, %27 : vector<16x14xi32>
    %29 = arith.extui %28 : vector<16x14xi1> to vector<16x14xi32>
    %30 = arith.sitofp %29 : vector<16x14xi32> to vector<16x14xf32>
    %cst_13 = arith.constant dense<0.000000e+00> : vector<4x14xf32>
    %31 = tpu.matmul %1, %30, %cst_13 {dimension_numbers = #tpu.dot_dimension_numbers<[1], [0], [0], [1], [0, 0, 1, 1], [], []>} : vector<4x16xf32>, vector<16x14xf32>, vector<4x14xf32> -> vector<4x14xf32>
    %c1_14 = arith.constant 1 : index
    %c0_15 = arith.constant 0 : index
    %c0_16 = arith.constant 0 : index
    %32 = vector.load %arg1[%c1_14, %c0_15, %c0_16] : memref<3x8x4xf32, #tpu.memory_space<vmem>>, vector<1x8x4xf32>
    %33 = vector.shape_cast %32 : vector<1x8x4xf32> to vector<8x4xf32>
    %cst_17 = arith.constant dense<0.000000e+00> : vector<8x14xf32>
    %34 = tpu.matmul %33, %31, %cst_17 {dimension_numbers = #tpu.dot_dimension_numbers<[1], [0], [0], [1], [0, 0, 1, 1], [], []>} : vector<8x4xf32>, vector<4x14xf32>, vector<8x14xf32> -> vector<8x14xf32>
    %35 = arith.addf %21, %34 : vector<8x14xf32>
    %36 = tpu.iota {dimensions = array<i32: 0>} : vector<16x14xi32>
    %37 = tpu.iota {dimensions = array<i32: 1>} : vector<16x14xi32>
    %c1_i32_18 = arith.constant 1 : i32
    %38 = vector.broadcast %c1_i32_18 : i32 to vector<16x14xi32>
    %39 = arith.muli %37, %38 : vector<16x14xi32>
    %c2_i32 = arith.constant 2 : i32
    %40 = vector.broadcast %c2_i32 : i32 to vector<16x14xi32>
    %41 = arith.addi %39, %40 : vector<16x14xi32>
    %42 = arith.cmpi eq, %36, %41 : vector<16x14xi32>
    %43 = arith.extui %42 : vector<16x14xi1> to vector<16x14xi32>
    %44 = arith.sitofp %43 : vector<16x14xi32> to vector<16x14xf32>
    %cst_19 = arith.constant dense<0.000000e+00> : vector<4x14xf32>
    %45 = tpu.matmul %1, %44, %cst_19 {dimension_numbers = #tpu.dot_dimension_numbers<[1], [0], [0], [1], [0, 0, 1, 1], [], []>} : vector<4x16xf32>, vector<16x14xf32>, vector<4x14xf32> -> vector<4x14xf32>
    %c2 = arith.constant 2 : index
    %c0_20 = arith.constant 0 : index
    %c0_21 = arith.constant 0 : index
    %46 = vector.load %arg1[%c2, %c0_20, %c0_21] : memref<3x8x4xf32, #tpu.memory_space<vmem>>, vector<1x8x4xf32>
    %47 = vector.shape_cast %46 : vector<1x8x4xf32> to vector<8x4xf32>
    %cst_22 = arith.constant dense<0.000000e+00> : vector<8x14xf32>
    %48 = tpu.matmul %47, %45, %cst_22 {dimension_numbers = #tpu.dot_dimension_numbers<[1], [0], [0], [1], [0, 0, 1, 1], [], []>} : vector<8x4xf32>, vector<4x14xf32>, vector<8x14xf32> -> vector<8x14xf32>
    %49 = arith.addf %35, %48 : vector<8x14xf32>
    %cst_23 = arith.constant 0.000000e+00 : f32
    %50 = vector.broadcast %cst_23 : f32 to vector<8x14xf32>
    %51 = tpu.iota {dimensions = array<i32: 0>} : vector<16x14xi32>
    %52 = tpu.iota {dimensions = array<i32: 1>} : vector<16x14xi32>
    %c1_i32_24 = arith.constant 1 : i32
    %53 = vector.broadcast %c1_i32_24 : i32 to vector<16x14xi32>
    %54 = arith.muli %52, %53 : vector<16x14xi32>
    %c0_i32_25 = arith.constant 0 : i32
    %55 = vector.broadcast %c0_i32_25 : i32 to vector<16x14xi32>
    %56 = arith.addi %54, %55 : vector<16x14xi32>
    %57 = arith.cmpi eq, %51, %56 : vector<16x14xi32>
    %58 = arith.extui %57 : vector<16x14xi1> to vector<16x14xi32>
    %59 = arith.sitofp %58 : vector<16x14xi32> to vector<16x14xf32>
    %cst_26 = arith.constant dense<0.000000e+00> : vector<4x14xf32>
    %60 = tpu.matmul %3, %59, %cst_26 {dimension_numbers = #tpu.dot_dimension_numbers<[1], [0], [0], [1], [0, 0, 1, 1], [], []>} : vector<4x16xf32>, vector<16x14xf32>, vector<4x14xf32> -> vector<4x14xf32>
    %c0_27 = arith.constant 0 : index
    %c0_28 = arith.constant 0 : index
    %c0_29 = arith.constant 0 : index
    %61 = vector.load %arg1[%c0_27, %c0_28, %c0_29] : memref<3x8x4xf32, #tpu.memory_space<vmem>>, vector<1x8x4xf32>
    %62 = vector.shape_cast %61 : vector<1x8x4xf32> to vector<8x4xf32>
    %cst_30 = arith.constant dense<0.000000e+00> : vector<8x14xf32>
    %63 = tpu.matmul %62, %60, %cst_30 {dimension_numbers = #tpu.dot_dimension_numbers<[1], [0], [0], [1], [0, 0, 1, 1], [], []>} : vector<8x4xf32>, vector<4x14xf32>, vector<8x14xf32> -> vector<8x14xf32>
    %64 = arith.addf %50, %63 : vector<8x14xf32>
    %65 = tpu.iota {dimensions = array<i32: 0>} : vector<16x14xi32>
    %66 = tpu.iota {dimensions = array<i32: 1>} : vector<16x14xi32>
    %c1_i32_31 = arith.constant 1 : i32
    %67 = vector.broadcast %c1_i32_31 : i32 to vector<16x14xi32>
    %68 = arith.muli %66, %67 : vector<16x14xi32>
    %c1_i32_32 = arith.constant 1 : i32
    %69 = vector.broadcast %c1_i32_32 : i32 to vector<16x14xi32>
    %70 = arith.addi %68, %69 : vector<16x14xi32>
    %71 = arith.cmpi eq, %65, %70 : vector<16x14xi32>
    %72 = arith.extui %71 : vector<16x14xi1> to vector<16x14xi32>
    %73 = arith.sitofp %72 : vector<16x14xi32> to vector<16x14xf32>
    %cst_33 = arith.constant dense<0.000000e+00> : vector<4x14xf32>
    %74 = tpu.matmul %3, %73, %cst_33 {dimension_numbers = #tpu.dot_dimension_numbers<[1], [0], [0], [1], [0, 0, 1, 1], [], []>} : vector<4x16xf32>, vector<16x14xf32>, vector<4x14xf32> -> vector<4x14xf32>
    %c1_34 = arith.constant 1 : index
    %c0_35 = arith.constant 0 : index
    %c0_36 = arith.constant 0 : index
    %75 = vector.load %arg1[%c1_34, %c0_35, %c0_36] : memref<3x8x4xf32, #tpu.memory_space<vmem>>, vector<1x8x4xf32>
    %76 = vector.shape_cast %75 : vector<1x8x4xf32> to vector<8x4xf32>
    %cst_37 = arith.constant dense<0.000000e+00> : vector<8x14xf32>
    %77 = tpu.matmul %76, %74, %cst_37 {dimension_numbers = #tpu.dot_dimension_numbers<[1], [0], [0], [1], [0, 0, 1, 1], [], []>} : vector<8x4xf32>, vector<4x14xf32>, vector<8x14xf32> -> vector<8x14xf32>
    %78 = arith.addf %64, %77 : vector<8x14xf32>
    %79 = tpu.iota {dimensions = array<i32: 0>} : vector<16x14xi32>
    %80 = tpu.iota {dimensions = array<i32: 1>} : vector<16x14xi32>
    %c1_i32_38 = arith.constant 1 : i32
    %81 = vector.broadcast %c1_i32_38 : i32 to vector<16x14xi32>
    %82 = arith.muli %80, %81 : vector<16x14xi32>
    %c2_i32_39 = arith.constant 2 : i32
    %83 = vector.broadcast %c2_i32_39 : i32 to vector<16x14xi32>
    %84 = arith.addi %82, %83 : vector<16x14xi32>
    %85 = arith.cmpi eq, %79, %84 : vector<16x14xi32>
    %86 = arith.extui %85 : vector<16x14xi1> to vector<16x14xi32>
    %87 = arith.sitofp %86 : vector<16x14xi32> to vector<16x14xf32>
    %cst_40 = arith.constant dense<0.000000e+00> : vector<4x14xf32>
    %88 = tpu.matmul %3, %87, %cst_40 {dimension_numbers = #tpu.dot_dimension_numbers<[1], [0], [0], [1], [0, 0, 1, 1], [], []>} : vector<4x16xf32>, vector<16x14xf32>, vector<4x14xf32> -> vector<4x14xf32>
    %c2_41 = arith.constant 2 : index
    %c0_42 = arith.constant 0 : index
    %c0_43 = arith.constant 0 : index
    %89 = vector.load %arg1[%c2_41, %c0_42, %c0_43] : memref<3x8x4xf32, #tpu.memory_space<vmem>>, vector<1x8x4xf32>
    %90 = vector.shape_cast %89 : vector<1x8x4xf32> to vector<8x4xf32>
    %cst_44 = arith.constant dense<0.000000e+00> : vector<8x14xf32>
    %91 = tpu.matmul %90, %88, %cst_44 {dimension_numbers = #tpu.dot_dimension_numbers<[1], [0], [0], [1], [0, 0, 1, 1], [], []>} : vector<8x4xf32>, vector<4x14xf32>, vector<8x14xf32> -> vector<8x14xf32>
    %92 = arith.addf %78, %91 : vector<8x14xf32>
    %cst_45 = arith.constant dense<0.000000e+00> : vector<8xf32>
    %93 = vector.multi_reduction <add>, %49, %cst_45 [1] : vector<8x14xf32> to vector<8xf32>
    %94 = vector.shape_cast %93 : vector<8xf32> to vector<8x1xf32>
    %95 = arith.mulf %49, %49 : vector<8x14xf32>
    %cst_46 = arith.constant dense<0.000000e+00> : vector<8xf32>
    %96 = vector.multi_reduction <add>, %95, %cst_46 [1] : vector<8x14xf32> to vector<8xf32>
    %97 = vector.shape_cast %96 : vector<8xf32> to vector<8x1xf32>
    %cst_47 = arith.constant dense<0.000000e+00> : vector<8xf32>
    %98 = vector.multi_reduction <add>, %92, %cst_47 [1] : vector<8x14xf32> to vector<8xf32>
    %99 = vector.shape_cast %98 : vector<8xf32> to vector<8x1xf32>
    %100 = arith.addf %94, %99 : vector<8x1xf32>
    %101 = arith.mulf %92, %92 : vector<8x14xf32>
    %cst_48 = arith.constant dense<0.000000e+00> : vector<8xf32>
    %102 = vector.multi_reduction <add>, %101, %cst_48 [1] : vector<8x14xf32> to vector<8xf32>
    %103 = vector.shape_cast %102 : vector<8xf32> to vector<8x1xf32>
    %104 = arith.addf %97, %103 : vector<8x1xf32>
    %cst_49 = arith.constant 0.0357142873 : f32
    %105 = vector.broadcast %cst_49 : f32 to vector<8x1xf32>
    %106 = arith.mulf %100, %105 : vector<8x1xf32>
    %cst_50 = arith.constant 0.0357142873 : f32
    %107 = vector.broadcast %cst_50 : f32 to vector<8x1xf32>
    %108 = arith.mulf %104, %107 : vector<8x1xf32>
    %109 = arith.mulf %106, %106 : vector<8x1xf32>
    %110 = arith.subf %108, %109 : vector<8x1xf32>
    %cst_51 = arith.constant 0.000000e+00 : f32
    %111 = vector.broadcast %cst_51 : f32 to vector<8x1xf32>
    %112 = arith.maximumf %110, %111 : vector<8x1xf32>
    %cst_52 = arith.constant 9.99999974E-6 : f32
    %113 = vector.broadcast %cst_52 : f32 to vector<8x1xf32>
    %114 = arith.addf %112, %113 : vector<8x1xf32>
    %115 = math.rsqrt %114 : vector<8x1xf32>
    %116 = arith.mulf %5, %115 : vector<8x1xf32>
    %117 = arith.mulf %106, %116 : vector<8x1xf32>
    %118 = arith.subf %6, %117 : vector<8x1xf32>
    %119 = vector.broadcast %116 : vector<8x1xf32> to vector<8x14xf32>
    %120 = arith.mulf %49, %119 : vector<8x14xf32>
    %121 = vector.broadcast %118 : vector<8x1xf32> to vector<8x14xf32>
    %122 = arith.addf %120, %121 : vector<8x14xf32>
    %123 = vector.broadcast %116 : vector<8x1xf32> to vector<8x14xf32>
    %124 = arith.mulf %92, %123 : vector<8x14xf32>
    %125 = vector.broadcast %118 : vector<8x1xf32> to vector<8x14xf32>
    %126 = arith.addf %124, %125 : vector<8x14xf32>
    %cst_53 = arith.constant 0.000000e+00 : f32
    %127 = vector.broadcast %cst_53 : f32 to vector<8x14xf32>
    %128 = arith.maximumf %122, %127 : vector<8x14xf32>
    %cst_54 = arith.constant 0.000000e+00 : f32
    %129 = vector.broadcast %cst_54 : f32 to vector<8x14xf32>
    %130 = arith.maximumf %126, %129 : vector<8x14xf32>
    %c0_55 = arith.constant 0 : index
    %c0_56 = arith.constant 0 : index
    %131 = vector.load %arg4[%c0_55, %c0_56] : memref<8x2xf32, #tpu.memory_space<vmem>>, vector<8x2xf32>
    %132 = vector.extract_strided_slice %131 {offsets = [0, 0], sizes = [8, 1], strides = [1, 1]} : vector<8x2xf32> to vector<8x1xf32>
    %133 = vector.extract_strided_slice %131 {offsets = [0, 1], sizes = [8, 1], strides = [1, 1]} : vector<8x2xf32> to vector<8x1xf32>
    %cst_57 = arith.constant 0.000000e+00 : f32
    %134 = vector.broadcast %cst_57 : f32 to vector<8x14xf32>
    %135 = tpu.iota {dimensions = array<i32: 0>} : vector<14x14xi32>
    %136 = tpu.iota {dimensions = array<i32: 1>} : vector<14x14xi32>
    %c1_i32_58 = arith.constant 1 : i32
    %137 = vector.broadcast %c1_i32_58 : i32 to vector<14x14xi32>
    %138 = arith.muli %136, %137 : vector<14x14xi32>
    %c-1_i32 = arith.constant -1 : i32
    %139 = vector.broadcast %c-1_i32 : i32 to vector<14x14xi32>
    %140 = arith.addi %138, %139 : vector<14x14xi32>
    %141 = arith.cmpi eq, %135, %140 : vector<14x14xi32>
    %142 = arith.extui %141 : vector<14x14xi1> to vector<14x14xi32>
    %143 = arith.sitofp %142 : vector<14x14xi32> to vector<14x14xf32>
    %cst_59 = arith.constant dense<0.000000e+00> : vector<8x14xf32>
    %144 = tpu.matmul %128, %143, %cst_59 {dimension_numbers = #tpu.dot_dimension_numbers<[1], [0], [0], [1], [0, 0, 1, 1], [], []>} : vector<8x14xf32>, vector<14x14xf32>, vector<8x14xf32> -> vector<8x14xf32>
    %c0_60 = arith.constant 0 : index
    %c0_61 = arith.constant 0 : index
    %c0_62 = arith.constant 0 : index
    %145 = vector.load %arg3[%c0_60, %c0_61, %c0_62] : memref<3x8x8xf32, #tpu.memory_space<vmem>>, vector<1x8x8xf32>
    %146 = vector.shape_cast %145 : vector<1x8x8xf32> to vector<8x8xf32>
    %cst_63 = arith.constant dense<0.000000e+00> : vector<8x14xf32>
    %147 = tpu.matmul %146, %144, %cst_63 {dimension_numbers = #tpu.dot_dimension_numbers<[1], [0], [0], [1], [0, 0, 1, 1], [], []>} : vector<8x8xf32>, vector<8x14xf32>, vector<8x14xf32> -> vector<8x14xf32>
    %148 = arith.addf %134, %147 : vector<8x14xf32>
    %149 = tpu.iota {dimensions = array<i32: 0>} : vector<14x14xi32>
    %150 = tpu.iota {dimensions = array<i32: 1>} : vector<14x14xi32>
    %c1_i32_64 = arith.constant 1 : i32
    %151 = vector.broadcast %c1_i32_64 : i32 to vector<14x14xi32>
    %152 = arith.muli %150, %151 : vector<14x14xi32>
    %c0_i32_65 = arith.constant 0 : i32
    %153 = vector.broadcast %c0_i32_65 : i32 to vector<14x14xi32>
    %154 = arith.addi %152, %153 : vector<14x14xi32>
    %155 = arith.cmpi eq, %149, %154 : vector<14x14xi32>
    %156 = arith.extui %155 : vector<14x14xi1> to vector<14x14xi32>
    %157 = arith.sitofp %156 : vector<14x14xi32> to vector<14x14xf32>
    %cst_66 = arith.constant dense<0.000000e+00> : vector<8x14xf32>
    %158 = tpu.matmul %128, %157, %cst_66 {dimension_numbers = #tpu.dot_dimension_numbers<[1], [0], [0], [1], [0, 0, 1, 1], [], []>} : vector<8x14xf32>, vector<14x14xf32>, vector<8x14xf32> -> vector<8x14xf32>
    %c1_67 = arith.constant 1 : index
    %c0_68 = arith.constant 0 : index
    %c0_69 = arith.constant 0 : index
    %159 = vector.load %arg3[%c1_67, %c0_68, %c0_69] : memref<3x8x8xf32, #tpu.memory_space<vmem>>, vector<1x8x8xf32>
    %160 = vector.shape_cast %159 : vector<1x8x8xf32> to vector<8x8xf32>
    %cst_70 = arith.constant dense<0.000000e+00> : vector<8x14xf32>
    %161 = tpu.matmul %160, %158, %cst_70 {dimension_numbers = #tpu.dot_dimension_numbers<[1], [0], [0], [1], [0, 0, 1, 1], [], []>} : vector<8x8xf32>, vector<8x14xf32>, vector<8x14xf32> -> vector<8x14xf32>
    %162 = arith.addf %148, %161 : vector<8x14xf32>
    %163 = tpu.iota {dimensions = array<i32: 0>} : vector<14x14xi32>
    %164 = tpu.iota {dimensions = array<i32: 1>} : vector<14x14xi32>
    %c1_i32_71 = arith.constant 1 : i32
    %165 = vector.broadcast %c1_i32_71 : i32 to vector<14x14xi32>
    %166 = arith.muli %164, %165 : vector<14x14xi32>
    %c1_i32_72 = arith.constant 1 : i32
    %167 = vector.broadcast %c1_i32_72 : i32 to vector<14x14xi32>
    %168 = arith.addi %166, %167 : vector<14x14xi32>
    %169 = arith.cmpi eq, %163, %168 : vector<14x14xi32>
    %170 = arith.extui %169 : vector<14x14xi1> to vector<14x14xi32>
    %171 = arith.sitofp %170 : vector<14x14xi32> to vector<14x14xf32>
    %cst_73 = arith.constant dense<0.000000e+00> : vector<8x14xf32>
    %172 = tpu.matmul %128, %171, %cst_73 {dimension_numbers = #tpu.dot_dimension_numbers<[1], [0], [0], [1], [0, 0, 1, 1], [], []>} : vector<8x14xf32>, vector<14x14xf32>, vector<8x14xf32> -> vector<8x14xf32>
    %c2_74 = arith.constant 2 : index
    %c0_75 = arith.constant 0 : index
    %c0_76 = arith.constant 0 : index
    %173 = vector.load %arg3[%c2_74, %c0_75, %c0_76] : memref<3x8x8xf32, #tpu.memory_space<vmem>>, vector<1x8x8xf32>
    %174 = vector.shape_cast %173 : vector<1x8x8xf32> to vector<8x8xf32>
    %cst_77 = arith.constant dense<0.000000e+00> : vector<8x14xf32>
    %175 = tpu.matmul %174, %172, %cst_77 {dimension_numbers = #tpu.dot_dimension_numbers<[1], [0], [0], [1], [0, 0, 1, 1], [], []>} : vector<8x8xf32>, vector<8x14xf32>, vector<8x14xf32> -> vector<8x14xf32>
    %176 = arith.addf %162, %175 : vector<8x14xf32>
    %cst_78 = arith.constant 0.000000e+00 : f32
    %177 = vector.broadcast %cst_78 : f32 to vector<8x14xf32>
    %178 = tpu.iota {dimensions = array<i32: 0>} : vector<14x14xi32>
    %179 = tpu.iota {dimensions = array<i32: 1>} : vector<14x14xi32>
    %c1_i32_79 = arith.constant 1 : i32
    %180 = vector.broadcast %c1_i32_79 : i32 to vector<14x14xi32>
    %181 = arith.muli %179, %180 : vector<14x14xi32>
    %c-1_i32_80 = arith.constant -1 : i32
    %182 = vector.broadcast %c-1_i32_80 : i32 to vector<14x14xi32>
    %183 = arith.addi %181, %182 : vector<14x14xi32>
    %184 = arith.cmpi eq, %178, %183 : vector<14x14xi32>
    %185 = arith.extui %184 : vector<14x14xi1> to vector<14x14xi32>
    %186 = arith.sitofp %185 : vector<14x14xi32> to vector<14x14xf32>
    %cst_81 = arith.constant dense<0.000000e+00> : vector<8x14xf32>
    %187 = tpu.matmul %130, %186, %cst_81 {dimension_numbers = #tpu.dot_dimension_numbers<[1], [0], [0], [1], [0, 0, 1, 1], [], []>} : vector<8x14xf32>, vector<14x14xf32>, vector<8x14xf32> -> vector<8x14xf32>
    %c0_82 = arith.constant 0 : index
    %c0_83 = arith.constant 0 : index
    %c0_84 = arith.constant 0 : index
    %188 = vector.load %arg3[%c0_82, %c0_83, %c0_84] : memref<3x8x8xf32, #tpu.memory_space<vmem>>, vector<1x8x8xf32>
    %189 = vector.shape_cast %188 : vector<1x8x8xf32> to vector<8x8xf32>
    %cst_85 = arith.constant dense<0.000000e+00> : vector<8x14xf32>
    %190 = tpu.matmul %189, %187, %cst_85 {dimension_numbers = #tpu.dot_dimension_numbers<[1], [0], [0], [1], [0, 0, 1, 1], [], []>} : vector<8x8xf32>, vector<8x14xf32>, vector<8x14xf32> -> vector<8x14xf32>
    %191 = arith.addf %177, %190 : vector<8x14xf32>
    %192 = tpu.iota {dimensions = array<i32: 0>} : vector<14x14xi32>
    %193 = tpu.iota {dimensions = array<i32: 1>} : vector<14x14xi32>
    %c1_i32_86 = arith.constant 1 : i32
    %194 = vector.broadcast %c1_i32_86 : i32 to vector<14x14xi32>
    %195 = arith.muli %193, %194 : vector<14x14xi32>
    %c0_i32_87 = arith.constant 0 : i32
    %196 = vector.broadcast %c0_i32_87 : i32 to vector<14x14xi32>
    %197 = arith.addi %195, %196 : vector<14x14xi32>
    %198 = arith.cmpi eq, %192, %197 : vector<14x14xi32>
    %199 = arith.extui %198 : vector<14x14xi1> to vector<14x14xi32>
    %200 = arith.sitofp %199 : vector<14x14xi32> to vector<14x14xf32>
    %cst_88 = arith.constant dense<0.000000e+00> : vector<8x14xf32>
    %201 = tpu.matmul %130, %200, %cst_88 {dimension_numbers = #tpu.dot_dimension_numbers<[1], [0], [0], [1], [0, 0, 1, 1], [], []>} : vector<8x14xf32>, vector<14x14xf32>, vector<8x14xf32> -> vector<8x14xf32>
    %c1_89 = arith.constant 1 : index
    %c0_90 = arith.constant 0 : index
    %c0_91 = arith.constant 0 : index
    %202 = vector.load %arg3[%c1_89, %c0_90, %c0_91] : memref<3x8x8xf32, #tpu.memory_space<vmem>>, vector<1x8x8xf32>
    %203 = vector.shape_cast %202 : vector<1x8x8xf32> to vector<8x8xf32>
    %cst_92 = arith.constant dense<0.000000e+00> : vector<8x14xf32>
    %204 = tpu.matmul %203, %201, %cst_92 {dimension_numbers = #tpu.dot_dimension_numbers<[1], [0], [0], [1], [0, 0, 1, 1], [], []>} : vector<8x8xf32>, vector<8x14xf32>, vector<8x14xf32> -> vector<8x14xf32>
    %205 = arith.addf %191, %204 : vector<8x14xf32>
    %206 = tpu.iota {dimensions = array<i32: 0>} : vector<14x14xi32>
    %207 = tpu.iota {dimensions = array<i32: 1>} : vector<14x14xi32>
    %c1_i32_93 = arith.constant 1 : i32
    %208 = vector.broadcast %c1_i32_93 : i32 to vector<14x14xi32>
    %209 = arith.muli %207, %208 : vector<14x14xi32>
    %c1_i32_94 = arith.constant 1 : i32
    %210 = vector.broadcast %c1_i32_94 : i32 to vector<14x14xi32>
    %211 = arith.addi %209, %210 : vector<14x14xi32>
    %212 = arith.cmpi eq, %206, %211 : vector<14x14xi32>
    %213 = arith.extui %212 : vector<14x14xi1> to vector<14x14xi32>
    %214 = arith.sitofp %213 : vector<14x14xi32> to vector<14x14xf32>
    %cst_95 = arith.constant dense<0.000000e+00> : vector<8x14xf32>
    %215 = tpu.matmul %130, %214, %cst_95 {dimension_numbers = #tpu.dot_dimension_numbers<[1], [0], [0], [1], [0, 0, 1, 1], [], []>} : vector<8x14xf32>, vector<14x14xf32>, vector<8x14xf32> -> vector<8x14xf32>
    %c2_96 = arith.constant 2 : index
    %c0_97 = arith.constant 0 : index
    %c0_98 = arith.constant 0 : index
    %216 = vector.load %arg3[%c2_96, %c0_97, %c0_98] : memref<3x8x8xf32, #tpu.memory_space<vmem>>, vector<1x8x8xf32>
    %217 = vector.shape_cast %216 : vector<1x8x8xf32> to vector<8x8xf32>
    %cst_99 = arith.constant dense<0.000000e+00> : vector<8x14xf32>
    %218 = tpu.matmul %217, %215, %cst_99 {dimension_numbers = #tpu.dot_dimension_numbers<[1], [0], [0], [1], [0, 0, 1, 1], [], []>} : vector<8x8xf32>, vector<8x14xf32>, vector<8x14xf32> -> vector<8x14xf32>
    %219 = arith.addf %205, %218 : vector<8x14xf32>
    %cst_100 = arith.constant dense<0.000000e+00> : vector<8xf32>
    %220 = vector.multi_reduction <add>, %176, %cst_100 [1] : vector<8x14xf32> to vector<8xf32>
    %221 = vector.shape_cast %220 : vector<8xf32> to vector<8x1xf32>
    %222 = arith.mulf %176, %176 : vector<8x14xf32>
    %cst_101 = arith.constant dense<0.000000e+00> : vector<8xf32>
    %223 = vector.multi_reduction <add>, %222, %cst_101 [1] : vector<8x14xf32> to vector<8xf32>
    %224 = vector.shape_cast %223 : vector<8xf32> to vector<8x1xf32>
    %cst_102 = arith.constant dense<0.000000e+00> : vector<8xf32>
    %225 = vector.multi_reduction <add>, %219, %cst_102 [1] : vector<8x14xf32> to vector<8xf32>
    %226 = vector.shape_cast %225 : vector<8xf32> to vector<8x1xf32>
    %227 = arith.addf %221, %226 : vector<8x1xf32>
    %228 = arith.mulf %219, %219 : vector<8x14xf32>
    %cst_103 = arith.constant dense<0.000000e+00> : vector<8xf32>
    %229 = vector.multi_reduction <add>, %228, %cst_103 [1] : vector<8x14xf32> to vector<8xf32>
    %230 = vector.shape_cast %229 : vector<8xf32> to vector<8x1xf32>
    %231 = arith.addf %224, %230 : vector<8x1xf32>
    %cst_104 = arith.constant 0.0357142873 : f32
    %232 = vector.broadcast %cst_104 : f32 to vector<8x1xf32>
    %233 = arith.mulf %227, %232 : vector<8x1xf32>
    %cst_105 = arith.constant 0.0357142873 : f32
    %234 = vector.broadcast %cst_105 : f32 to vector<8x1xf32>
    %235 = arith.mulf %231, %234 : vector<8x1xf32>
    %236 = arith.mulf %233, %233 : vector<8x1xf32>
    %237 = arith.subf %235, %236 : vector<8x1xf32>
    %cst_106 = arith.constant 0.000000e+00 : f32
    %238 = vector.broadcast %cst_106 : f32 to vector<8x1xf32>
    %239 = arith.maximumf %237, %238 : vector<8x1xf32>
    %cst_107 = arith.constant 9.99999974E-6 : f32
    %240 = vector.broadcast %cst_107 : f32 to vector<8x1xf32>
    %241 = arith.addf %239, %240 : vector<8x1xf32>
    %242 = math.rsqrt %241 : vector<8x1xf32>
    %243 = arith.mulf %132, %242 : vector<8x1xf32>
    %244 = arith.mulf %233, %243 : vector<8x1xf32>
    %245 = arith.subf %133, %244 : vector<8x1xf32>
    %246 = vector.broadcast %243 : vector<8x1xf32> to vector<8x14xf32>
    %247 = arith.mulf %176, %246 : vector<8x14xf32>
    %248 = vector.broadcast %245 : vector<8x1xf32> to vector<8x14xf32>
    %249 = arith.addf %247, %248 : vector<8x14xf32>
    %250 = vector.broadcast %243 : vector<8x1xf32> to vector<8x14xf32>
    %251 = arith.mulf %219, %250 : vector<8x14xf32>
    %252 = vector.broadcast %245 : vector<8x1xf32> to vector<8x14xf32>
    %253 = arith.addf %251, %252 : vector<8x14xf32>
    %cst_108 = arith.constant 0.000000e+00 : f32
    %254 = vector.broadcast %cst_108 : f32 to vector<8x14xf32>
    %255 = arith.maximumf %249, %254 : vector<8x14xf32>
    %cst_109 = arith.constant 0.000000e+00 : f32
    %256 = vector.broadcast %cst_109 : f32 to vector<8x14xf32>
    %257 = arith.maximumf %253, %256 : vector<8x14xf32>
    %c0_110 = arith.constant 0 : index
    %c0_111 = arith.constant 0 : index
    %258 = vector.load %arg6[%c0_110, %c0_111] : memref<8x2xf32, #tpu.memory_space<vmem>>, vector<8x2xf32>
    %259 = vector.extract_strided_slice %258 {offsets = [0, 0], sizes = [8, 1], strides = [1, 1]} : vector<8x2xf32> to vector<8x1xf32>
    %260 = vector.extract_strided_slice %258 {offsets = [0, 1], sizes = [8, 1], strides = [1, 1]} : vector<8x2xf32> to vector<8x1xf32>
    %cst_112 = arith.constant 0.000000e+00 : f32
    %261 = vector.broadcast %cst_112 : f32 to vector<8x7xf32>
    %262 = tpu.iota {dimensions = array<i32: 0>} : vector<14x7xi32>
    %263 = tpu.iota {dimensions = array<i32: 1>} : vector<14x7xi32>
    %c2_i32_113 = arith.constant 2 : i32
    %264 = vector.broadcast %c2_i32_113 : i32 to vector<14x7xi32>
    %265 = arith.muli %263, %264 : vector<14x7xi32>
    %c-1_i32_114 = arith.constant -1 : i32
    %266 = vector.broadcast %c-1_i32_114 : i32 to vector<14x7xi32>
    %267 = arith.addi %265, %266 : vector<14x7xi32>
    %268 = arith.cmpi eq, %262, %267 : vector<14x7xi32>
    %269 = arith.extui %268 : vector<14x7xi1> to vector<14x7xi32>
    %270 = arith.sitofp %269 : vector<14x7xi32> to vector<14x7xf32>
    %cst_115 = arith.constant dense<0.000000e+00> : vector<8x7xf32>
    %271 = tpu.matmul %255, %270, %cst_115 {dimension_numbers = #tpu.dot_dimension_numbers<[1], [0], [0], [1], [0, 0, 1, 1], [], []>} : vector<8x14xf32>, vector<14x7xf32>, vector<8x7xf32> -> vector<8x7xf32>
    %c0_116 = arith.constant 0 : index
    %c0_117 = arith.constant 0 : index
    %c0_118 = arith.constant 0 : index
    %272 = vector.load %arg5[%c0_116, %c0_117, %c0_118] : memref<4x8x8xf32, #tpu.memory_space<vmem>>, vector<1x8x8xf32>
    %273 = vector.shape_cast %272 : vector<1x8x8xf32> to vector<8x8xf32>
    %cst_119 = arith.constant dense<0.000000e+00> : vector<8x7xf32>
    %274 = tpu.matmul %273, %271, %cst_119 {dimension_numbers = #tpu.dot_dimension_numbers<[1], [0], [0], [1], [0, 0, 1, 1], [], []>} : vector<8x8xf32>, vector<8x7xf32>, vector<8x7xf32> -> vector<8x7xf32>
    %275 = arith.addf %261, %274 : vector<8x7xf32>
    %276 = tpu.iota {dimensions = array<i32: 0>} : vector<14x7xi32>
    %277 = tpu.iota {dimensions = array<i32: 1>} : vector<14x7xi32>
    %c2_i32_120 = arith.constant 2 : i32
    %278 = vector.broadcast %c2_i32_120 : i32 to vector<14x7xi32>
    %279 = arith.muli %277, %278 : vector<14x7xi32>
    %c0_i32_121 = arith.constant 0 : i32
    %280 = vector.broadcast %c0_i32_121 : i32 to vector<14x7xi32>
    %281 = arith.addi %279, %280 : vector<14x7xi32>
    %282 = arith.cmpi eq, %276, %281 : vector<14x7xi32>
    %283 = arith.extui %282 : vector<14x7xi1> to vector<14x7xi32>
    %284 = arith.sitofp %283 : vector<14x7xi32> to vector<14x7xf32>
    %cst_122 = arith.constant dense<0.000000e+00> : vector<8x7xf32>
    %285 = tpu.matmul %255, %284, %cst_122 {dimension_numbers = #tpu.dot_dimension_numbers<[1], [0], [0], [1], [0, 0, 1, 1], [], []>} : vector<8x14xf32>, vector<14x7xf32>, vector<8x7xf32> -> vector<8x7xf32>
    %c1_123 = arith.constant 1 : index
    %c0_124 = arith.constant 0 : index
    %c0_125 = arith.constant 0 : index
    %286 = vector.load %arg5[%c1_123, %c0_124, %c0_125] : memref<4x8x8xf32, #tpu.memory_space<vmem>>, vector<1x8x8xf32>
    %287 = vector.shape_cast %286 : vector<1x8x8xf32> to vector<8x8xf32>
    %cst_126 = arith.constant dense<0.000000e+00> : vector<8x7xf32>
    %288 = tpu.matmul %287, %285, %cst_126 {dimension_numbers = #tpu.dot_dimension_numbers<[1], [0], [0], [1], [0, 0, 1, 1], [], []>} : vector<8x8xf32>, vector<8x7xf32>, vector<8x7xf32> -> vector<8x7xf32>
    %289 = arith.addf %275, %288 : vector<8x7xf32>
    %290 = tpu.iota {dimensions = array<i32: 0>} : vector<14x7xi32>
    %291 = tpu.iota {dimensions = array<i32: 1>} : vector<14x7xi32>
    %c2_i32_127 = arith.constant 2 : i32
    %292 = vector.broadcast %c2_i32_127 : i32 to vector<14x7xi32>
    %293 = arith.muli %291, %292 : vector<14x7xi32>
    %c1_i32_128 = arith.constant 1 : i32
    %294 = vector.broadcast %c1_i32_128 : i32 to vector<14x7xi32>
    %295 = arith.addi %293, %294 : vector<14x7xi32>
    %296 = arith.cmpi eq, %290, %295 : vector<14x7xi32>
    %297 = arith.extui %296 : vector<14x7xi1> to vector<14x7xi32>
    %298 = arith.sitofp %297 : vector<14x7xi32> to vector<14x7xf32>
    %cst_129 = arith.constant dense<0.000000e+00> : vector<8x7xf32>
    %299 = tpu.matmul %255, %298, %cst_129 {dimension_numbers = #tpu.dot_dimension_numbers<[1], [0], [0], [1], [0, 0, 1, 1], [], []>} : vector<8x14xf32>, vector<14x7xf32>, vector<8x7xf32> -> vector<8x7xf32>
    %c2_130 = arith.constant 2 : index
    %c0_131 = arith.constant 0 : index
    %c0_132 = arith.constant 0 : index
    %300 = vector.load %arg5[%c2_130, %c0_131, %c0_132] : memref<4x8x8xf32, #tpu.memory_space<vmem>>, vector<1x8x8xf32>
    %301 = vector.shape_cast %300 : vector<1x8x8xf32> to vector<8x8xf32>
    %cst_133 = arith.constant dense<0.000000e+00> : vector<8x7xf32>
    %302 = tpu.matmul %301, %299, %cst_133 {dimension_numbers = #tpu.dot_dimension_numbers<[1], [0], [0], [1], [0, 0, 1, 1], [], []>} : vector<8x8xf32>, vector<8x7xf32>, vector<8x7xf32> -> vector<8x7xf32>
    %303 = arith.addf %289, %302 : vector<8x7xf32>
    %304 = tpu.iota {dimensions = array<i32: 0>} : vector<14x7xi32>
    %305 = tpu.iota {dimensions = array<i32: 1>} : vector<14x7xi32>
    %c2_i32_134 = arith.constant 2 : i32
    %306 = vector.broadcast %c2_i32_134 : i32 to vector<14x7xi32>
    %307 = arith.muli %305, %306 : vector<14x7xi32>
    %c2_i32_135 = arith.constant 2 : i32
    %308 = vector.broadcast %c2_i32_135 : i32 to vector<14x7xi32>
    %309 = arith.addi %307, %308 : vector<14x7xi32>
    %310 = arith.cmpi eq, %304, %309 : vector<14x7xi32>
    %311 = arith.extui %310 : vector<14x7xi1> to vector<14x7xi32>
    %312 = arith.sitofp %311 : vector<14x7xi32> to vector<14x7xf32>
    %cst_136 = arith.constant dense<0.000000e+00> : vector<8x7xf32>
    %313 = tpu.matmul %255, %312, %cst_136 {dimension_numbers = #tpu.dot_dimension_numbers<[1], [0], [0], [1], [0, 0, 1, 1], [], []>} : vector<8x14xf32>, vector<14x7xf32>, vector<8x7xf32> -> vector<8x7xf32>
    %c3 = arith.constant 3 : index
    %c0_137 = arith.constant 0 : index
    %c0_138 = arith.constant 0 : index
    %314 = vector.load %arg5[%c3, %c0_137, %c0_138] : memref<4x8x8xf32, #tpu.memory_space<vmem>>, vector<1x8x8xf32>
    %315 = vector.shape_cast %314 : vector<1x8x8xf32> to vector<8x8xf32>
    %cst_139 = arith.constant dense<0.000000e+00> : vector<8x7xf32>
    %316 = tpu.matmul %315, %313, %cst_139 {dimension_numbers = #tpu.dot_dimension_numbers<[1], [0], [0], [1], [0, 0, 1, 1], [], []>} : vector<8x8xf32>, vector<8x7xf32>, vector<8x7xf32> -> vector<8x7xf32>
    %317 = arith.addf %303, %316 : vector<8x7xf32>
    %cst_140 = arith.constant 0.000000e+00 : f32
    %318 = vector.broadcast %cst_140 : f32 to vector<8x7xf32>
    %319 = tpu.iota {dimensions = array<i32: 0>} : vector<14x7xi32>
    %320 = tpu.iota {dimensions = array<i32: 1>} : vector<14x7xi32>
    %c2_i32_141 = arith.constant 2 : i32
    %321 = vector.broadcast %c2_i32_141 : i32 to vector<14x7xi32>
    %322 = arith.muli %320, %321 : vector<14x7xi32>
    %c-1_i32_142 = arith.constant -1 : i32
    %323 = vector.broadcast %c-1_i32_142 : i32 to vector<14x7xi32>
    %324 = arith.addi %322, %323 : vector<14x7xi32>
    %325 = arith.cmpi eq, %319, %324 : vector<14x7xi32>
    %326 = arith.extui %325 : vector<14x7xi1> to vector<14x7xi32>
    %327 = arith.sitofp %326 : vector<14x7xi32> to vector<14x7xf32>
    %cst_143 = arith.constant dense<0.000000e+00> : vector<8x7xf32>
    %328 = tpu.matmul %257, %327, %cst_143 {dimension_numbers = #tpu.dot_dimension_numbers<[1], [0], [0], [1], [0, 0, 1, 1], [], []>} : vector<8x14xf32>, vector<14x7xf32>, vector<8x7xf32> -> vector<8x7xf32>
    %c0_144 = arith.constant 0 : index
    %c0_145 = arith.constant 0 : index
    %c0_146 = arith.constant 0 : index
    %329 = vector.load %arg5[%c0_144, %c0_145, %c0_146] : memref<4x8x8xf32, #tpu.memory_space<vmem>>, vector<1x8x8xf32>
    %330 = vector.shape_cast %329 : vector<1x8x8xf32> to vector<8x8xf32>
    %cst_147 = arith.constant dense<0.000000e+00> : vector<8x7xf32>
    %331 = tpu.matmul %330, %328, %cst_147 {dimension_numbers = #tpu.dot_dimension_numbers<[1], [0], [0], [1], [0, 0, 1, 1], [], []>} : vector<8x8xf32>, vector<8x7xf32>, vector<8x7xf32> -> vector<8x7xf32>
    %332 = arith.addf %318, %331 : vector<8x7xf32>
    %333 = tpu.iota {dimensions = array<i32: 0>} : vector<14x7xi32>
    %334 = tpu.iota {dimensions = array<i32: 1>} : vector<14x7xi32>
    %c2_i32_148 = arith.constant 2 : i32
    %335 = vector.broadcast %c2_i32_148 : i32 to vector<14x7xi32>
    %336 = arith.muli %334, %335 : vector<14x7xi32>
    %c0_i32_149 = arith.constant 0 : i32
    %337 = vector.broadcast %c0_i32_149 : i32 to vector<14x7xi32>
    %338 = arith.addi %336, %337 : vector<14x7xi32>
    %339 = arith.cmpi eq, %333, %338 : vector<14x7xi32>
    %340 = arith.extui %339 : vector<14x7xi1> to vector<14x7xi32>
    %341 = arith.sitofp %340 : vector<14x7xi32> to vector<14x7xf32>
    %cst_150 = arith.constant dense<0.000000e+00> : vector<8x7xf32>
    %342 = tpu.matmul %257, %341, %cst_150 {dimension_numbers = #tpu.dot_dimension_numbers<[1], [0], [0], [1], [0, 0, 1, 1], [], []>} : vector<8x14xf32>, vector<14x7xf32>, vector<8x7xf32> -> vector<8x7xf32>
    %c1_151 = arith.constant 1 : index
    %c0_152 = arith.constant 0 : index
    %c0_153 = arith.constant 0 : index
    %343 = vector.load %arg5[%c1_151, %c0_152, %c0_153] : memref<4x8x8xf32, #tpu.memory_space<vmem>>, vector<1x8x8xf32>
    %344 = vector.shape_cast %343 : vector<1x8x8xf32> to vector<8x8xf32>
    %cst_154 = arith.constant dense<0.000000e+00> : vector<8x7xf32>
    %345 = tpu.matmul %344, %342, %cst_154 {dimension_numbers = #tpu.dot_dimension_numbers<[1], [0], [0], [1], [0, 0, 1, 1], [], []>} : vector<8x8xf32>, vector<8x7xf32>, vector<8x7xf32> -> vector<8x7xf32>
    %346 = arith.addf %332, %345 : vector<8x7xf32>
    %347 = tpu.iota {dimensions = array<i32: 0>} : vector<14x7xi32>
    %348 = tpu.iota {dimensions = array<i32: 1>} : vector<14x7xi32>
    %c2_i32_155 = arith.constant 2 : i32
    %349 = vector.broadcast %c2_i32_155 : i32 to vector<14x7xi32>
    %350 = arith.muli %348, %349 : vector<14x7xi32>
    %c1_i32_156 = arith.constant 1 : i32
    %351 = vector.broadcast %c1_i32_156 : i32 to vector<14x7xi32>
    %352 = arith.addi %350, %351 : vector<14x7xi32>
    %353 = arith.cmpi eq, %347, %352 : vector<14x7xi32>
    %354 = arith.extui %353 : vector<14x7xi1> to vector<14x7xi32>
    %355 = arith.sitofp %354 : vector<14x7xi32> to vector<14x7xf32>
    %cst_157 = arith.constant dense<0.000000e+00> : vector<8x7xf32>
    %356 = tpu.matmul %257, %355, %cst_157 {dimension_numbers = #tpu.dot_dimension_numbers<[1], [0], [0], [1], [0, 0, 1, 1], [], []>} : vector<8x14xf32>, vector<14x7xf32>, vector<8x7xf32> -> vector<8x7xf32>
    %c2_158 = arith.constant 2 : index
    %c0_159 = arith.constant 0 : index
    %c0_160 = arith.constant 0 : index
    %357 = vector.load %arg5[%c2_158, %c0_159, %c0_160] : memref<4x8x8xf32, #tpu.memory_space<vmem>>, vector<1x8x8xf32>
    %358 = vector.shape_cast %357 : vector<1x8x8xf32> to vector<8x8xf32>
    %cst_161 = arith.constant dense<0.000000e+00> : vector<8x7xf32>
    %359 = tpu.matmul %358, %356, %cst_161 {dimension_numbers = #tpu.dot_dimension_numbers<[1], [0], [0], [1], [0, 0, 1, 1], [], []>} : vector<8x8xf32>, vector<8x7xf32>, vector<8x7xf32> -> vector<8x7xf32>
    %360 = arith.addf %346, %359 : vector<8x7xf32>
    %361 = tpu.iota {dimensions = array<i32: 0>} : vector<14x7xi32>
    %362 = tpu.iota {dimensions = array<i32: 1>} : vector<14x7xi32>
    %c2_i32_162 = arith.constant 2 : i32
    %363 = vector.broadcast %c2_i32_162 : i32 to vector<14x7xi32>
    %364 = arith.muli %362, %363 : vector<14x7xi32>
    %c2_i32_163 = arith.constant 2 : i32
    %365 = vector.broadcast %c2_i32_163 : i32 to vector<14x7xi32>
    %366 = arith.addi %364, %365 : vector<14x7xi32>
    %367 = arith.cmpi eq, %361, %366 : vector<14x7xi32>
    %368 = arith.extui %367 : vector<14x7xi1> to vector<14x7xi32>
    %369 = arith.sitofp %368 : vector<14x7xi32> to vector<14x7xf32>
    %cst_164 = arith.constant dense<0.000000e+00> : vector<8x7xf32>
    %370 = tpu.matmul %257, %369, %cst_164 {dimension_numbers = #tpu.dot_dimension_numbers<[1], [0], [0], [1], [0, 0, 1, 1], [], []>} : vector<8x14xf32>, vector<14x7xf32>, vector<8x7xf32> -> vector<8x7xf32>
    %c3_165 = arith.constant 3 : index
    %c0_166 = arith.constant 0 : index
    %c0_167 = arith.constant 0 : index
    %371 = vector.load %arg5[%c3_165, %c0_166, %c0_167] : memref<4x8x8xf32, #tpu.memory_space<vmem>>, vector<1x8x8xf32>
    %372 = vector.shape_cast %371 : vector<1x8x8xf32> to vector<8x8xf32>
    %cst_168 = arith.constant dense<0.000000e+00> : vector<8x7xf32>
    %373 = tpu.matmul %372, %370, %cst_168 {dimension_numbers = #tpu.dot_dimension_numbers<[1], [0], [0], [1], [0, 0, 1, 1], [], []>} : vector<8x8xf32>, vector<8x7xf32>, vector<8x7xf32> -> vector<8x7xf32>
    %374 = arith.addf %360, %373 : vector<8x7xf32>
    %cst_169 = arith.constant dense<0.000000e+00> : vector<8xf32>
    %375 = vector.multi_reduction <add>, %317, %cst_169 [1] : vector<8x7xf32> to vector<8xf32>
    %376 = vector.shape_cast %375 : vector<8xf32> to vector<8x1xf32>
    %377 = arith.mulf %317, %317 : vector<8x7xf32>
    %cst_170 = arith.constant dense<0.000000e+00> : vector<8xf32>
    %378 = vector.multi_reduction <add>, %377, %cst_170 [1] : vector<8x7xf32> to vector<8xf32>
    %379 = vector.shape_cast %378 : vector<8xf32> to vector<8x1xf32>
    %cst_171 = arith.constant dense<0.000000e+00> : vector<8xf32>
    %380 = vector.multi_reduction <add>, %374, %cst_171 [1] : vector<8x7xf32> to vector<8xf32>
    %381 = vector.shape_cast %380 : vector<8xf32> to vector<8x1xf32>
    %382 = arith.addf %376, %381 : vector<8x1xf32>
    %383 = arith.mulf %374, %374 : vector<8x7xf32>
    %cst_172 = arith.constant dense<0.000000e+00> : vector<8xf32>
    %384 = vector.multi_reduction <add>, %383, %cst_172 [1] : vector<8x7xf32> to vector<8xf32>
    %385 = vector.shape_cast %384 : vector<8xf32> to vector<8x1xf32>
    %386 = arith.addf %379, %385 : vector<8x1xf32>
    %cst_173 = arith.constant 0.0714285746 : f32
    %387 = vector.broadcast %cst_173 : f32 to vector<8x1xf32>
    %388 = arith.mulf %382, %387 : vector<8x1xf32>
    %cst_174 = arith.constant 0.0714285746 : f32
    %389 = vector.broadcast %cst_174 : f32 to vector<8x1xf32>
    %390 = arith.mulf %386, %389 : vector<8x1xf32>
    %391 = arith.mulf %388, %388 : vector<8x1xf32>
    %392 = arith.subf %390, %391 : vector<8x1xf32>
    %cst_175 = arith.constant 0.000000e+00 : f32
    %393 = vector.broadcast %cst_175 : f32 to vector<8x1xf32>
    %394 = arith.maximumf %392, %393 : vector<8x1xf32>
    %cst_176 = arith.constant 9.99999974E-6 : f32
    %395 = vector.broadcast %cst_176 : f32 to vector<8x1xf32>
    %396 = arith.addf %394, %395 : vector<8x1xf32>
    %397 = math.rsqrt %396 : vector<8x1xf32>
    %398 = arith.mulf %259, %397 : vector<8x1xf32>
    %399 = arith.mulf %388, %398 : vector<8x1xf32>
    %400 = arith.subf %260, %399 : vector<8x1xf32>
    %401 = vector.broadcast %398 : vector<8x1xf32> to vector<8x7xf32>
    %402 = arith.mulf %317, %401 : vector<8x7xf32>
    %403 = vector.broadcast %400 : vector<8x1xf32> to vector<8x7xf32>
    %404 = arith.addf %402, %403 : vector<8x7xf32>
    %405 = vector.broadcast %398 : vector<8x1xf32> to vector<8x7xf32>
    %406 = arith.mulf %374, %405 : vector<8x7xf32>
    %407 = vector.broadcast %400 : vector<8x1xf32> to vector<8x7xf32>
    %408 = arith.addf %406, %407 : vector<8x7xf32>
    %cst_177 = arith.constant 0.000000e+00 : f32
    %409 = vector.broadcast %cst_177 : f32 to vector<8x7xf32>
    %410 = arith.maximumf %404, %409 : vector<8x7xf32>
    %cst_178 = arith.constant 0.000000e+00 : f32
    %411 = vector.broadcast %cst_178 : f32 to vector<8x7xf32>
    %412 = arith.maximumf %408, %411 : vector<8x7xf32>
    %c0_179 = arith.constant 0 : index
    %c0_180 = arith.constant 0 : index
    %413 = vector.load %arg8[%c0_179, %c0_180] : memref<8x2xf32, #tpu.memory_space<vmem>>, vector<8x2xf32>
    %414 = vector.extract_strided_slice %413 {offsets = [0, 0], sizes = [8, 1], strides = [1, 1]} : vector<8x2xf32> to vector<8x1xf32>
    %415 = vector.extract_strided_slice %413 {offsets = [0, 1], sizes = [8, 1], strides = [1, 1]} : vector<8x2xf32> to vector<8x1xf32>
    %cst_181 = arith.constant 0.000000e+00 : f32
    %416 = vector.broadcast %cst_181 : f32 to vector<8x7xf32>
    %417 = tpu.iota {dimensions = array<i32: 0>} : vector<7x7xi32>
    %418 = tpu.iota {dimensions = array<i32: 1>} : vector<7x7xi32>
    %c1_i32_182 = arith.constant 1 : i32
    %419 = vector.broadcast %c1_i32_182 : i32 to vector<7x7xi32>
    %420 = arith.muli %418, %419 : vector<7x7xi32>
    %c-1_i32_183 = arith.constant -1 : i32
    %421 = vector.broadcast %c-1_i32_183 : i32 to vector<7x7xi32>
    %422 = arith.addi %420, %421 : vector<7x7xi32>
    %423 = arith.cmpi eq, %417, %422 : vector<7x7xi32>
    %424 = arith.extui %423 : vector<7x7xi1> to vector<7x7xi32>
    %425 = arith.sitofp %424 : vector<7x7xi32> to vector<7x7xf32>
    %cst_184 = arith.constant dense<0.000000e+00> : vector<8x7xf32>
    %426 = tpu.matmul %410, %425, %cst_184 {dimension_numbers = #tpu.dot_dimension_numbers<[1], [0], [0], [1], [0, 0, 1, 1], [], []>} : vector<8x7xf32>, vector<7x7xf32>, vector<8x7xf32> -> vector<8x7xf32>
    %c0_185 = arith.constant 0 : index
    %c0_186 = arith.constant 0 : index
    %c0_187 = arith.constant 0 : index
    %427 = vector.load %arg7[%c0_185, %c0_186, %c0_187] : memref<3x8x8xf32, #tpu.memory_space<vmem>>, vector<1x8x8xf32>
    %428 = vector.shape_cast %427 : vector<1x8x8xf32> to vector<8x8xf32>
    %cst_188 = arith.constant dense<0.000000e+00> : vector<8x7xf32>
    %429 = tpu.matmul %428, %426, %cst_188 {dimension_numbers = #tpu.dot_dimension_numbers<[1], [0], [0], [1], [0, 0, 1, 1], [], []>} : vector<8x8xf32>, vector<8x7xf32>, vector<8x7xf32> -> vector<8x7xf32>
    %430 = arith.addf %416, %429 : vector<8x7xf32>
    %431 = tpu.iota {dimensions = array<i32: 0>} : vector<7x7xi32>
    %432 = tpu.iota {dimensions = array<i32: 1>} : vector<7x7xi32>
    %c1_i32_189 = arith.constant 1 : i32
    %433 = vector.broadcast %c1_i32_189 : i32 to vector<7x7xi32>
    %434 = arith.muli %432, %433 : vector<7x7xi32>
    %c0_i32_190 = arith.constant 0 : i32
    %435 = vector.broadcast %c0_i32_190 : i32 to vector<7x7xi32>
    %436 = arith.addi %434, %435 : vector<7x7xi32>
    %437 = arith.cmpi eq, %431, %436 : vector<7x7xi32>
    %438 = arith.extui %437 : vector<7x7xi1> to vector<7x7xi32>
    %439 = arith.sitofp %438 : vector<7x7xi32> to vector<7x7xf32>
    %cst_191 = arith.constant dense<0.000000e+00> : vector<8x7xf32>
    %440 = tpu.matmul %410, %439, %cst_191 {dimension_numbers = #tpu.dot_dimension_numbers<[1], [0], [0], [1], [0, 0, 1, 1], [], []>} : vector<8x7xf32>, vector<7x7xf32>, vector<8x7xf32> -> vector<8x7xf32>
    %c1_192 = arith.constant 1 : index
    %c0_193 = arith.constant 0 : index
    %c0_194 = arith.constant 0 : index
    %441 = vector.load %arg7[%c1_192, %c0_193, %c0_194] : memref<3x8x8xf32, #tpu.memory_space<vmem>>, vector<1x8x8xf32>
    %442 = vector.shape_cast %441 : vector<1x8x8xf32> to vector<8x8xf32>
    %cst_195 = arith.constant dense<0.000000e+00> : vector<8x7xf32>
    %443 = tpu.matmul %442, %440, %cst_195 {dimension_numbers = #tpu.dot_dimension_numbers<[1], [0], [0], [1], [0, 0, 1, 1], [], []>} : vector<8x8xf32>, vector<8x7xf32>, vector<8x7xf32> -> vector<8x7xf32>
    %444 = arith.addf %430, %443 : vector<8x7xf32>
    %445 = tpu.iota {dimensions = array<i32: 0>} : vector<7x7xi32>
    %446 = tpu.iota {dimensions = array<i32: 1>} : vector<7x7xi32>
    %c1_i32_196 = arith.constant 1 : i32
    %447 = vector.broadcast %c1_i32_196 : i32 to vector<7x7xi32>
    %448 = arith.muli %446, %447 : vector<7x7xi32>
    %c1_i32_197 = arith.constant 1 : i32
    %449 = vector.broadcast %c1_i32_197 : i32 to vector<7x7xi32>
    %450 = arith.addi %448, %449 : vector<7x7xi32>
    %451 = arith.cmpi eq, %445, %450 : vector<7x7xi32>
    %452 = arith.extui %451 : vector<7x7xi1> to vector<7x7xi32>
    %453 = arith.sitofp %452 : vector<7x7xi32> to vector<7x7xf32>
    %cst_198 = arith.constant dense<0.000000e+00> : vector<8x7xf32>
    %454 = tpu.matmul %410, %453, %cst_198 {dimension_numbers = #tpu.dot_dimension_numbers<[1], [0], [0], [1], [0, 0, 1, 1], [], []>} : vector<8x7xf32>, vector<7x7xf32>, vector<8x7xf32> -> vector<8x7xf32>
    %c2_199 = arith.constant 2 : index
    %c0_200 = arith.constant 0 : index
    %c0_201 = arith.constant 0 : index
    %455 = vector.load %arg7[%c2_199, %c0_200, %c0_201] : memref<3x8x8xf32, #tpu.memory_space<vmem>>, vector<1x8x8xf32>
    %456 = vector.shape_cast %455 : vector<1x8x8xf32> to vector<8x8xf32>
    %cst_202 = arith.constant dense<0.000000e+00> : vector<8x7xf32>
    %457 = tpu.matmul %456, %454, %cst_202 {dimension_numbers = #tpu.dot_dimension_numbers<[1], [0], [0], [1], [0, 0, 1, 1], [], []>} : vector<8x8xf32>, vector<8x7xf32>, vector<8x7xf32> -> vector<8x7xf32>
    %458 = arith.addf %444, %457 : vector<8x7xf32>
    %cst_203 = arith.constant 0.000000e+00 : f32
    %459 = vector.broadcast %cst_203 : f32 to vector<8x7xf32>
    %460 = tpu.iota {dimensions = array<i32: 0>} : vector<7x7xi32>
    %461 = tpu.iota {dimensions = array<i32: 1>} : vector<7x7xi32>
    %c1_i32_204 = arith.constant 1 : i32
    %462 = vector.broadcast %c1_i32_204 : i32 to vector<7x7xi32>
    %463 = arith.muli %461, %462 : vector<7x7xi32>
    %c-1_i32_205 = arith.constant -1 : i32
    %464 = vector.broadcast %c-1_i32_205 : i32 to vector<7x7xi32>
    %465 = arith.addi %463, %464 : vector<7x7xi32>
    %466 = arith.cmpi eq, %460, %465 : vector<7x7xi32>
    %467 = arith.extui %466 : vector<7x7xi1> to vector<7x7xi32>
    %468 = arith.sitofp %467 : vector<7x7xi32> to vector<7x7xf32>
    %cst_206 = arith.constant dense<0.000000e+00> : vector<8x7xf32>
    %469 = tpu.matmul %412, %468, %cst_206 {dimension_numbers = #tpu.dot_dimension_numbers<[1], [0], [0], [1], [0, 0, 1, 1], [], []>} : vector<8x7xf32>, vector<7x7xf32>, vector<8x7xf32> -> vector<8x7xf32>
    %c0_207 = arith.constant 0 : index
    %c0_208 = arith.constant 0 : index
    %c0_209 = arith.constant 0 : index
    %470 = vector.load %arg7[%c0_207, %c0_208, %c0_209] : memref<3x8x8xf32, #tpu.memory_space<vmem>>, vector<1x8x8xf32>
    %471 = vector.shape_cast %470 : vector<1x8x8xf32> to vector<8x8xf32>
    %cst_210 = arith.constant dense<0.000000e+00> : vector<8x7xf32>
    %472 = tpu.matmul %471, %469, %cst_210 {dimension_numbers = #tpu.dot_dimension_numbers<[1], [0], [0], [1], [0, 0, 1, 1], [], []>} : vector<8x8xf32>, vector<8x7xf32>, vector<8x7xf32> -> vector<8x7xf32>
    %473 = arith.addf %459, %472 : vector<8x7xf32>
    %474 = tpu.iota {dimensions = array<i32: 0>} : vector<7x7xi32>
    %475 = tpu.iota {dimensions = array<i32: 1>} : vector<7x7xi32>
    %c1_i32_211 = arith.constant 1 : i32
    %476 = vector.broadcast %c1_i32_211 : i32 to vector<7x7xi32>
    %477 = arith.muli %475, %476 : vector<7x7xi32>
    %c0_i32_212 = arith.constant 0 : i32
    %478 = vector.broadcast %c0_i32_212 : i32 to vector<7x7xi32>
    %479 = arith.addi %477, %478 : vector<7x7xi32>
    %480 = arith.cmpi eq, %474, %479 : vector<7x7xi32>
    %481 = arith.extui %480 : vector<7x7xi1> to vector<7x7xi32>
    %482 = arith.sitofp %481 : vector<7x7xi32> to vector<7x7xf32>
    %cst_213 = arith.constant dense<0.000000e+00> : vector<8x7xf32>
    %483 = tpu.matmul %412, %482, %cst_213 {dimension_numbers = #tpu.dot_dimension_numbers<[1], [0], [0], [1], [0, 0, 1, 1], [], []>} : vector<8x7xf32>, vector<7x7xf32>, vector<8x7xf32> -> vector<8x7xf32>
    %c1_214 = arith.constant 1 : index
    %c0_215 = arith.constant 0 : index
    %c0_216 = arith.constant 0 : index
    %484 = vector.load %arg7[%c1_214, %c0_215, %c0_216] : memref<3x8x8xf32, #tpu.memory_space<vmem>>, vector<1x8x8xf32>
    %485 = vector.shape_cast %484 : vector<1x8x8xf32> to vector<8x8xf32>
    %cst_217 = arith.constant dense<0.000000e+00> : vector<8x7xf32>
    %486 = tpu.matmul %485, %483, %cst_217 {dimension_numbers = #tpu.dot_dimension_numbers<[1], [0], [0], [1], [0, 0, 1, 1], [], []>} : vector<8x8xf32>, vector<8x7xf32>, vector<8x7xf32> -> vector<8x7xf32>
    %487 = arith.addf %473, %486 : vector<8x7xf32>
    %488 = tpu.iota {dimensions = array<i32: 0>} : vector<7x7xi32>
    %489 = tpu.iota {dimensions = array<i32: 1>} : vector<7x7xi32>
    %c1_i32_218 = arith.constant 1 : i32
    %490 = vector.broadcast %c1_i32_218 : i32 to vector<7x7xi32>
    %491 = arith.muli %489, %490 : vector<7x7xi32>
    %c1_i32_219 = arith.constant 1 : i32
    %492 = vector.broadcast %c1_i32_219 : i32 to vector<7x7xi32>
    %493 = arith.addi %491, %492 : vector<7x7xi32>
    %494 = arith.cmpi eq, %488, %493 : vector<7x7xi32>
    %495 = arith.extui %494 : vector<7x7xi1> to vector<7x7xi32>
    %496 = arith.sitofp %495 : vector<7x7xi32> to vector<7x7xf32>
    %cst_220 = arith.constant dense<0.000000e+00> : vector<8x7xf32>
    %497 = tpu.matmul %412, %496, %cst_220 {dimension_numbers = #tpu.dot_dimension_numbers<[1], [0], [0], [1], [0, 0, 1, 1], [], []>} : vector<8x7xf32>, vector<7x7xf32>, vector<8x7xf32> -> vector<8x7xf32>
    %c2_221 = arith.constant 2 : index
    %c0_222 = arith.constant 0 : index
    %c0_223 = arith.constant 0 : index
    %498 = vector.load %arg7[%c2_221, %c0_222, %c0_223] : memref<3x8x8xf32, #tpu.memory_space<vmem>>, vector<1x8x8xf32>
    %499 = vector.shape_cast %498 : vector<1x8x8xf32> to vector<8x8xf32>
    %cst_224 = arith.constant dense<0.000000e+00> : vector<8x7xf32>
    %500 = tpu.matmul %499, %497, %cst_224 {dimension_numbers = #tpu.dot_dimension_numbers<[1], [0], [0], [1], [0, 0, 1, 1], [], []>} : vector<8x8xf32>, vector<8x7xf32>, vector<8x7xf32> -> vector<8x7xf32>
    %501 = arith.addf %487, %500 : vector<8x7xf32>
    %cst_225 = arith.constant dense<0.000000e+00> : vector<8xf32>
    %502 = vector.multi_reduction <add>, %458, %cst_225 [1] : vector<8x7xf32> to vector<8xf32>
    %503 = vector.shape_cast %502 : vector<8xf32> to vector<8x1xf32>
    %504 = arith.mulf %458, %458 : vector<8x7xf32>
    %cst_226 = arith.constant dense<0.000000e+00> : vector<8xf32>
    %505 = vector.multi_reduction <add>, %504, %cst_226 [1] : vector<8x7xf32> to vector<8xf32>
    %506 = vector.shape_cast %505 : vector<8xf32> to vector<8x1xf32>
    %cst_227 = arith.constant dense<0.000000e+00> : vector<8xf32>
    %507 = vector.multi_reduction <add>, %501, %cst_227 [1] : vector<8x7xf32> to vector<8xf32>
    %508 = vector.shape_cast %507 : vector<8xf32> to vector<8x1xf32>
    %509 = arith.addf %503, %508 : vector<8x1xf32>
    %510 = arith.mulf %501, %501 : vector<8x7xf32>
    %cst_228 = arith.constant dense<0.000000e+00> : vector<8xf32>
    %511 = vector.multi_reduction <add>, %510, %cst_228 [1] : vector<8x7xf32> to vector<8xf32>
    %512 = vector.shape_cast %511 : vector<8xf32> to vector<8x1xf32>
    %513 = arith.addf %506, %512 : vector<8x1xf32>
    %cst_229 = arith.constant 0.0714285746 : f32
    %514 = vector.broadcast %cst_229 : f32 to vector<8x1xf32>
    %515 = arith.mulf %509, %514 : vector<8x1xf32>
    %cst_230 = arith.constant 0.0714285746 : f32
    %516 = vector.broadcast %cst_230 : f32 to vector<8x1xf32>
    %517 = arith.mulf %513, %516 : vector<8x1xf32>
    %518 = arith.mulf %515, %515 : vector<8x1xf32>
    %519 = arith.subf %517, %518 : vector<8x1xf32>
    %cst_231 = arith.constant 0.000000e+00 : f32
    %520 = vector.broadcast %cst_231 : f32 to vector<8x1xf32>
    %521 = arith.maximumf %519, %520 : vector<8x1xf32>
    %cst_232 = arith.constant 9.99999974E-6 : f32
    %522 = vector.broadcast %cst_232 : f32 to vector<8x1xf32>
    %523 = arith.addf %521, %522 : vector<8x1xf32>
    %524 = math.rsqrt %523 : vector<8x1xf32>
    %525 = arith.mulf %414, %524 : vector<8x1xf32>
    %526 = arith.mulf %515, %525 : vector<8x1xf32>
    %527 = arith.subf %415, %526 : vector<8x1xf32>
    %528 = vector.broadcast %525 : vector<8x1xf32> to vector<8x7xf32>
    %529 = arith.mulf %458, %528 : vector<8x7xf32>
    %530 = vector.broadcast %527 : vector<8x1xf32> to vector<8x7xf32>
    %531 = arith.addf %529, %530 : vector<8x7xf32>
    %532 = vector.broadcast %525 : vector<8x1xf32> to vector<8x7xf32>
    %533 = arith.mulf %501, %532 : vector<8x7xf32>
    %534 = vector.broadcast %527 : vector<8x1xf32> to vector<8x7xf32>
    %535 = arith.addf %533, %534 : vector<8x7xf32>
    %cst_233 = arith.constant 0.000000e+00 : f32
    %536 = vector.broadcast %cst_233 : f32 to vector<8x7xf32>
    %537 = arith.maximumf %531, %536 : vector<8x7xf32>
    %cst_234 = arith.constant 0.000000e+00 : f32
    %538 = vector.broadcast %cst_234 : f32 to vector<8x7xf32>
    %539 = arith.maximumf %535, %538 : vector<8x7xf32>
    %c0_235 = arith.constant 0 : index
    %c0_236 = arith.constant 0 : index
    %540 = vector.load %arg10[%c0_235, %c0_236] : memref<8x2xf32, #tpu.memory_space<vmem>>, vector<8x2xf32>
    %541 = vector.extract_strided_slice %540 {offsets = [0, 0], sizes = [8, 1], strides = [1, 1]} : vector<8x2xf32> to vector<8x1xf32>
    %542 = vector.extract_strided_slice %540 {offsets = [0, 1], sizes = [8, 1], strides = [1, 1]} : vector<8x2xf32> to vector<8x1xf32>
    %cst_237 = arith.constant 0.000000e+00 : f32
    %543 = vector.broadcast %cst_237 : f32 to vector<8x7xf32>
    %544 = tpu.iota {dimensions = array<i32: 0>} : vector<7x7xi32>
    %545 = tpu.iota {dimensions = array<i32: 1>} : vector<7x7xi32>
    %c1_i32_238 = arith.constant 1 : i32
    %546 = vector.broadcast %c1_i32_238 : i32 to vector<7x7xi32>
    %547 = arith.muli %545, %546 : vector<7x7xi32>
    %c-1_i32_239 = arith.constant -1 : i32
    %548 = vector.broadcast %c-1_i32_239 : i32 to vector<7x7xi32>
    %549 = arith.addi %547, %548 : vector<7x7xi32>
    %550 = arith.cmpi eq, %544, %549 : vector<7x7xi32>
    %551 = arith.extui %550 : vector<7x7xi1> to vector<7x7xi32>
    %552 = arith.sitofp %551 : vector<7x7xi32> to vector<7x7xf32>
    %cst_240 = arith.constant dense<0.000000e+00> : vector<8x7xf32>
    %553 = tpu.matmul %537, %552, %cst_240 {dimension_numbers = #tpu.dot_dimension_numbers<[1], [0], [0], [1], [0, 0, 1, 1], [], []>} : vector<8x7xf32>, vector<7x7xf32>, vector<8x7xf32> -> vector<8x7xf32>
    %c0_241 = arith.constant 0 : index
    %c0_242 = arith.constant 0 : index
    %c0_243 = arith.constant 0 : index
    %554 = vector.load %arg9[%c0_241, %c0_242, %c0_243] : memref<3x8x8xf32, #tpu.memory_space<vmem>>, vector<1x8x8xf32>
    %555 = vector.shape_cast %554 : vector<1x8x8xf32> to vector<8x8xf32>
    %cst_244 = arith.constant dense<0.000000e+00> : vector<8x7xf32>
    %556 = tpu.matmul %555, %553, %cst_244 {dimension_numbers = #tpu.dot_dimension_numbers<[1], [0], [0], [1], [0, 0, 1, 1], [], []>} : vector<8x8xf32>, vector<8x7xf32>, vector<8x7xf32> -> vector<8x7xf32>
    %557 = arith.addf %543, %556 : vector<8x7xf32>
    %558 = tpu.iota {dimensions = array<i32: 0>} : vector<7x7xi32>
    %559 = tpu.iota {dimensions = array<i32: 1>} : vector<7x7xi32>
    %c1_i32_245 = arith.constant 1 : i32
    %560 = vector.broadcast %c1_i32_245 : i32 to vector<7x7xi32>
    %561 = arith.muli %559, %560 : vector<7x7xi32>
    %c0_i32_246 = arith.constant 0 : i32
    %562 = vector.broadcast %c0_i32_246 : i32 to vector<7x7xi32>
    %563 = arith.addi %561, %562 : vector<7x7xi32>
    %564 = arith.cmpi eq, %558, %563 : vector<7x7xi32>
    %565 = arith.extui %564 : vector<7x7xi1> to vector<7x7xi32>
    %566 = arith.sitofp %565 : vector<7x7xi32> to vector<7x7xf32>
    %cst_247 = arith.constant dense<0.000000e+00> : vector<8x7xf32>
    %567 = tpu.matmul %537, %566, %cst_247 {dimension_numbers = #tpu.dot_dimension_numbers<[1], [0], [0], [1], [0, 0, 1, 1], [], []>} : vector<8x7xf32>, vector<7x7xf32>, vector<8x7xf32> -> vector<8x7xf32>
    %c1_248 = arith.constant 1 : index
    %c0_249 = arith.constant 0 : index
    %c0_250 = arith.constant 0 : index
    %568 = vector.load %arg9[%c1_248, %c0_249, %c0_250] : memref<3x8x8xf32, #tpu.memory_space<vmem>>, vector<1x8x8xf32>
    %569 = vector.shape_cast %568 : vector<1x8x8xf32> to vector<8x8xf32>
    %cst_251 = arith.constant dense<0.000000e+00> : vector<8x7xf32>
    %570 = tpu.matmul %569, %567, %cst_251 {dimension_numbers = #tpu.dot_dimension_numbers<[1], [0], [0], [1], [0, 0, 1, 1], [], []>} : vector<8x8xf32>, vector<8x7xf32>, vector<8x7xf32> -> vector<8x7xf32>
    %571 = arith.addf %557, %570 : vector<8x7xf32>
    %572 = tpu.iota {dimensions = array<i32: 0>} : vector<7x7xi32>
    %573 = tpu.iota {dimensions = array<i32: 1>} : vector<7x7xi32>
    %c1_i32_252 = arith.constant 1 : i32
    %574 = vector.broadcast %c1_i32_252 : i32 to vector<7x7xi32>
    %575 = arith.muli %573, %574 : vector<7x7xi32>
    %c1_i32_253 = arith.constant 1 : i32
    %576 = vector.broadcast %c1_i32_253 : i32 to vector<7x7xi32>
    %577 = arith.addi %575, %576 : vector<7x7xi32>
    %578 = arith.cmpi eq, %572, %577 : vector<7x7xi32>
    %579 = arith.extui %578 : vector<7x7xi1> to vector<7x7xi32>
    %580 = arith.sitofp %579 : vector<7x7xi32> to vector<7x7xf32>
    %cst_254 = arith.constant dense<0.000000e+00> : vector<8x7xf32>
    %581 = tpu.matmul %537, %580, %cst_254 {dimension_numbers = #tpu.dot_dimension_numbers<[1], [0], [0], [1], [0, 0, 1, 1], [], []>} : vector<8x7xf32>, vector<7x7xf32>, vector<8x7xf32> -> vector<8x7xf32>
    %c2_255 = arith.constant 2 : index
    %c0_256 = arith.constant 0 : index
    %c0_257 = arith.constant 0 : index
    %582 = vector.load %arg9[%c2_255, %c0_256, %c0_257] : memref<3x8x8xf32, #tpu.memory_space<vmem>>, vector<1x8x8xf32>
    %583 = vector.shape_cast %582 : vector<1x8x8xf32> to vector<8x8xf32>
    %cst_258 = arith.constant dense<0.000000e+00> : vector<8x7xf32>
    %584 = tpu.matmul %583, %581, %cst_258 {dimension_numbers = #tpu.dot_dimension_numbers<[1], [0], [0], [1], [0, 0, 1, 1], [], []>} : vector<8x8xf32>, vector<8x7xf32>, vector<8x7xf32> -> vector<8x7xf32>
    %585 = arith.addf %571, %584 : vector<8x7xf32>
    %cst_259 = arith.constant 0.000000e+00 : f32
    %586 = vector.broadcast %cst_259 : f32 to vector<8x7xf32>
    %587 = tpu.iota {dimensions = array<i32: 0>} : vector<7x7xi32>
    %588 = tpu.iota {dimensions = array<i32: 1>} : vector<7x7xi32>
    %c1_i32_260 = arith.constant 1 : i32
    %589 = vector.broadcast %c1_i32_260 : i32 to vector<7x7xi32>
    %590 = arith.muli %588, %589 : vector<7x7xi32>
    %c-1_i32_261 = arith.constant -1 : i32
    %591 = vector.broadcast %c-1_i32_261 : i32 to vector<7x7xi32>
    %592 = arith.addi %590, %591 : vector<7x7xi32>
    %593 = arith.cmpi eq, %587, %592 : vector<7x7xi32>
    %594 = arith.extui %593 : vector<7x7xi1> to vector<7x7xi32>
    %595 = arith.sitofp %594 : vector<7x7xi32> to vector<7x7xf32>
    %cst_262 = arith.constant dense<0.000000e+00> : vector<8x7xf32>
    %596 = tpu.matmul %539, %595, %cst_262 {dimension_numbers = #tpu.dot_dimension_numbers<[1], [0], [0], [1], [0, 0, 1, 1], [], []>} : vector<8x7xf32>, vector<7x7xf32>, vector<8x7xf32> -> vector<8x7xf32>
    %c0_263 = arith.constant 0 : index
    %c0_264 = arith.constant 0 : index
    %c0_265 = arith.constant 0 : index
    %597 = vector.load %arg9[%c0_263, %c0_264, %c0_265] : memref<3x8x8xf32, #tpu.memory_space<vmem>>, vector<1x8x8xf32>
    %598 = vector.shape_cast %597 : vector<1x8x8xf32> to vector<8x8xf32>
    %cst_266 = arith.constant dense<0.000000e+00> : vector<8x7xf32>
    %599 = tpu.matmul %598, %596, %cst_266 {dimension_numbers = #tpu.dot_dimension_numbers<[1], [0], [0], [1], [0, 0, 1, 1], [], []>} : vector<8x8xf32>, vector<8x7xf32>, vector<8x7xf32> -> vector<8x7xf32>
    %600 = arith.addf %586, %599 : vector<8x7xf32>
    %601 = tpu.iota {dimensions = array<i32: 0>} : vector<7x7xi32>
    %602 = tpu.iota {dimensions = array<i32: 1>} : vector<7x7xi32>
    %c1_i32_267 = arith.constant 1 : i32
    %603 = vector.broadcast %c1_i32_267 : i32 to vector<7x7xi32>
    %604 = arith.muli %602, %603 : vector<7x7xi32>
    %c0_i32_268 = arith.constant 0 : i32
    %605 = vector.broadcast %c0_i32_268 : i32 to vector<7x7xi32>
    %606 = arith.addi %604, %605 : vector<7x7xi32>
    %607 = arith.cmpi eq, %601, %606 : vector<7x7xi32>
    %608 = arith.extui %607 : vector<7x7xi1> to vector<7x7xi32>
    %609 = arith.sitofp %608 : vector<7x7xi32> to vector<7x7xf32>
    %cst_269 = arith.constant dense<0.000000e+00> : vector<8x7xf32>
    %610 = tpu.matmul %539, %609, %cst_269 {dimension_numbers = #tpu.dot_dimension_numbers<[1], [0], [0], [1], [0, 0, 1, 1], [], []>} : vector<8x7xf32>, vector<7x7xf32>, vector<8x7xf32> -> vector<8x7xf32>
    %c1_270 = arith.constant 1 : index
    %c0_271 = arith.constant 0 : index
    %c0_272 = arith.constant 0 : index
    %611 = vector.load %arg9[%c1_270, %c0_271, %c0_272] : memref<3x8x8xf32, #tpu.memory_space<vmem>>, vector<1x8x8xf32>
    %612 = vector.shape_cast %611 : vector<1x8x8xf32> to vector<8x8xf32>
    %cst_273 = arith.constant dense<0.000000e+00> : vector<8x7xf32>
    %613 = tpu.matmul %612, %610, %cst_273 {dimension_numbers = #tpu.dot_dimension_numbers<[1], [0], [0], [1], [0, 0, 1, 1], [], []>} : vector<8x8xf32>, vector<8x7xf32>, vector<8x7xf32> -> vector<8x7xf32>
    %614 = arith.addf %600, %613 : vector<8x7xf32>
    %615 = tpu.iota {dimensions = array<i32: 0>} : vector<7x7xi32>
    %616 = tpu.iota {dimensions = array<i32: 1>} : vector<7x7xi32>
    %c1_i32_274 = arith.constant 1 : i32
    %617 = vector.broadcast %c1_i32_274 : i32 to vector<7x7xi32>
    %618 = arith.muli %616, %617 : vector<7x7xi32>
    %c1_i32_275 = arith.constant 1 : i32
    %619 = vector.broadcast %c1_i32_275 : i32 to vector<7x7xi32>
    %620 = arith.addi %618, %619 : vector<7x7xi32>
    %621 = arith.cmpi eq, %615, %620 : vector<7x7xi32>
    %622 = arith.extui %621 : vector<7x7xi1> to vector<7x7xi32>
    %623 = arith.sitofp %622 : vector<7x7xi32> to vector<7x7xf32>
    %cst_276 = arith.constant dense<0.000000e+00> : vector<8x7xf32>
    %624 = tpu.matmul %539, %623, %cst_276 {dimension_numbers = #tpu.dot_dimension_numbers<[1], [0], [0], [1], [0, 0, 1, 1], [], []>} : vector<8x7xf32>, vector<7x7xf32>, vector<8x7xf32> -> vector<8x7xf32>
    %c2_277 = arith.constant 2 : index
    %c0_278 = arith.constant 0 : index
    %c0_279 = arith.constant 0 : index
    %625 = vector.load %arg9[%c2_277, %c0_278, %c0_279] : memref<3x8x8xf32, #tpu.memory_space<vmem>>, vector<1x8x8xf32>
    %626 = vector.shape_cast %625 : vector<1x8x8xf32> to vector<8x8xf32>
    %cst_280 = arith.constant dense<0.000000e+00> : vector<8x7xf32>
    %627 = tpu.matmul %626, %624, %cst_280 {dimension_numbers = #tpu.dot_dimension_numbers<[1], [0], [0], [1], [0, 0, 1, 1], [], []>} : vector<8x8xf32>, vector<8x7xf32>, vector<8x7xf32> -> vector<8x7xf32>
    %628 = arith.addf %614, %627 : vector<8x7xf32>
    %cst_281 = arith.constant dense<0.000000e+00> : vector<8xf32>
    %629 = vector.multi_reduction <add>, %585, %cst_281 [1] : vector<8x7xf32> to vector<8xf32>
    %630 = vector.shape_cast %629 : vector<8xf32> to vector<8x1xf32>
    %631 = arith.mulf %585, %585 : vector<8x7xf32>
    %cst_282 = arith.constant dense<0.000000e+00> : vector<8xf32>
    %632 = vector.multi_reduction <add>, %631, %cst_282 [1] : vector<8x7xf32> to vector<8xf32>
    %633 = vector.shape_cast %632 : vector<8xf32> to vector<8x1xf32>
    %cst_283 = arith.constant dense<0.000000e+00> : vector<8xf32>
    %634 = vector.multi_reduction <add>, %628, %cst_283 [1] : vector<8x7xf32> to vector<8xf32>
    %635 = vector.shape_cast %634 : vector<8xf32> to vector<8x1xf32>
    %636 = arith.addf %630, %635 : vector<8x1xf32>
    %637 = arith.mulf %628, %628 : vector<8x7xf32>
    %cst_284 = arith.constant dense<0.000000e+00> : vector<8xf32>
    %638 = vector.multi_reduction <add>, %637, %cst_284 [1] : vector<8x7xf32> to vector<8xf32>
    %639 = vector.shape_cast %638 : vector<8xf32> to vector<8x1xf32>
    %640 = arith.addf %633, %639 : vector<8x1xf32>
    %cst_285 = arith.constant 0.0714285746 : f32
    %641 = vector.broadcast %cst_285 : f32 to vector<8x1xf32>
    %642 = arith.mulf %636, %641 : vector<8x1xf32>
    %cst_286 = arith.constant 0.0714285746 : f32
    %643 = vector.broadcast %cst_286 : f32 to vector<8x1xf32>
    %644 = arith.mulf %640, %643 : vector<8x1xf32>
    %645 = arith.mulf %642, %642 : vector<8x1xf32>
    %646 = arith.subf %644, %645 : vector<8x1xf32>
    %cst_287 = arith.constant 0.000000e+00 : f32
    %647 = vector.broadcast %cst_287 : f32 to vector<8x1xf32>
    %648 = arith.maximumf %646, %647 : vector<8x1xf32>
    %cst_288 = arith.constant 9.99999974E-6 : f32
    %649 = vector.broadcast %cst_288 : f32 to vector<8x1xf32>
    %650 = arith.addf %648, %649 : vector<8x1xf32>
    %651 = math.rsqrt %650 : vector<8x1xf32>
    %652 = arith.mulf %541, %651 : vector<8x1xf32>
    %653 = arith.mulf %642, %652 : vector<8x1xf32>
    %654 = arith.subf %542, %653 : vector<8x1xf32>
    %655 = vector.broadcast %652 : vector<8x1xf32> to vector<8x7xf32>
    %656 = arith.mulf %585, %655 : vector<8x7xf32>
    %657 = vector.broadcast %654 : vector<8x1xf32> to vector<8x7xf32>
    %658 = arith.addf %656, %657 : vector<8x7xf32>
    %659 = vector.broadcast %652 : vector<8x1xf32> to vector<8x7xf32>
    %660 = arith.mulf %628, %659 : vector<8x7xf32>
    %661 = vector.broadcast %654 : vector<8x1xf32> to vector<8x7xf32>
    %662 = arith.addf %660, %661 : vector<8x7xf32>
    %cst_289 = arith.constant 0.000000e+00 : f32
    %663 = vector.broadcast %cst_289 : f32 to vector<8x7xf32>
    %664 = arith.maximumf %658, %663 : vector<8x7xf32>
    %cst_290 = arith.constant 0.000000e+00 : f32
    %665 = vector.broadcast %cst_290 : f32 to vector<8x7xf32>
    %666 = arith.maximumf %662, %665 : vector<8x7xf32>
    %c0_291 = arith.constant 0 : index
    %c0_292 = arith.constant 0 : index
    %667 = vector.load %arg12[%c0_291, %c0_292] : memref<16x1xf32, #tpu.memory_space<vmem>>, vector<16x1xf32>
    %cst_293 = arith.constant 0.000000e+00 : f32
    %668 = vector.broadcast %cst_293 : f32 to vector<16x7xf32>
    %669 = tpu.iota {dimensions = array<i32: 0>} : vector<7x7xi32>
    %670 = tpu.iota {dimensions = array<i32: 1>} : vector<7x7xi32>
    %c1_i32_294 = arith.constant 1 : i32
    %671 = vector.broadcast %c1_i32_294 : i32 to vector<7x7xi32>
    %672 = arith.muli %670, %671 : vector<7x7xi32>
    %c0_i32_295 = arith.constant 0 : i32
    %673 = vector.broadcast %c0_i32_295 : i32 to vector<7x7xi32>
    %674 = arith.addi %672, %673 : vector<7x7xi32>
    %675 = arith.cmpi eq, %669, %674 : vector<7x7xi32>
    %676 = arith.extui %675 : vector<7x7xi1> to vector<7x7xi32>
    %677 = arith.sitofp %676 : vector<7x7xi32> to vector<7x7xf32>
    %cst_296 = arith.constant dense<0.000000e+00> : vector<8x7xf32>
    %678 = tpu.matmul %664, %677, %cst_296 {dimension_numbers = #tpu.dot_dimension_numbers<[1], [0], [0], [1], [0, 0, 1, 1], [], []>} : vector<8x7xf32>, vector<7x7xf32>, vector<8x7xf32> -> vector<8x7xf32>
    %c0_297 = arith.constant 0 : index
    %c0_298 = arith.constant 0 : index
    %c0_299 = arith.constant 0 : index
    %679 = vector.load %arg11[%c0_297, %c0_298, %c0_299] : memref<1x16x8xf32, #tpu.memory_space<vmem>>, vector<1x16x8xf32>
    %680 = vector.shape_cast %679 : vector<1x16x8xf32> to vector<16x8xf32>
    %cst_300 = arith.constant dense<0.000000e+00> : vector<16x7xf32>
    %681 = tpu.matmul %680, %678, %cst_300 {dimension_numbers = #tpu.dot_dimension_numbers<[1], [0], [0], [1], [0, 0, 1, 1], [], []>} : vector<16x8xf32>, vector<8x7xf32>, vector<16x7xf32> -> vector<16x7xf32>
    %682 = arith.addf %668, %681 : vector<16x7xf32>
    %683 = vector.broadcast %667 : vector<16x1xf32> to vector<16x7xf32>
    %684 = arith.addf %682, %683 : vector<16x7xf32>
    %cst_301 = arith.constant 0.000000e+00 : f32
    %685 = vector.broadcast %cst_301 : f32 to vector<16x7xf32>
    %686 = tpu.iota {dimensions = array<i32: 0>} : vector<7x7xi32>
    %687 = tpu.iota {dimensions = array<i32: 1>} : vector<7x7xi32>
    %c1_i32_302 = arith.constant 1 : i32
    %688 = vector.broadcast %c1_i32_302 : i32 to vector<7x7xi32>
    %689 = arith.muli %687, %688 : vector<7x7xi32>
    %c0_i32_303 = arith.constant 0 : i32
    %690 = vector.broadcast %c0_i32_303 : i32 to vector<7x7xi32>
    %691 = arith.addi %689, %690 : vector<7x7xi32>
    %692 = arith.cmpi eq, %686, %691 : vector<7x7xi32>
    %693 = arith.extui %692 : vector<7x7xi1> to vector<7x7xi32>
    %694 = arith.sitofp %693 : vector<7x7xi32> to vector<7x7xf32>
    %cst_304 = arith.constant dense<0.000000e+00> : vector<8x7xf32>
    %695 = tpu.matmul %666, %694, %cst_304 {dimension_numbers = #tpu.dot_dimension_numbers<[1], [0], [0], [1], [0, 0, 1, 1], [], []>} : vector<8x7xf32>, vector<7x7xf32>, vector<8x7xf32> -> vector<8x7xf32>
    %c0_305 = arith.constant 0 : index
    %c0_306 = arith.constant 0 : index
    %c0_307 = arith.constant 0 : index
    %696 = vector.load %arg11[%c0_305, %c0_306, %c0_307] : memref<1x16x8xf32, #tpu.memory_space<vmem>>, vector<1x16x8xf32>
    %697 = vector.shape_cast %696 : vector<1x16x8xf32> to vector<16x8xf32>
    %cst_308 = arith.constant dense<0.000000e+00> : vector<16x7xf32>
    %698 = tpu.matmul %697, %695, %cst_308 {dimension_numbers = #tpu.dot_dimension_numbers<[1], [0], [0], [1], [0, 0, 1, 1], [], []>} : vector<16x8xf32>, vector<8x7xf32>, vector<16x7xf32> -> vector<16x7xf32>
    %699 = arith.addf %685, %698 : vector<16x7xf32>
    %700 = vector.broadcast %667 : vector<16x1xf32> to vector<16x7xf32>
    %701 = arith.addf %699, %700 : vector<16x7xf32>
    %c0_309 = arith.constant 0 : index
    %c0_310 = arith.constant 0 : index
    %c0_311 = arith.constant 0 : index
    %702 = vector.load %arg26[%c0_309, %c0_310, %c0_311] : memref<2x16x7xf32, #tpu.memory_space<vmem>>, vector<1x16x7xf32>
    %703 = vector.shape_cast %702 : vector<1x16x7xf32> to vector<16x7xf32>
    %704 = vector.shape_cast %684 : vector<16x7xf32> to vector<1x16x7xf32>
    tpu.vector_store %arg26[%c0_309, %c0_310, %c0_311], %704 {strides = array<i32>} : memref<2x16x7xf32, #tpu.memory_space<vmem>>, vector<1x16x7xf32>,
    %c1_312 = arith.constant 1 : index
    %c0_313 = arith.constant 0 : index
    %c0_314 = arith.constant 0 : index
    %705 = vector.load %arg26[%c1_312, %c0_313, %c0_314] : memref<2x16x7xf32, #tpu.memory_space<vmem>>, vector<1x16x7xf32>
    %706 = vector.shape_cast %705 : vector<1x16x7xf32> to vector<16x7xf32>
    %707 = vector.shape_cast %701 : vector<16x7xf32> to vector<1x16x7xf32>
    tpu.vector_store %arg26[%c1_312, %c0_313, %c0_314], %707 {strides = array<i32>} : memref<2x16x7xf32, #tpu.memory_space<vmem>>, vector<1x16x7xf32>,
    %c0_315 = arith.constant 0 : index
    %c0_316 = arith.constant 0 : index
    %708 = vector.load %arg14[%c0_315, %c0_316] : memref<8x1xf32, #tpu.memory_space<vmem>>, vector<8x1xf32>
    %c0_317 = arith.constant 0 : index
    %c0_318 = arith.constant 0 : index
    %709 = vector.load %arg15[%c0_317, %c0_318] : memref<8x2xf32, #tpu.memory_space<vmem>>, vector<8x2xf32>
    %710 = vector.extract_strided_slice %709 {offsets = [0, 0], sizes = [8, 1], strides = [1, 1]} : vector<8x2xf32> to vector<8x1xf32>
    %711 = vector.extract_strided_slice %709 {offsets = [0, 1], sizes = [8, 1], strides = [1, 1]} : vector<8x2xf32> to vector<8x1xf32>
    %cst_319 = arith.constant 0.000000e+00 : f32
    %712 = vector.broadcast %cst_319 : f32 to vector<8x7xf32>
    %713 = tpu.iota {dimensions = array<i32: 0>} : vector<7x7xi32>
    %714 = tpu.iota {dimensions = array<i32: 1>} : vector<7x7xi32>
    %c1_i32_320 = arith.constant 1 : i32
    %715 = vector.broadcast %c1_i32_320 : i32 to vector<7x7xi32>
    %716 = arith.muli %713, %715 : vector<7x7xi32>
    %c0_i32_321 = arith.constant 0 : i32
    %717 = vector.broadcast %c0_i32_321 : i32 to vector<7x7xi32>
    %718 = arith.addi %716, %717 : vector<7x7xi32>
    %719 = arith.cmpi eq, %714, %718 : vector<7x7xi32>
    %720 = arith.extui %719 : vector<7x7xi1> to vector<7x7xi32>
    %721 = arith.sitofp %720 : vector<7x7xi32> to vector<7x7xf32>
    %cst_322 = arith.constant dense<0.000000e+00> : vector<16x7xf32>
    %722 = tpu.matmul %684, %721, %cst_322 {dimension_numbers = #tpu.dot_dimension_numbers<[1], [0], [0], [1], [0, 0, 1, 1], [], []>} : vector<16x7xf32>, vector<7x7xf32>, vector<16x7xf32> -> vector<16x7xf32>
    %c0_323 = arith.constant 0 : index
    %c0_324 = arith.constant 0 : index
    %c0_325 = arith.constant 0 : index
    %723 = vector.load %arg13[%c0_323, %c0_324, %c0_325] : memref<1x8x16xf32, #tpu.memory_space<vmem>>, vector<1x8x16xf32>
    %724 = vector.shape_cast %723 : vector<1x8x16xf32> to vector<8x16xf32>
    %cst_326 = arith.constant dense<0.000000e+00> : vector<8x7xf32>
    %725 = tpu.matmul %724, %722, %cst_326 {dimension_numbers = #tpu.dot_dimension_numbers<[1], [0], [0], [1], [0, 0, 1, 1], [], []>} : vector<8x16xf32>, vector<16x7xf32>, vector<8x7xf32> -> vector<8x7xf32>
    %726 = arith.addf %712, %725 : vector<8x7xf32>
    %727 = vector.broadcast %708 : vector<8x1xf32> to vector<8x7xf32>
    %728 = arith.addf %726, %727 : vector<8x7xf32>
    %cst_327 = arith.constant 0.000000e+00 : f32
    %729 = vector.broadcast %cst_327 : f32 to vector<8x7xf32>
    %730 = tpu.iota {dimensions = array<i32: 0>} : vector<7x7xi32>
    %731 = tpu.iota {dimensions = array<i32: 1>} : vector<7x7xi32>
    %c1_i32_328 = arith.constant 1 : i32
    %732 = vector.broadcast %c1_i32_328 : i32 to vector<7x7xi32>
    %733 = arith.muli %730, %732 : vector<7x7xi32>
    %c0_i32_329 = arith.constant 0 : i32
    %734 = vector.broadcast %c0_i32_329 : i32 to vector<7x7xi32>
    %735 = arith.addi %733, %734 : vector<7x7xi32>
    %736 = arith.cmpi eq, %731, %735 : vector<7x7xi32>
    %737 = arith.extui %736 : vector<7x7xi1> to vector<7x7xi32>
    %738 = arith.sitofp %737 : vector<7x7xi32> to vector<7x7xf32>
    %cst_330 = arith.constant dense<0.000000e+00> : vector<16x7xf32>
    %739 = tpu.matmul %701, %738, %cst_330 {dimension_numbers = #tpu.dot_dimension_numbers<[1], [0], [0], [1], [0, 0, 1, 1], [], []>} : vector<16x7xf32>, vector<7x7xf32>, vector<16x7xf32> -> vector<16x7xf32>
    %c0_331 = arith.constant 0 : index
    %c0_332 = arith.constant 0 : index
    %c0_333 = arith.constant 0 : index
    %740 = vector.load %arg13[%c0_331, %c0_332, %c0_333] : memref<1x8x16xf32, #tpu.memory_space<vmem>>, vector<1x8x16xf32>
    %741 = vector.shape_cast %740 : vector<1x8x16xf32> to vector<8x16xf32>
    %cst_334 = arith.constant dense<0.000000e+00> : vector<8x7xf32>
    %742 = tpu.matmul %741, %739, %cst_334 {dimension_numbers = #tpu.dot_dimension_numbers<[1], [0], [0], [1], [0, 0, 1, 1], [], []>} : vector<8x16xf32>, vector<16x7xf32>, vector<8x7xf32> -> vector<8x7xf32>
    %743 = arith.addf %729, %742 : vector<8x7xf32>
    %744 = vector.broadcast %708 : vector<8x1xf32> to vector<8x7xf32>
    %745 = arith.addf %743, %744 : vector<8x7xf32>
    %cst_335 = arith.constant dense<0.000000e+00> : vector<8xf32>
    %746 = vector.multi_reduction <add>, %728, %cst_335 [1] : vector<8x7xf32> to vector<8xf32>
    %747 = vector.shape_cast %746 : vector<8xf32> to vector<8x1xf32>
    %748 = arith.mulf %728, %728 : vector<8x7xf32>
    %cst_336 = arith.constant dense<0.000000e+00> : vector<8xf32>
    %749 = vector.multi_reduction <add>, %748, %cst_336 [1] : vector<8x7xf32> to vector<8xf32>
    %750 = vector.shape_cast %749 : vector<8xf32> to vector<8x1xf32>
    %cst_337 = arith.constant dense<0.000000e+00> : vector<8xf32>
    %751 = vector.multi_reduction <add>, %745, %cst_337 [1] : vector<8x7xf32> to vector<8xf32>
    %752 = vector.shape_cast %751 : vector<8xf32> to vector<8x1xf32>
    %753 = arith.addf %747, %752 : vector<8x1xf32>
    %754 = arith.mulf %745, %745 : vector<8x7xf32>
    %cst_338 = arith.constant dense<0.000000e+00> : vector<8xf32>
    %755 = vector.multi_reduction <add>, %754, %cst_338 [1] : vector<8x7xf32> to vector<8xf32>
    %756 = vector.shape_cast %755 : vector<8xf32> to vector<8x1xf32>
    %757 = arith.addf %750, %756 : vector<8x1xf32>
    %cst_339 = arith.constant 0.0714285746 : f32
    %758 = vector.broadcast %cst_339 : f32 to vector<8x1xf32>
    %759 = arith.mulf %753, %758 : vector<8x1xf32>
    %cst_340 = arith.constant 0.0714285746 : f32
    %760 = vector.broadcast %cst_340 : f32 to vector<8x1xf32>
    %761 = arith.mulf %757, %760 : vector<8x1xf32>
    %762 = arith.mulf %759, %759 : vector<8x1xf32>
    %763 = arith.subf %761, %762 : vector<8x1xf32>
    %cst_341 = arith.constant 0.000000e+00 : f32
    %764 = vector.broadcast %cst_341 : f32 to vector<8x1xf32>
    %765 = arith.maximumf %763, %764 : vector<8x1xf32>
    %cst_342 = arith.constant 9.99999974E-6 : f32
    %766 = vector.broadcast %cst_342 : f32 to vector<8x1xf32>
    %767 = arith.addf %765, %766 : vector<8x1xf32>
    %768 = math.rsqrt %767 : vector<8x1xf32>
    %769 = arith.mulf %710, %768 : vector<8x1xf32>
    %770 = arith.mulf %759, %769 : vector<8x1xf32>
    %771 = arith.subf %711, %770 : vector<8x1xf32>
    %772 = vector.broadcast %769 : vector<8x1xf32> to vector<8x7xf32>
    %773 = arith.mulf %728, %772 : vector<8x7xf32>
    %774 = vector.broadcast %771 : vector<8x1xf32> to vector<8x7xf32>
    %775 = arith.addf %773, %774 : vector<8x7xf32>
    %776 = vector.broadcast %769 : vector<8x1xf32> to vector<8x7xf32>
    %777 = arith.mulf %745, %776 : vector<8x7xf32>
    %778 = vector.broadcast %771 : vector<8x1xf32> to vector<8x7xf32>
    %779 = arith.addf %777, %778 : vector<8x7xf32>
    %cst_343 = arith.constant 0.000000e+00 : f32
    %780 = vector.broadcast %cst_343 : f32 to vector<8x7xf32>
    %781 = arith.maximumf %775, %780 : vector<8x7xf32>
    %cst_344 = arith.constant 0.000000e+00 : f32
    %782 = vector.broadcast %cst_344 : f32 to vector<8x7xf32>
    %783 = arith.maximumf %779, %782 : vector<8x7xf32>
    %c0_345 = arith.constant 0 : index
    %c0_346 = arith.constant 0 : index
    %784 = vector.load %arg17[%c0_345, %c0_346] : memref<8x2xf32, #tpu.memory_space<vmem>>, vector<8x2xf32>
    %785 = vector.extract_strided_slice %784 {offsets = [0, 0], sizes = [8, 1], strides = [1, 1]} : vector<8x2xf32> to vector<8x1xf32>
    %786 = vector.extract_strided_slice %784 {offsets = [0, 1], sizes = [8, 1], strides = [1, 1]} : vector<8x2xf32> to vector<8x1xf32>
    %cst_347 = arith.constant 0.000000e+00 : f32
    %787 = vector.broadcast %cst_347 : f32 to vector<8x7xf32>
    %788 = tpu.iota {dimensions = array<i32: 0>} : vector<7x7xi32>
    %789 = tpu.iota {dimensions = array<i32: 1>} : vector<7x7xi32>
    %c1_i32_348 = arith.constant 1 : i32
    %790 = vector.broadcast %c1_i32_348 : i32 to vector<7x7xi32>
    %791 = arith.muli %788, %790 : vector<7x7xi32>
    %c-1_i32_349 = arith.constant -1 : i32
    %792 = vector.broadcast %c-1_i32_349 : i32 to vector<7x7xi32>
    %793 = arith.addi %791, %792 : vector<7x7xi32>
    %794 = arith.cmpi eq, %789, %793 : vector<7x7xi32>
    %795 = arith.extui %794 : vector<7x7xi1> to vector<7x7xi32>
    %796 = arith.sitofp %795 : vector<7x7xi32> to vector<7x7xf32>
    %cst_350 = arith.constant dense<0.000000e+00> : vector<8x7xf32>
    %797 = tpu.matmul %781, %796, %cst_350 {dimension_numbers = #tpu.dot_dimension_numbers<[1], [0], [0], [1], [0, 0, 1, 1], [], []>} : vector<8x7xf32>, vector<7x7xf32>, vector<8x7xf32> -> vector<8x7xf32>
    %c0_351 = arith.constant 0 : index
    %c0_352 = arith.constant 0 : index
    %c0_353 = arith.constant 0 : index
    %798 = vector.load %arg16[%c0_351, %c0_352, %c0_353] : memref<3x8x8xf32, #tpu.memory_space<vmem>>, vector<1x8x8xf32>
    %799 = vector.shape_cast %798 : vector<1x8x8xf32> to vector<8x8xf32>
    %cst_354 = arith.constant dense<0.000000e+00> : vector<8x7xf32>
    %800 = tpu.matmul %799, %797, %cst_354 {dimension_numbers = #tpu.dot_dimension_numbers<[1], [0], [0], [1], [0, 0, 1, 1], [], []>} : vector<8x8xf32>, vector<8x7xf32>, vector<8x7xf32> -> vector<8x7xf32>
    %801 = arith.addf %787, %800 : vector<8x7xf32>
    %802 = tpu.iota {dimensions = array<i32: 0>} : vector<7x7xi32>
    %803 = tpu.iota {dimensions = array<i32: 1>} : vector<7x7xi32>
    %c1_i32_355 = arith.constant 1 : i32
    %804 = vector.broadcast %c1_i32_355 : i32 to vector<7x7xi32>
    %805 = arith.muli %802, %804 : vector<7x7xi32>
    %c0_i32_356 = arith.constant 0 : i32
    %806 = vector.broadcast %c0_i32_356 : i32 to vector<7x7xi32>
    %807 = arith.addi %805, %806 : vector<7x7xi32>
    %808 = arith.cmpi eq, %803, %807 : vector<7x7xi32>
    %809 = arith.extui %808 : vector<7x7xi1> to vector<7x7xi32>
    %810 = arith.sitofp %809 : vector<7x7xi32> to vector<7x7xf32>
    %cst_357 = arith.constant dense<0.000000e+00> : vector<8x7xf32>
    %811 = tpu.matmul %781, %810, %cst_357 {dimension_numbers = #tpu.dot_dimension_numbers<[1], [0], [0], [1], [0, 0, 1, 1], [], []>} : vector<8x7xf32>, vector<7x7xf32>, vector<8x7xf32> -> vector<8x7xf32>
    %c1_358 = arith.constant 1 : index
    %c0_359 = arith.constant 0 : index
    %c0_360 = arith.constant 0 : index
    %812 = vector.load %arg16[%c1_358, %c0_359, %c0_360] : memref<3x8x8xf32, #tpu.memory_space<vmem>>, vector<1x8x8xf32>
    %813 = vector.shape_cast %812 : vector<1x8x8xf32> to vector<8x8xf32>
    %cst_361 = arith.constant dense<0.000000e+00> : vector<8x7xf32>
    %814 = tpu.matmul %813, %811, %cst_361 {dimension_numbers = #tpu.dot_dimension_numbers<[1], [0], [0], [1], [0, 0, 1, 1], [], []>} : vector<8x8xf32>, vector<8x7xf32>, vector<8x7xf32> -> vector<8x7xf32>
    %815 = arith.addf %801, %814 : vector<8x7xf32>
    %816 = tpu.iota {dimensions = array<i32: 0>} : vector<7x7xi32>
    %817 = tpu.iota {dimensions = array<i32: 1>} : vector<7x7xi32>
    %c1_i32_362 = arith.constant 1 : i32
    %818 = vector.broadcast %c1_i32_362 : i32 to vector<7x7xi32>
    %819 = arith.muli %816, %818 : vector<7x7xi32>
    %c1_i32_363 = arith.constant 1 : i32
    %820 = vector.broadcast %c1_i32_363 : i32 to vector<7x7xi32>
    %821 = arith.addi %819, %820 : vector<7x7xi32>
    %822 = arith.cmpi eq, %817, %821 : vector<7x7xi32>
    %823 = arith.extui %822 : vector<7x7xi1> to vector<7x7xi32>
    %824 = arith.sitofp %823 : vector<7x7xi32> to vector<7x7xf32>
    %cst_364 = arith.constant dense<0.000000e+00> : vector<8x7xf32>
    %825 = tpu.matmul %781, %824, %cst_364 {dimension_numbers = #tpu.dot_dimension_numbers<[1], [0], [0], [1], [0, 0, 1, 1], [], []>} : vector<8x7xf32>, vector<7x7xf32>, vector<8x7xf32> -> vector<8x7xf32>
    %c2_365 = arith.constant 2 : index
    %c0_366 = arith.constant 0 : index
    %c0_367 = arith.constant 0 : index
    %826 = vector.load %arg16[%c2_365, %c0_366, %c0_367] : memref<3x8x8xf32, #tpu.memory_space<vmem>>, vector<1x8x8xf32>
    %827 = vector.shape_cast %826 : vector<1x8x8xf32> to vector<8x8xf32>
    %cst_368 = arith.constant dense<0.000000e+00> : vector<8x7xf32>
    %828 = tpu.matmul %827, %825, %cst_368 {dimension_numbers = #tpu.dot_dimension_numbers<[1], [0], [0], [1], [0, 0, 1, 1], [], []>} : vector<8x8xf32>, vector<8x7xf32>, vector<8x7xf32> -> vector<8x7xf32>
    %829 = arith.addf %815, %828 : vector<8x7xf32>
    %cst_369 = arith.constant 0.000000e+00 : f32
    %830 = vector.broadcast %cst_369 : f32 to vector<8x7xf32>
    %831 = tpu.iota {dimensions = array<i32: 0>} : vector<7x7xi32>
    %832 = tpu.iota {dimensions = array<i32: 1>} : vector<7x7xi32>
    %c1_i32_370 = arith.constant 1 : i32
    %833 = vector.broadcast %c1_i32_370 : i32 to vector<7x7xi32>
    %834 = arith.muli %831, %833 : vector<7x7xi32>
    %c-1_i32_371 = arith.constant -1 : i32
    %835 = vector.broadcast %c-1_i32_371 : i32 to vector<7x7xi32>
    %836 = arith.addi %834, %835 : vector<7x7xi32>
    %837 = arith.cmpi eq, %832, %836 : vector<7x7xi32>
    %838 = arith.extui %837 : vector<7x7xi1> to vector<7x7xi32>
    %839 = arith.sitofp %838 : vector<7x7xi32> to vector<7x7xf32>
    %cst_372 = arith.constant dense<0.000000e+00> : vector<8x7xf32>
    %840 = tpu.matmul %783, %839, %cst_372 {dimension_numbers = #tpu.dot_dimension_numbers<[1], [0], [0], [1], [0, 0, 1, 1], [], []>} : vector<8x7xf32>, vector<7x7xf32>, vector<8x7xf32> -> vector<8x7xf32>
    %c0_373 = arith.constant 0 : index
    %c0_374 = arith.constant 0 : index
    %c0_375 = arith.constant 0 : index
    %841 = vector.load %arg16[%c0_373, %c0_374, %c0_375] : memref<3x8x8xf32, #tpu.memory_space<vmem>>, vector<1x8x8xf32>
    %842 = vector.shape_cast %841 : vector<1x8x8xf32> to vector<8x8xf32>
    %cst_376 = arith.constant dense<0.000000e+00> : vector<8x7xf32>
    %843 = tpu.matmul %842, %840, %cst_376 {dimension_numbers = #tpu.dot_dimension_numbers<[1], [0], [0], [1], [0, 0, 1, 1], [], []>} : vector<8x8xf32>, vector<8x7xf32>, vector<8x7xf32> -> vector<8x7xf32>
    %844 = arith.addf %830, %843 : vector<8x7xf32>
    %845 = tpu.iota {dimensions = array<i32: 0>} : vector<7x7xi32>
    %846 = tpu.iota {dimensions = array<i32: 1>} : vector<7x7xi32>
    %c1_i32_377 = arith.constant 1 : i32
    %847 = vector.broadcast %c1_i32_377 : i32 to vector<7x7xi32>
    %848 = arith.muli %845, %847 : vector<7x7xi32>
    %c0_i32_378 = arith.constant 0 : i32
    %849 = vector.broadcast %c0_i32_378 : i32 to vector<7x7xi32>
    %850 = arith.addi %848, %849 : vector<7x7xi32>
    %851 = arith.cmpi eq, %846, %850 : vector<7x7xi32>
    %852 = arith.extui %851 : vector<7x7xi1> to vector<7x7xi32>
    %853 = arith.sitofp %852 : vector<7x7xi32> to vector<7x7xf32>
    %cst_379 = arith.constant dense<0.000000e+00> : vector<8x7xf32>
    %854 = tpu.matmul %783, %853, %cst_379 {dimension_numbers = #tpu.dot_dimension_numbers<[1], [0], [0], [1], [0, 0, 1, 1], [], []>} : vector<8x7xf32>, vector<7x7xf32>, vector<8x7xf32> -> vector<8x7xf32>
    %c1_380 = arith.constant 1 : index
    %c0_381 = arith.constant 0 : index
    %c0_382 = arith.constant 0 : index
    %855 = vector.load %arg16[%c1_380, %c0_381, %c0_382] : memref<3x8x8xf32, #tpu.memory_space<vmem>>, vector<1x8x8xf32>
    %856 = vector.shape_cast %855 : vector<1x8x8xf32> to vector<8x8xf32>
    %cst_383 = arith.constant dense<0.000000e+00> : vector<8x7xf32>
    %857 = tpu.matmul %856, %854, %cst_383 {dimension_numbers = #tpu.dot_dimension_numbers<[1], [0], [0], [1], [0, 0, 1, 1], [], []>} : vector<8x8xf32>, vector<8x7xf32>, vector<8x7xf32> -> vector<8x7xf32>
    %858 = arith.addf %844, %857 : vector<8x7xf32>
    %859 = tpu.iota {dimensions = array<i32: 0>} : vector<7x7xi32>
    %860 = tpu.iota {dimensions = array<i32: 1>} : vector<7x7xi32>
    %c1_i32_384 = arith.constant 1 : i32
    %861 = vector.broadcast %c1_i32_384 : i32 to vector<7x7xi32>
    %862 = arith.muli %859, %861 : vector<7x7xi32>
    %c1_i32_385 = arith.constant 1 : i32
    %863 = vector.broadcast %c1_i32_385 : i32 to vector<7x7xi32>
    %864 = arith.addi %862, %863 : vector<7x7xi32>
    %865 = arith.cmpi eq, %860, %864 : vector<7x7xi32>
    %866 = arith.extui %865 : vector<7x7xi1> to vector<7x7xi32>
    %867 = arith.sitofp %866 : vector<7x7xi32> to vector<7x7xf32>
    %cst_386 = arith.constant dense<0.000000e+00> : vector<8x7xf32>
    %868 = tpu.matmul %783, %867, %cst_386 {dimension_numbers = #tpu.dot_dimension_numbers<[1], [0], [0], [1], [0, 0, 1, 1], [], []>} : vector<8x7xf32>, vector<7x7xf32>, vector<8x7xf32> -> vector<8x7xf32>
    %c2_387 = arith.constant 2 : index
    %c0_388 = arith.constant 0 : index
    %c0_389 = arith.constant 0 : index
    %869 = vector.load %arg16[%c2_387, %c0_388, %c0_389] : memref<3x8x8xf32, #tpu.memory_space<vmem>>, vector<1x8x8xf32>
    %870 = vector.shape_cast %869 : vector<1x8x8xf32> to vector<8x8xf32>
    %cst_390 = arith.constant dense<0.000000e+00> : vector<8x7xf32>
    %871 = tpu.matmul %870, %868, %cst_390 {dimension_numbers = #tpu.dot_dimension_numbers<[1], [0], [0], [1], [0, 0, 1, 1], [], []>} : vector<8x8xf32>, vector<8x7xf32>, vector<8x7xf32> -> vector<8x7xf32>
    %872 = arith.addf %858, %871 : vector<8x7xf32>
    %cst_391 = arith.constant dense<0.000000e+00> : vector<8xf32>
    %873 = vector.multi_reduction <add>, %829, %cst_391 [1] : vector<8x7xf32> to vector<8xf32>
    %874 = vector.shape_cast %873 : vector<8xf32> to vector<8x1xf32>
    %875 = arith.mulf %829, %829 : vector<8x7xf32>
    %cst_392 = arith.constant dense<0.000000e+00> : vector<8xf32>
    %876 = vector.multi_reduction <add>, %875, %cst_392 [1] : vector<8x7xf32> to vector<8xf32>
    %877 = vector.shape_cast %876 : vector<8xf32> to vector<8x1xf32>
    %cst_393 = arith.constant dense<0.000000e+00> : vector<8xf32>
    %878 = vector.multi_reduction <add>, %872, %cst_393 [1] : vector<8x7xf32> to vector<8xf32>
    %879 = vector.shape_cast %878 : vector<8xf32> to vector<8x1xf32>
    %880 = arith.addf %874, %879 : vector<8x1xf32>
    %881 = arith.mulf %872, %872 : vector<8x7xf32>
    %cst_394 = arith.constant dense<0.000000e+00> : vector<8xf32>
    %882 = vector.multi_reduction <add>, %881, %cst_394 [1] : vector<8x7xf32> to vector<8xf32>
    %883 = vector.shape_cast %882 : vector<8xf32> to vector<8x1xf32>
    %884 = arith.addf %877, %883 : vector<8x1xf32>
    %cst_395 = arith.constant 0.0714285746 : f32
    %885 = vector.broadcast %cst_395 : f32 to vector<8x1xf32>
    %886 = arith.mulf %880, %885 : vector<8x1xf32>
    %cst_396 = arith.constant 0.0714285746 : f32
    %887 = vector.broadcast %cst_396 : f32 to vector<8x1xf32>
    %888 = arith.mulf %884, %887 : vector<8x1xf32>
    %889 = arith.mulf %886, %886 : vector<8x1xf32>
    %890 = arith.subf %888, %889 : vector<8x1xf32>
    %cst_397 = arith.constant 0.000000e+00 : f32
    %891 = vector.broadcast %cst_397 : f32 to vector<8x1xf32>
    %892 = arith.maximumf %890, %891 : vector<8x1xf32>
    %cst_398 = arith.constant 9.99999974E-6 : f32
    %893 = vector.broadcast %cst_398 : f32 to vector<8x1xf32>
    %894 = arith.addf %892, %893 : vector<8x1xf32>
    %895 = math.rsqrt %894 : vector<8x1xf32>
    %896 = arith.mulf %785, %895 : vector<8x1xf32>
    %897 = arith.mulf %886, %896 : vector<8x1xf32>
    %898 = arith.subf %786, %897 : vector<8x1xf32>
    %899 = vector.broadcast %896 : vector<8x1xf32> to vector<8x7xf32>
    %900 = arith.mulf %829, %899 : vector<8x7xf32>
    %901 = vector.broadcast %898 : vector<8x1xf32> to vector<8x7xf32>
    %902 = arith.addf %900, %901 : vector<8x7xf32>
    %903 = vector.broadcast %896 : vector<8x1xf32> to vector<8x7xf32>
    %904 = arith.mulf %872, %903 : vector<8x7xf32>
    %905 = vector.broadcast %898 : vector<8x1xf32> to vector<8x7xf32>
    %906 = arith.addf %904, %905 : vector<8x7xf32>
    %cst_399 = arith.constant 0.000000e+00 : f32
    %907 = vector.broadcast %cst_399 : f32 to vector<8x7xf32>
    %908 = arith.maximumf %902, %907 : vector<8x7xf32>
    %cst_400 = arith.constant 0.000000e+00 : f32
    %909 = vector.broadcast %cst_400 : f32 to vector<8x7xf32>
    %910 = arith.maximumf %906, %909 : vector<8x7xf32>
    %c0_401 = arith.constant 0 : index
    %c0_402 = arith.constant 0 : index
    %911 = vector.load %arg19[%c0_401, %c0_402] : memref<8x2xf32, #tpu.memory_space<vmem>>, vector<8x2xf32>
    %912 = vector.extract_strided_slice %911 {offsets = [0, 0], sizes = [8, 1], strides = [1, 1]} : vector<8x2xf32> to vector<8x1xf32>
    %913 = vector.extract_strided_slice %911 {offsets = [0, 1], sizes = [8, 1], strides = [1, 1]} : vector<8x2xf32> to vector<8x1xf32>
    %cst_403 = arith.constant 0.000000e+00 : f32
    %914 = vector.broadcast %cst_403 : f32 to vector<8x7xf32>
    %915 = tpu.iota {dimensions = array<i32: 0>} : vector<7x7xi32>
    %916 = tpu.iota {dimensions = array<i32: 1>} : vector<7x7xi32>
    %c1_i32_404 = arith.constant 1 : i32
    %917 = vector.broadcast %c1_i32_404 : i32 to vector<7x7xi32>
    %918 = arith.muli %915, %917 : vector<7x7xi32>
    %c-1_i32_405 = arith.constant -1 : i32
    %919 = vector.broadcast %c-1_i32_405 : i32 to vector<7x7xi32>
    %920 = arith.addi %918, %919 : vector<7x7xi32>
    %921 = arith.cmpi eq, %916, %920 : vector<7x7xi32>
    %922 = arith.extui %921 : vector<7x7xi1> to vector<7x7xi32>
    %923 = arith.sitofp %922 : vector<7x7xi32> to vector<7x7xf32>
    %cst_406 = arith.constant dense<0.000000e+00> : vector<8x7xf32>
    %924 = tpu.matmul %908, %923, %cst_406 {dimension_numbers = #tpu.dot_dimension_numbers<[1], [0], [0], [1], [0, 0, 1, 1], [], []>} : vector<8x7xf32>, vector<7x7xf32>, vector<8x7xf32> -> vector<8x7xf32>
    %c0_407 = arith.constant 0 : index
    %c0_408 = arith.constant 0 : index
    %c0_409 = arith.constant 0 : index
    %925 = vector.load %arg18[%c0_407, %c0_408, %c0_409] : memref<3x8x8xf32, #tpu.memory_space<vmem>>, vector<1x8x8xf32>
    %926 = vector.shape_cast %925 : vector<1x8x8xf32> to vector<8x8xf32>
    %cst_410 = arith.constant dense<0.000000e+00> : vector<8x7xf32>
    %927 = tpu.matmul %926, %924, %cst_410 {dimension_numbers = #tpu.dot_dimension_numbers<[1], [0], [0], [1], [0, 0, 1, 1], [], []>} : vector<8x8xf32>, vector<8x7xf32>, vector<8x7xf32> -> vector<8x7xf32>
    %928 = arith.addf %914, %927 : vector<8x7xf32>
    %929 = tpu.iota {dimensions = array<i32: 0>} : vector<7x7xi32>
    %930 = tpu.iota {dimensions = array<i32: 1>} : vector<7x7xi32>
    %c1_i32_411 = arith.constant 1 : i32
    %931 = vector.broadcast %c1_i32_411 : i32 to vector<7x7xi32>
    %932 = arith.muli %929, %931 : vector<7x7xi32>
    %c0_i32_412 = arith.constant 0 : i32
    %933 = vector.broadcast %c0_i32_412 : i32 to vector<7x7xi32>
    %934 = arith.addi %932, %933 : vector<7x7xi32>
    %935 = arith.cmpi eq, %930, %934 : vector<7x7xi32>
    %936 = arith.extui %935 : vector<7x7xi1> to vector<7x7xi32>
    %937 = arith.sitofp %936 : vector<7x7xi32> to vector<7x7xf32>
    %cst_413 = arith.constant dense<0.000000e+00> : vector<8x7xf32>
    %938 = tpu.matmul %908, %937, %cst_413 {dimension_numbers = #tpu.dot_dimension_numbers<[1], [0], [0], [1], [0, 0, 1, 1], [], []>} : vector<8x7xf32>, vector<7x7xf32>, vector<8x7xf32> -> vector<8x7xf32>
    %c1_414 = arith.constant 1 : index
    %c0_415 = arith.constant 0 : index
    %c0_416 = arith.constant 0 : index
    %939 = vector.load %arg18[%c1_414, %c0_415, %c0_416] : memref<3x8x8xf32, #tpu.memory_space<vmem>>, vector<1x8x8xf32>
    %940 = vector.shape_cast %939 : vector<1x8x8xf32> to vector<8x8xf32>
    %cst_417 = arith.constant dense<0.000000e+00> : vector<8x7xf32>
    %941 = tpu.matmul %940, %938, %cst_417 {dimension_numbers = #tpu.dot_dimension_numbers<[1], [0], [0], [1], [0, 0, 1, 1], [], []>} : vector<8x8xf32>, vector<8x7xf32>, vector<8x7xf32> -> vector<8x7xf32>
    %942 = arith.addf %928, %941 : vector<8x7xf32>
    %943 = tpu.iota {dimensions = array<i32: 0>} : vector<7x7xi32>
    %944 = tpu.iota {dimensions = array<i32: 1>} : vector<7x7xi32>
    %c1_i32_418 = arith.constant 1 : i32
    %945 = vector.broadcast %c1_i32_418 : i32 to vector<7x7xi32>
    %946 = arith.muli %943, %945 : vector<7x7xi32>
    %c1_i32_419 = arith.constant 1 : i32
    %947 = vector.broadcast %c1_i32_419 : i32 to vector<7x7xi32>
    %948 = arith.addi %946, %947 : vector<7x7xi32>
    %949 = arith.cmpi eq, %944, %948 : vector<7x7xi32>
    %950 = arith.extui %949 : vector<7x7xi1> to vector<7x7xi32>
    %951 = arith.sitofp %950 : vector<7x7xi32> to vector<7x7xf32>
    %cst_420 = arith.constant dense<0.000000e+00> : vector<8x7xf32>
    %952 = tpu.matmul %908, %951, %cst_420 {dimension_numbers = #tpu.dot_dimension_numbers<[1], [0], [0], [1], [0, 0, 1, 1], [], []>} : vector<8x7xf32>, vector<7x7xf32>, vector<8x7xf32> -> vector<8x7xf32>
    %c2_421 = arith.constant 2 : index
    %c0_422 = arith.constant 0 : index
    %c0_423 = arith.constant 0 : index
    %953 = vector.load %arg18[%c2_421, %c0_422, %c0_423] : memref<3x8x8xf32, #tpu.memory_space<vmem>>, vector<1x8x8xf32>
    %954 = vector.shape_cast %953 : vector<1x8x8xf32> to vector<8x8xf32>
    %cst_424 = arith.constant dense<0.000000e+00> : vector<8x7xf32>
    %955 = tpu.matmul %954, %952, %cst_424 {dimension_numbers = #tpu.dot_dimension_numbers<[1], [0], [0], [1], [0, 0, 1, 1], [], []>} : vector<8x8xf32>, vector<8x7xf32>, vector<8x7xf32> -> vector<8x7xf32>
    %956 = arith.addf %942, %955 : vector<8x7xf32>
    %cst_425 = arith.constant 0.000000e+00 : f32
    %957 = vector.broadcast %cst_425 : f32 to vector<8x7xf32>
    %958 = tpu.iota {dimensions = array<i32: 0>} : vector<7x7xi32>
    %959 = tpu.iota {dimensions = array<i32: 1>} : vector<7x7xi32>
    %c1_i32_426 = arith.constant 1 : i32
    %960 = vector.broadcast %c1_i32_426 : i32 to vector<7x7xi32>
    %961 = arith.muli %958, %960 : vector<7x7xi32>
    %c-1_i32_427 = arith.constant -1 : i32
    %962 = vector.broadcast %c-1_i32_427 : i32 to vector<7x7xi32>
    %963 = arith.addi %961, %962 : vector<7x7xi32>
    %964 = arith.cmpi eq, %959, %963 : vector<7x7xi32>
    %965 = arith.extui %964 : vector<7x7xi1> to vector<7x7xi32>
    %966 = arith.sitofp %965 : vector<7x7xi32> to vector<7x7xf32>
    %cst_428 = arith.constant dense<0.000000e+00> : vector<8x7xf32>
    %967 = tpu.matmul %910, %966, %cst_428 {dimension_numbers = #tpu.dot_dimension_numbers<[1], [0], [0], [1], [0, 0, 1, 1], [], []>} : vector<8x7xf32>, vector<7x7xf32>, vector<8x7xf32> -> vector<8x7xf32>
    %c0_429 = arith.constant 0 : index
    %c0_430 = arith.constant 0 : index
    %c0_431 = arith.constant 0 : index
    %968 = vector.load %arg18[%c0_429, %c0_430, %c0_431] : memref<3x8x8xf32, #tpu.memory_space<vmem>>, vector<1x8x8xf32>
    %969 = vector.shape_cast %968 : vector<1x8x8xf32> to vector<8x8xf32>
    %cst_432 = arith.constant dense<0.000000e+00> : vector<8x7xf32>
    %970 = tpu.matmul %969, %967, %cst_432 {dimension_numbers = #tpu.dot_dimension_numbers<[1], [0], [0], [1], [0, 0, 1, 1], [], []>} : vector<8x8xf32>, vector<8x7xf32>, vector<8x7xf32> -> vector<8x7xf32>
    %971 = arith.addf %957, %970 : vector<8x7xf32>
    %972 = tpu.iota {dimensions = array<i32: 0>} : vector<7x7xi32>
    %973 = tpu.iota {dimensions = array<i32: 1>} : vector<7x7xi32>
    %c1_i32_433 = arith.constant 1 : i32
    %974 = vector.broadcast %c1_i32_433 : i32 to vector<7x7xi32>
    %975 = arith.muli %972, %974 : vector<7x7xi32>
    %c0_i32_434 = arith.constant 0 : i32
    %976 = vector.broadcast %c0_i32_434 : i32 to vector<7x7xi32>
    %977 = arith.addi %975, %976 : vector<7x7xi32>
    %978 = arith.cmpi eq, %973, %977 : vector<7x7xi32>
    %979 = arith.extui %978 : vector<7x7xi1> to vector<7x7xi32>
    %980 = arith.sitofp %979 : vector<7x7xi32> to vector<7x7xf32>
    %cst_435 = arith.constant dense<0.000000e+00> : vector<8x7xf32>
    %981 = tpu.matmul %910, %980, %cst_435 {dimension_numbers = #tpu.dot_dimension_numbers<[1], [0], [0], [1], [0, 0, 1, 1], [], []>} : vector<8x7xf32>, vector<7x7xf32>, vector<8x7xf32> -> vector<8x7xf32>
    %c1_436 = arith.constant 1 : index
    %c0_437 = arith.constant 0 : index
    %c0_438 = arith.constant 0 : index
    %982 = vector.load %arg18[%c1_436, %c0_437, %c0_438] : memref<3x8x8xf32, #tpu.memory_space<vmem>>, vector<1x8x8xf32>
    %983 = vector.shape_cast %982 : vector<1x8x8xf32> to vector<8x8xf32>
    %cst_439 = arith.constant dense<0.000000e+00> : vector<8x7xf32>
    %984 = tpu.matmul %983, %981, %cst_439 {dimension_numbers = #tpu.dot_dimension_numbers<[1], [0], [0], [1], [0, 0, 1, 1], [], []>} : vector<8x8xf32>, vector<8x7xf32>, vector<8x7xf32> -> vector<8x7xf32>
    %985 = arith.addf %971, %984 : vector<8x7xf32>
    %986 = tpu.iota {dimensions = array<i32: 0>} : vector<7x7xi32>
    %987 = tpu.iota {dimensions = array<i32: 1>} : vector<7x7xi32>
    %c1_i32_440 = arith.constant 1 : i32
    %988 = vector.broadcast %c1_i32_440 : i32 to vector<7x7xi32>
    %989 = arith.muli %986, %988 : vector<7x7xi32>
    %c1_i32_441 = arith.constant 1 : i32
    %990 = vector.broadcast %c1_i32_441 : i32 to vector<7x7xi32>
    %991 = arith.addi %989, %990 : vector<7x7xi32>
    %992 = arith.cmpi eq, %987, %991 : vector<7x7xi32>
    %993 = arith.extui %992 : vector<7x7xi1> to vector<7x7xi32>
    %994 = arith.sitofp %993 : vector<7x7xi32> to vector<7x7xf32>
    %cst_442 = arith.constant dense<0.000000e+00> : vector<8x7xf32>
    %995 = tpu.matmul %910, %994, %cst_442 {dimension_numbers = #tpu.dot_dimension_numbers<[1], [0], [0], [1], [0, 0, 1, 1], [], []>} : vector<8x7xf32>, vector<7x7xf32>, vector<8x7xf32> -> vector<8x7xf32>
    %c2_443 = arith.constant 2 : index
    %c0_444 = arith.constant 0 : index
    %c0_445 = arith.constant 0 : index
    %996 = vector.load %arg18[%c2_443, %c0_444, %c0_445] : memref<3x8x8xf32, #tpu.memory_space<vmem>>, vector<1x8x8xf32>
    %997 = vector.shape_cast %996 : vector<1x8x8xf32> to vector<8x8xf32>
    %cst_446 = arith.constant dense<0.000000e+00> : vector<8x7xf32>
    %998 = tpu.matmul %997, %995, %cst_446 {dimension_numbers = #tpu.dot_dimension_numbers<[1], [0], [0], [1], [0, 0, 1, 1], [], []>} : vector<8x8xf32>, vector<8x7xf32>, vector<8x7xf32> -> vector<8x7xf32>
    %999 = arith.addf %985, %998 : vector<8x7xf32>
    %cst_447 = arith.constant dense<0.000000e+00> : vector<8xf32>
    %1000 = vector.multi_reduction <add>, %956, %cst_447 [1] : vector<8x7xf32> to vector<8xf32>
    %1001 = vector.shape_cast %1000 : vector<8xf32> to vector<8x1xf32>
    %1002 = arith.mulf %956, %956 : vector<8x7xf32>
    %cst_448 = arith.constant dense<0.000000e+00> : vector<8xf32>
    %1003 = vector.multi_reduction <add>, %1002, %cst_448 [1] : vector<8x7xf32> to vector<8xf32>
    %1004 = vector.shape_cast %1003 : vector<8xf32> to vector<8x1xf32>
    %cst_449 = arith.constant dense<0.000000e+00> : vector<8xf32>
    %1005 = vector.multi_reduction <add>, %999, %cst_449 [1] : vector<8x7xf32> to vector<8xf32>
    %1006 = vector.shape_cast %1005 : vector<8xf32> to vector<8x1xf32>
    %1007 = arith.addf %1001, %1006 : vector<8x1xf32>
    %1008 = arith.mulf %999, %999 : vector<8x7xf32>
    %cst_450 = arith.constant dense<0.000000e+00> : vector<8xf32>
    %1009 = vector.multi_reduction <add>, %1008, %cst_450 [1] : vector<8x7xf32> to vector<8xf32>
    %1010 = vector.shape_cast %1009 : vector<8xf32> to vector<8x1xf32>
    %1011 = arith.addf %1004, %1010 : vector<8x1xf32>
    %cst_451 = arith.constant 0.0714285746 : f32
    %1012 = vector.broadcast %cst_451 : f32 to vector<8x1xf32>
    %1013 = arith.mulf %1007, %1012 : vector<8x1xf32>
    %cst_452 = arith.constant 0.0714285746 : f32
    %1014 = vector.broadcast %cst_452 : f32 to vector<8x1xf32>
    %1015 = arith.mulf %1011, %1014 : vector<8x1xf32>
    %1016 = arith.mulf %1013, %1013 : vector<8x1xf32>
    %1017 = arith.subf %1015, %1016 : vector<8x1xf32>
    %cst_453 = arith.constant 0.000000e+00 : f32
    %1018 = vector.broadcast %cst_453 : f32 to vector<8x1xf32>
    %1019 = arith.maximumf %1017, %1018 : vector<8x1xf32>
    %cst_454 = arith.constant 9.99999974E-6 : f32
    %1020 = vector.broadcast %cst_454 : f32 to vector<8x1xf32>
    %1021 = arith.addf %1019, %1020 : vector<8x1xf32>
    %1022 = math.rsqrt %1021 : vector<8x1xf32>
    %1023 = arith.mulf %912, %1022 : vector<8x1xf32>
    %1024 = arith.mulf %1013, %1023 : vector<8x1xf32>
    %1025 = arith.subf %913, %1024 : vector<8x1xf32>
    %1026 = vector.broadcast %1023 : vector<8x1xf32> to vector<8x7xf32>
    %1027 = arith.mulf %956, %1026 : vector<8x7xf32>
    %1028 = vector.broadcast %1025 : vector<8x1xf32> to vector<8x7xf32>
    %1029 = arith.addf %1027, %1028 : vector<8x7xf32>
    %1030 = vector.broadcast %1023 : vector<8x1xf32> to vector<8x7xf32>
    %1031 = arith.mulf %999, %1030 : vector<8x7xf32>
    %1032 = vector.broadcast %1025 : vector<8x1xf32> to vector<8x7xf32>
    %1033 = arith.addf %1031, %1032 : vector<8x7xf32>
    %cst_455 = arith.constant 0.000000e+00 : f32
    %1034 = vector.broadcast %cst_455 : f32 to vector<8x7xf32>
    %1035 = arith.maximumf %1029, %1034 : vector<8x7xf32>
    %cst_456 = arith.constant 0.000000e+00 : f32
    %1036 = vector.broadcast %cst_456 : f32 to vector<8x7xf32>
    %1037 = arith.maximumf %1033, %1036 : vector<8x7xf32>
    %c0_457 = arith.constant 0 : index
    %c0_458 = arith.constant 0 : index
    %1038 = vector.load %arg21[%c0_457, %c0_458] : memref<8x2xf32, #tpu.memory_space<vmem>>, vector<8x2xf32>
    %1039 = vector.extract_strided_slice %1038 {offsets = [0, 0], sizes = [8, 1], strides = [1, 1]} : vector<8x2xf32> to vector<8x1xf32>
    %1040 = vector.extract_strided_slice %1038 {offsets = [0, 1], sizes = [8, 1], strides = [1, 1]} : vector<8x2xf32> to vector<8x1xf32>
    %cst_459 = arith.constant 0.000000e+00 : f32
    %1041 = vector.broadcast %cst_459 : f32 to vector<8x14xf32>
    %1042 = tpu.iota {dimensions = array<i32: 0>} : vector<7x14xi32>
    %1043 = tpu.iota {dimensions = array<i32: 1>} : vector<7x14xi32>
    %c2_i32_460 = arith.constant 2 : i32
    %1044 = vector.broadcast %c2_i32_460 : i32 to vector<7x14xi32>
    %1045 = arith.muli %1042, %1044 : vector<7x14xi32>
    %c-1_i32_461 = arith.constant -1 : i32
    %1046 = vector.broadcast %c-1_i32_461 : i32 to vector<7x14xi32>
    %1047 = arith.addi %1045, %1046 : vector<7x14xi32>
    %1048 = arith.cmpi eq, %1043, %1047 : vector<7x14xi32>
    %1049 = arith.extui %1048 : vector<7x14xi1> to vector<7x14xi32>
    %1050 = arith.sitofp %1049 : vector<7x14xi32> to vector<7x14xf32>
    %cst_462 = arith.constant dense<0.000000e+00> : vector<8x14xf32>
    %1051 = tpu.matmul %1035, %1050, %cst_462 {dimension_numbers = #tpu.dot_dimension_numbers<[1], [0], [0], [1], [0, 0, 1, 1], [], []>} : vector<8x7xf32>, vector<7x14xf32>, vector<8x14xf32> -> vector<8x14xf32>
    %c0_463 = arith.constant 0 : index
    %c0_464 = arith.constant 0 : index
    %c0_465 = arith.constant 0 : index
    %1052 = vector.load %arg20[%c0_463, %c0_464, %c0_465] : memref<4x8x8xf32, #tpu.memory_space<vmem>>, vector<1x8x8xf32>
    %1053 = vector.shape_cast %1052 : vector<1x8x8xf32> to vector<8x8xf32>
    %cst_466 = arith.constant dense<0.000000e+00> : vector<8x14xf32>
    %1054 = tpu.matmul %1053, %1051, %cst_466 {dimension_numbers = #tpu.dot_dimension_numbers<[1], [0], [0], [1], [0, 0, 1, 1], [], []>} : vector<8x8xf32>, vector<8x14xf32>, vector<8x14xf32> -> vector<8x14xf32>
    %1055 = arith.addf %1041, %1054 : vector<8x14xf32>
    %1056 = tpu.iota {dimensions = array<i32: 0>} : vector<7x14xi32>
    %1057 = tpu.iota {dimensions = array<i32: 1>} : vector<7x14xi32>
    %c2_i32_467 = arith.constant 2 : i32
    %1058 = vector.broadcast %c2_i32_467 : i32 to vector<7x14xi32>
    %1059 = arith.muli %1056, %1058 : vector<7x14xi32>
    %c0_i32_468 = arith.constant 0 : i32
    %1060 = vector.broadcast %c0_i32_468 : i32 to vector<7x14xi32>
    %1061 = arith.addi %1059, %1060 : vector<7x14xi32>
    %1062 = arith.cmpi eq, %1057, %1061 : vector<7x14xi32>
    %1063 = arith.extui %1062 : vector<7x14xi1> to vector<7x14xi32>
    %1064 = arith.sitofp %1063 : vector<7x14xi32> to vector<7x14xf32>
    %cst_469 = arith.constant dense<0.000000e+00> : vector<8x14xf32>
    %1065 = tpu.matmul %1035, %1064, %cst_469 {dimension_numbers = #tpu.dot_dimension_numbers<[1], [0], [0], [1], [0, 0, 1, 1], [], []>} : vector<8x7xf32>, vector<7x14xf32>, vector<8x14xf32> -> vector<8x14xf32>
    %c1_470 = arith.constant 1 : index
    %c0_471 = arith.constant 0 : index
    %c0_472 = arith.constant 0 : index
    %1066 = vector.load %arg20[%c1_470, %c0_471, %c0_472] : memref<4x8x8xf32, #tpu.memory_space<vmem>>, vector<1x8x8xf32>
    %1067 = vector.shape_cast %1066 : vector<1x8x8xf32> to vector<8x8xf32>
    %cst_473 = arith.constant dense<0.000000e+00> : vector<8x14xf32>
    %1068 = tpu.matmul %1067, %1065, %cst_473 {dimension_numbers = #tpu.dot_dimension_numbers<[1], [0], [0], [1], [0, 0, 1, 1], [], []>} : vector<8x8xf32>, vector<8x14xf32>, vector<8x14xf32> -> vector<8x14xf32>
    %1069 = arith.addf %1055, %1068 : vector<8x14xf32>
    %1070 = tpu.iota {dimensions = array<i32: 0>} : vector<7x14xi32>
    %1071 = tpu.iota {dimensions = array<i32: 1>} : vector<7x14xi32>
    %c2_i32_474 = arith.constant 2 : i32
    %1072 = vector.broadcast %c2_i32_474 : i32 to vector<7x14xi32>
    %1073 = arith.muli %1070, %1072 : vector<7x14xi32>
    %c1_i32_475 = arith.constant 1 : i32
    %1074 = vector.broadcast %c1_i32_475 : i32 to vector<7x14xi32>
    %1075 = arith.addi %1073, %1074 : vector<7x14xi32>
    %1076 = arith.cmpi eq, %1071, %1075 : vector<7x14xi32>
    %1077 = arith.extui %1076 : vector<7x14xi1> to vector<7x14xi32>
    %1078 = arith.sitofp %1077 : vector<7x14xi32> to vector<7x14xf32>
    %cst_476 = arith.constant dense<0.000000e+00> : vector<8x14xf32>
    %1079 = tpu.matmul %1035, %1078, %cst_476 {dimension_numbers = #tpu.dot_dimension_numbers<[1], [0], [0], [1], [0, 0, 1, 1], [], []>} : vector<8x7xf32>, vector<7x14xf32>, vector<8x14xf32> -> vector<8x14xf32>
    %c2_477 = arith.constant 2 : index
    %c0_478 = arith.constant 0 : index
    %c0_479 = arith.constant 0 : index
    %1080 = vector.load %arg20[%c2_477, %c0_478, %c0_479] : memref<4x8x8xf32, #tpu.memory_space<vmem>>, vector<1x8x8xf32>
    %1081 = vector.shape_cast %1080 : vector<1x8x8xf32> to vector<8x8xf32>
    %cst_480 = arith.constant dense<0.000000e+00> : vector<8x14xf32>
    %1082 = tpu.matmul %1081, %1079, %cst_480 {dimension_numbers = #tpu.dot_dimension_numbers<[1], [0], [0], [1], [0, 0, 1, 1], [], []>} : vector<8x8xf32>, vector<8x14xf32>, vector<8x14xf32> -> vector<8x14xf32>
    %1083 = arith.addf %1069, %1082 : vector<8x14xf32>
    %1084 = tpu.iota {dimensions = array<i32: 0>} : vector<7x14xi32>
    %1085 = tpu.iota {dimensions = array<i32: 1>} : vector<7x14xi32>
    %c2_i32_481 = arith.constant 2 : i32
    %1086 = vector.broadcast %c2_i32_481 : i32 to vector<7x14xi32>
    %1087 = arith.muli %1084, %1086 : vector<7x14xi32>
    %c2_i32_482 = arith.constant 2 : i32
    %1088 = vector.broadcast %c2_i32_482 : i32 to vector<7x14xi32>
    %1089 = arith.addi %1087, %1088 : vector<7x14xi32>
    %1090 = arith.cmpi eq, %1085, %1089 : vector<7x14xi32>
    %1091 = arith.extui %1090 : vector<7x14xi1> to vector<7x14xi32>
    %1092 = arith.sitofp %1091 : vector<7x14xi32> to vector<7x14xf32>
    %cst_483 = arith.constant dense<0.000000e+00> : vector<8x14xf32>
    %1093 = tpu.matmul %1035, %1092, %cst_483 {dimension_numbers = #tpu.dot_dimension_numbers<[1], [0], [0], [1], [0, 0, 1, 1], [], []>} : vector<8x7xf32>, vector<7x14xf32>, vector<8x14xf32> -> vector<8x14xf32>
    %c3_484 = arith.constant 3 : index
    %c0_485 = arith.constant 0 : index
    %c0_486 = arith.constant 0 : index
    %1094 = vector.load %arg20[%c3_484, %c0_485, %c0_486] : memref<4x8x8xf32, #tpu.memory_space<vmem>>, vector<1x8x8xf32>
    %1095 = vector.shape_cast %1094 : vector<1x8x8xf32> to vector<8x8xf32>
    %cst_487 = arith.constant dense<0.000000e+00> : vector<8x14xf32>
    %1096 = tpu.matmul %1095, %1093, %cst_487 {dimension_numbers = #tpu.dot_dimension_numbers<[1], [0], [0], [1], [0, 0, 1, 1], [], []>} : vector<8x8xf32>, vector<8x14xf32>, vector<8x14xf32> -> vector<8x14xf32>
    %1097 = arith.addf %1083, %1096 : vector<8x14xf32>
    %cst_488 = arith.constant 0.000000e+00 : f32
    %1098 = vector.broadcast %cst_488 : f32 to vector<8x14xf32>
    %1099 = tpu.iota {dimensions = array<i32: 0>} : vector<7x14xi32>
    %1100 = tpu.iota {dimensions = array<i32: 1>} : vector<7x14xi32>
    %c2_i32_489 = arith.constant 2 : i32
    %1101 = vector.broadcast %c2_i32_489 : i32 to vector<7x14xi32>
    %1102 = arith.muli %1099, %1101 : vector<7x14xi32>
    %c-1_i32_490 = arith.constant -1 : i32
    %1103 = vector.broadcast %c-1_i32_490 : i32 to vector<7x14xi32>
    %1104 = arith.addi %1102, %1103 : vector<7x14xi32>
    %1105 = arith.cmpi eq, %1100, %1104 : vector<7x14xi32>
    %1106 = arith.extui %1105 : vector<7x14xi1> to vector<7x14xi32>
    %1107 = arith.sitofp %1106 : vector<7x14xi32> to vector<7x14xf32>
    %cst_491 = arith.constant dense<0.000000e+00> : vector<8x14xf32>
    %1108 = tpu.matmul %1037, %1107, %cst_491 {dimension_numbers = #tpu.dot_dimension_numbers<[1], [0], [0], [1], [0, 0, 1, 1], [], []>} : vector<8x7xf32>, vector<7x14xf32>, vector<8x14xf32> -> vector<8x14xf32>
    %c0_492 = arith.constant 0 : index
    %c0_493 = arith.constant 0 : index
    %c0_494 = arith.constant 0 : index
    %1109 = vector.load %arg20[%c0_492, %c0_493, %c0_494] : memref<4x8x8xf32, #tpu.memory_space<vmem>>, vector<1x8x8xf32>
    %1110 = vector.shape_cast %1109 : vector<1x8x8xf32> to vector<8x8xf32>
    %cst_495 = arith.constant dense<0.000000e+00> : vector<8x14xf32>
    %1111 = tpu.matmul %1110, %1108, %cst_495 {dimension_numbers = #tpu.dot_dimension_numbers<[1], [0], [0], [1], [0, 0, 1, 1], [], []>} : vector<8x8xf32>, vector<8x14xf32>, vector<8x14xf32> -> vector<8x14xf32>
    %1112 = arith.addf %1098, %1111 : vector<8x14xf32>
    %1113 = tpu.iota {dimensions = array<i32: 0>} : vector<7x14xi32>
    %1114 = tpu.iota {dimensions = array<i32: 1>} : vector<7x14xi32>
    %c2_i32_496 = arith.constant 2 : i32
    %1115 = vector.broadcast %c2_i32_496 : i32 to vector<7x14xi32>
    %1116 = arith.muli %1113, %1115 : vector<7x14xi32>
    %c0_i32_497 = arith.constant 0 : i32
    %1117 = vector.broadcast %c0_i32_497 : i32 to vector<7x14xi32>
    %1118 = arith.addi %1116, %1117 : vector<7x14xi32>
    %1119 = arith.cmpi eq, %1114, %1118 : vector<7x14xi32>
    %1120 = arith.extui %1119 : vector<7x14xi1> to vector<7x14xi32>
    %1121 = arith.sitofp %1120 : vector<7x14xi32> to vector<7x14xf32>
    %cst_498 = arith.constant dense<0.000000e+00> : vector<8x14xf32>
    %1122 = tpu.matmul %1037, %1121, %cst_498 {dimension_numbers = #tpu.dot_dimension_numbers<[1], [0], [0], [1], [0, 0, 1, 1], [], []>} : vector<8x7xf32>, vector<7x14xf32>, vector<8x14xf32> -> vector<8x14xf32>
    %c1_499 = arith.constant 1 : index
    %c0_500 = arith.constant 0 : index
    %c0_501 = arith.constant 0 : index
    %1123 = vector.load %arg20[%c1_499, %c0_500, %c0_501] : memref<4x8x8xf32, #tpu.memory_space<vmem>>, vector<1x8x8xf32>
    %1124 = vector.shape_cast %1123 : vector<1x8x8xf32> to vector<8x8xf32>
    %cst_502 = arith.constant dense<0.000000e+00> : vector<8x14xf32>
    %1125 = tpu.matmul %1124, %1122, %cst_502 {dimension_numbers = #tpu.dot_dimension_numbers<[1], [0], [0], [1], [0, 0, 1, 1], [], []>} : vector<8x8xf32>, vector<8x14xf32>, vector<8x14xf32> -> vector<8x14xf32>
    %1126 = arith.addf %1112, %1125 : vector<8x14xf32>
    %1127 = tpu.iota {dimensions = array<i32: 0>} : vector<7x14xi32>
    %1128 = tpu.iota {dimensions = array<i32: 1>} : vector<7x14xi32>
    %c2_i32_503 = arith.constant 2 : i32
    %1129 = vector.broadcast %c2_i32_503 : i32 to vector<7x14xi32>
    %1130 = arith.muli %1127, %1129 : vector<7x14xi32>
    %c1_i32_504 = arith.constant 1 : i32
    %1131 = vector.broadcast %c1_i32_504 : i32 to vector<7x14xi32>
    %1132 = arith.addi %1130, %1131 : vector<7x14xi32>
    %1133 = arith.cmpi eq, %1128, %1132 : vector<7x14xi32>
    %1134 = arith.extui %1133 : vector<7x14xi1> to vector<7x14xi32>
    %1135 = arith.sitofp %1134 : vector<7x14xi32> to vector<7x14xf32>
    %cst_505 = arith.constant dense<0.000000e+00> : vector<8x14xf32>
    %1136 = tpu.matmul %1037, %1135, %cst_505 {dimension_numbers = #tpu.dot_dimension_numbers<[1], [0], [0], [1], [0, 0, 1, 1], [], []>} : vector<8x7xf32>, vector<7x14xf32>, vector<8x14xf32> -> vector<8x14xf32>
    %c2_506 = arith.constant 2 : index
    %c0_507 = arith.constant 0 : index
    %c0_508 = arith.constant 0 : index
    %1137 = vector.load %arg20[%c2_506, %c0_507, %c0_508] : memref<4x8x8xf32, #tpu.memory_space<vmem>>, vector<1x8x8xf32>
    %1138 = vector.shape_cast %1137 : vector<1x8x8xf32> to vector<8x8xf32>
    %cst_509 = arith.constant dense<0.000000e+00> : vector<8x14xf32>
    %1139 = tpu.matmul %1138, %1136, %cst_509 {dimension_numbers = #tpu.dot_dimension_numbers<[1], [0], [0], [1], [0, 0, 1, 1], [], []>} : vector<8x8xf32>, vector<8x14xf32>, vector<8x14xf32> -> vector<8x14xf32>
    %1140 = arith.addf %1126, %1139 : vector<8x14xf32>
    %1141 = tpu.iota {dimensions = array<i32: 0>} : vector<7x14xi32>
    %1142 = tpu.iota {dimensions = array<i32: 1>} : vector<7x14xi32>
    %c2_i32_510 = arith.constant 2 : i32
    %1143 = vector.broadcast %c2_i32_510 : i32 to vector<7x14xi32>
    %1144 = arith.muli %1141, %1143 : vector<7x14xi32>
    %c2_i32_511 = arith.constant 2 : i32
    %1145 = vector.broadcast %c2_i32_511 : i32 to vector<7x14xi32>
    %1146 = arith.addi %1144, %1145 : vector<7x14xi32>
    %1147 = arith.cmpi eq, %1142, %1146 : vector<7x14xi32>
    %1148 = arith.extui %1147 : vector<7x14xi1> to vector<7x14xi32>
    %1149 = arith.sitofp %1148 : vector<7x14xi32> to vector<7x14xf32>
    %cst_512 = arith.constant dense<0.000000e+00> : vector<8x14xf32>
    %1150 = tpu.matmul %1037, %1149, %cst_512 {dimension_numbers = #tpu.dot_dimension_numbers<[1], [0], [0], [1], [0, 0, 1, 1], [], []>} : vector<8x7xf32>, vector<7x14xf32>, vector<8x14xf32> -> vector<8x14xf32>
    %c3_513 = arith.constant 3 : index
    %c0_514 = arith.constant 0 : index
    %c0_515 = arith.constant 0 : index
    %1151 = vector.load %arg20[%c3_513, %c0_514, %c0_515] : memref<4x8x8xf32, #tpu.memory_space<vmem>>, vector<1x8x8xf32>
    %1152 = vector.shape_cast %1151 : vector<1x8x8xf32> to vector<8x8xf32>
    %cst_516 = arith.constant dense<0.000000e+00> : vector<8x14xf32>
    %1153 = tpu.matmul %1152, %1150, %cst_516 {dimension_numbers = #tpu.dot_dimension_numbers<[1], [0], [0], [1], [0, 0, 1, 1], [], []>} : vector<8x8xf32>, vector<8x14xf32>, vector<8x14xf32> -> vector<8x14xf32>
    %1154 = arith.addf %1140, %1153 : vector<8x14xf32>
    %cst_517 = arith.constant dense<0.000000e+00> : vector<8xf32>
    %1155 = vector.multi_reduction <add>, %1097, %cst_517 [1] : vector<8x14xf32> to vector<8xf32>
    %1156 = vector.shape_cast %1155 : vector<8xf32> to vector<8x1xf32>
    %1157 = arith.mulf %1097, %1097 : vector<8x14xf32>
    %cst_518 = arith.constant dense<0.000000e+00> : vector<8xf32>
    %1158 = vector.multi_reduction <add>, %1157, %cst_518 [1] : vector<8x14xf32> to vector<8xf32>
    %1159 = vector.shape_cast %1158 : vector<8xf32> to vector<8x1xf32>
    %cst_519 = arith.constant dense<0.000000e+00> : vector<8xf32>
    %1160 = vector.multi_reduction <add>, %1154, %cst_519 [1] : vector<8x14xf32> to vector<8xf32>
    %1161 = vector.shape_cast %1160 : vector<8xf32> to vector<8x1xf32>
    %1162 = arith.addf %1156, %1161 : vector<8x1xf32>
    %1163 = arith.mulf %1154, %1154 : vector<8x14xf32>
    %cst_520 = arith.constant dense<0.000000e+00> : vector<8xf32>
    %1164 = vector.multi_reduction <add>, %1163, %cst_520 [1] : vector<8x14xf32> to vector<8xf32>
    %1165 = vector.shape_cast %1164 : vector<8xf32> to vector<8x1xf32>
    %1166 = arith.addf %1159, %1165 : vector<8x1xf32>
    %cst_521 = arith.constant 0.0357142873 : f32
    %1167 = vector.broadcast %cst_521 : f32 to vector<8x1xf32>
    %1168 = arith.mulf %1162, %1167 : vector<8x1xf32>
    %cst_522 = arith.constant 0.0357142873 : f32
    %1169 = vector.broadcast %cst_522 : f32 to vector<8x1xf32>
    %1170 = arith.mulf %1166, %1169 : vector<8x1xf32>
    %1171 = arith.mulf %1168, %1168 : vector<8x1xf32>
    %1172 = arith.subf %1170, %1171 : vector<8x1xf32>
    %cst_523 = arith.constant 0.000000e+00 : f32
    %1173 = vector.broadcast %cst_523 : f32 to vector<8x1xf32>
    %1174 = arith.maximumf %1172, %1173 : vector<8x1xf32>
    %cst_524 = arith.constant 9.99999974E-6 : f32
    %1175 = vector.broadcast %cst_524 : f32 to vector<8x1xf32>
    %1176 = arith.addf %1174, %1175 : vector<8x1xf32>
    %1177 = math.rsqrt %1176 : vector<8x1xf32>
    %1178 = arith.mulf %1039, %1177 : vector<8x1xf32>
    %1179 = arith.mulf %1168, %1178 : vector<8x1xf32>
    %1180 = arith.subf %1040, %1179 : vector<8x1xf32>
    %1181 = vector.broadcast %1178 : vector<8x1xf32> to vector<8x14xf32>
    %1182 = arith.mulf %1097, %1181 : vector<8x14xf32>
    %1183 = vector.broadcast %1180 : vector<8x1xf32> to vector<8x14xf32>
    %1184 = arith.addf %1182, %1183 : vector<8x14xf32>
    %1185 = vector.broadcast %1178 : vector<8x1xf32> to vector<8x14xf32>
    %1186 = arith.mulf %1154, %1185 : vector<8x14xf32>
    %1187 = vector.broadcast %1180 : vector<8x1xf32> to vector<8x14xf32>
    %1188 = arith.addf %1186, %1187 : vector<8x14xf32>
    %cst_525 = arith.constant 0.000000e+00 : f32
    %1189 = vector.broadcast %cst_525 : f32 to vector<8x14xf32>
    %1190 = arith.maximumf %1184, %1189 : vector<8x14xf32>
    %cst_526 = arith.constant 0.000000e+00 : f32
    %1191 = vector.broadcast %cst_526 : f32 to vector<8x14xf32>
    %1192 = arith.maximumf %1188, %1191 : vector<8x14xf32>
    %c0_527 = arith.constant 0 : index
    %c0_528 = arith.constant 0 : index
    %1193 = vector.load %arg23[%c0_527, %c0_528] : memref<8x2xf32, #tpu.memory_space<vmem>>, vector<8x2xf32>
    %1194 = vector.extract_strided_slice %1193 {offsets = [0, 0], sizes = [8, 1], strides = [1, 1]} : vector<8x2xf32> to vector<8x1xf32>
    %1195 = vector.extract_strided_slice %1193 {offsets = [0, 1], sizes = [8, 1], strides = [1, 1]} : vector<8x2xf32> to vector<8x1xf32>
    %cst_529 = arith.constant 0.000000e+00 : f32
    %1196 = vector.broadcast %cst_529 : f32 to vector<8x14xf32>
    %1197 = tpu.iota {dimensions = array<i32: 0>} : vector<14x14xi32>
    %1198 = tpu.iota {dimensions = array<i32: 1>} : vector<14x14xi32>
    %c1_i32_530 = arith.constant 1 : i32
    %1199 = vector.broadcast %c1_i32_530 : i32 to vector<14x14xi32>
    %1200 = arith.muli %1197, %1199 : vector<14x14xi32>
    %c-1_i32_531 = arith.constant -1 : i32
    %1201 = vector.broadcast %c-1_i32_531 : i32 to vector<14x14xi32>
    %1202 = arith.addi %1200, %1201 : vector<14x14xi32>
    %1203 = arith.cmpi eq, %1198, %1202 : vector<14x14xi32>
    %1204 = arith.extui %1203 : vector<14x14xi1> to vector<14x14xi32>
    %1205 = arith.sitofp %1204 : vector<14x14xi32> to vector<14x14xf32>
    %cst_532 = arith.constant dense<0.000000e+00> : vector<8x14xf32>
    %1206 = tpu.matmul %1190, %1205, %cst_532 {dimension_numbers = #tpu.dot_dimension_numbers<[1], [0], [0], [1], [0, 0, 1, 1], [], []>} : vector<8x14xf32>, vector<14x14xf32>, vector<8x14xf32> -> vector<8x14xf32>
    %c0_533 = arith.constant 0 : index
    %c0_534 = arith.constant 0 : index
    %c0_535 = arith.constant 0 : index
    %1207 = vector.load %arg22[%c0_533, %c0_534, %c0_535] : memref<3x8x8xf32, #tpu.memory_space<vmem>>, vector<1x8x8xf32>
    %1208 = vector.shape_cast %1207 : vector<1x8x8xf32> to vector<8x8xf32>
    %cst_536 = arith.constant dense<0.000000e+00> : vector<8x14xf32>
    %1209 = tpu.matmul %1208, %1206, %cst_536 {dimension_numbers = #tpu.dot_dimension_numbers<[1], [0], [0], [1], [0, 0, 1, 1], [], []>} : vector<8x8xf32>, vector<8x14xf32>, vector<8x14xf32> -> vector<8x14xf32>
    %1210 = arith.addf %1196, %1209 : vector<8x14xf32>
    %1211 = tpu.iota {dimensions = array<i32: 0>} : vector<14x14xi32>
    %1212 = tpu.iota {dimensions = array<i32: 1>} : vector<14x14xi32>
    %c1_i32_537 = arith.constant 1 : i32
    %1213 = vector.broadcast %c1_i32_537 : i32 to vector<14x14xi32>
    %1214 = arith.muli %1211, %1213 : vector<14x14xi32>
    %c0_i32_538 = arith.constant 0 : i32
    %1215 = vector.broadcast %c0_i32_538 : i32 to vector<14x14xi32>
    %1216 = arith.addi %1214, %1215 : vector<14x14xi32>
    %1217 = arith.cmpi eq, %1212, %1216 : vector<14x14xi32>
    %1218 = arith.extui %1217 : vector<14x14xi1> to vector<14x14xi32>
    %1219 = arith.sitofp %1218 : vector<14x14xi32> to vector<14x14xf32>
    %cst_539 = arith.constant dense<0.000000e+00> : vector<8x14xf32>
    %1220 = tpu.matmul %1190, %1219, %cst_539 {dimension_numbers = #tpu.dot_dimension_numbers<[1], [0], [0], [1], [0, 0, 1, 1], [], []>} : vector<8x14xf32>, vector<14x14xf32>, vector<8x14xf32> -> vector<8x14xf32>
    %c1_540 = arith.constant 1 : index
    %c0_541 = arith.constant 0 : index
    %c0_542 = arith.constant 0 : index
    %1221 = vector.load %arg22[%c1_540, %c0_541, %c0_542] : memref<3x8x8xf32, #tpu.memory_space<vmem>>, vector<1x8x8xf32>
    %1222 = vector.shape_cast %1221 : vector<1x8x8xf32> to vector<8x8xf32>
    %cst_543 = arith.constant dense<0.000000e+00> : vector<8x14xf32>
    %1223 = tpu.matmul %1222, %1220, %cst_543 {dimension_numbers = #tpu.dot_dimension_numbers<[1], [0], [0], [1], [0, 0, 1, 1], [], []>} : vector<8x8xf32>, vector<8x14xf32>, vector<8x14xf32> -> vector<8x14xf32>
    %1224 = arith.addf %1210, %1223 : vector<8x14xf32>
    %1225 = tpu.iota {dimensions = array<i32: 0>} : vector<14x14xi32>
    %1226 = tpu.iota {dimensions = array<i32: 1>} : vector<14x14xi32>
    %c1_i32_544 = arith.constant 1 : i32
    %1227 = vector.broadcast %c1_i32_544 : i32 to vector<14x14xi32>
    %1228 = arith.muli %1225, %1227 : vector<14x14xi32>
    %c1_i32_545 = arith.constant 1 : i32
    %1229 = vector.broadcast %c1_i32_545 : i32 to vector<14x14xi32>
    %1230 = arith.addi %1228, %1229 : vector<14x14xi32>
    %1231 = arith.cmpi eq, %1226, %1230 : vector<14x14xi32>
    %1232 = arith.extui %1231 : vector<14x14xi1> to vector<14x14xi32>
    %1233 = arith.sitofp %1232 : vector<14x14xi32> to vector<14x14xf32>
    %cst_546 = arith.constant dense<0.000000e+00> : vector<8x14xf32>
    %1234 = tpu.matmul %1190, %1233, %cst_546 {dimension_numbers = #tpu.dot_dimension_numbers<[1], [0], [0], [1], [0, 0, 1, 1], [], []>} : vector<8x14xf32>, vector<14x14xf32>, vector<8x14xf32> -> vector<8x14xf32>
    %c2_547 = arith.constant 2 : index
    %c0_548 = arith.constant 0 : index
    %c0_549 = arith.constant 0 : index
    %1235 = vector.load %arg22[%c2_547, %c0_548, %c0_549] : memref<3x8x8xf32, #tpu.memory_space<vmem>>, vector<1x8x8xf32>
    %1236 = vector.shape_cast %1235 : vector<1x8x8xf32> to vector<8x8xf32>
    %cst_550 = arith.constant dense<0.000000e+00> : vector<8x14xf32>
    %1237 = tpu.matmul %1236, %1234, %cst_550 {dimension_numbers = #tpu.dot_dimension_numbers<[1], [0], [0], [1], [0, 0, 1, 1], [], []>} : vector<8x8xf32>, vector<8x14xf32>, vector<8x14xf32> -> vector<8x14xf32>
    %1238 = arith.addf %1224, %1237 : vector<8x14xf32>
    %cst_551 = arith.constant 0.000000e+00 : f32
    %1239 = vector.broadcast %cst_551 : f32 to vector<8x14xf32>
    %1240 = tpu.iota {dimensions = array<i32: 0>} : vector<14x14xi32>
    %1241 = tpu.iota {dimensions = array<i32: 1>} : vector<14x14xi32>
    %c1_i32_552 = arith.constant 1 : i32
    %1242 = vector.broadcast %c1_i32_552 : i32 to vector<14x14xi32>
    %1243 = arith.muli %1240, %1242 : vector<14x14xi32>
    %c-1_i32_553 = arith.constant -1 : i32
    %1244 = vector.broadcast %c-1_i32_553 : i32 to vector<14x14xi32>
    %1245 = arith.addi %1243, %1244 : vector<14x14xi32>
    %1246 = arith.cmpi eq, %1241, %1245 : vector<14x14xi32>
    %1247 = arith.extui %1246 : vector<14x14xi1> to vector<14x14xi32>
    %1248 = arith.sitofp %1247 : vector<14x14xi32> to vector<14x14xf32>
    %cst_554 = arith.constant dense<0.000000e+00> : vector<8x14xf32>
    %1249 = tpu.matmul %1192, %1248, %cst_554 {dimension_numbers = #tpu.dot_dimension_numbers<[1], [0], [0], [1], [0, 0, 1, 1], [], []>} : vector<8x14xf32>, vector<14x14xf32>, vector<8x14xf32> -> vector<8x14xf32>
    %c0_555 = arith.constant 0 : index
    %c0_556 = arith.constant 0 : index
    %c0_557 = arith.constant 0 : index
    %1250 = vector.load %arg22[%c0_555, %c0_556, %c0_557] : memref<3x8x8xf32, #tpu.memory_space<vmem>>, vector<1x8x8xf32>
    %1251 = vector.shape_cast %1250 : vector<1x8x8xf32> to vector<8x8xf32>
    %cst_558 = arith.constant dense<0.000000e+00> : vector<8x14xf32>
    %1252 = tpu.matmul %1251, %1249, %cst_558 {dimension_numbers = #tpu.dot_dimension_numbers<[1], [0], [0], [1], [0, 0, 1, 1], [], []>} : vector<8x8xf32>, vector<8x14xf32>, vector<8x14xf32> -> vector<8x14xf32>
    %1253 = arith.addf %1239, %1252 : vector<8x14xf32>
    %1254 = tpu.iota {dimensions = array<i32: 0>} : vector<14x14xi32>
    %1255 = tpu.iota {dimensions = array<i32: 1>} : vector<14x14xi32>
    %c1_i32_559 = arith.constant 1 : i32
    %1256 = vector.broadcast %c1_i32_559 : i32 to vector<14x14xi32>
    %1257 = arith.muli %1254, %1256 : vector<14x14xi32>
    %c0_i32_560 = arith.constant 0 : i32
    %1258 = vector.broadcast %c0_i32_560 : i32 to vector<14x14xi32>
    %1259 = arith.addi %1257, %1258 : vector<14x14xi32>
    %1260 = arith.cmpi eq, %1255, %1259 : vector<14x14xi32>
    %1261 = arith.extui %1260 : vector<14x14xi1> to vector<14x14xi32>
    %1262 = arith.sitofp %1261 : vector<14x14xi32> to vector<14x14xf32>
    %cst_561 = arith.constant dense<0.000000e+00> : vector<8x14xf32>
    %1263 = tpu.matmul %1192, %1262, %cst_561 {dimension_numbers = #tpu.dot_dimension_numbers<[1], [0], [0], [1], [0, 0, 1, 1], [], []>} : vector<8x14xf32>, vector<14x14xf32>, vector<8x14xf32> -> vector<8x14xf32>
    %c1_562 = arith.constant 1 : index
    %c0_563 = arith.constant 0 : index
    %c0_564 = arith.constant 0 : index
    %1264 = vector.load %arg22[%c1_562, %c0_563, %c0_564] : memref<3x8x8xf32, #tpu.memory_space<vmem>>, vector<1x8x8xf32>
    %1265 = vector.shape_cast %1264 : vector<1x8x8xf32> to vector<8x8xf32>
    %cst_565 = arith.constant dense<0.000000e+00> : vector<8x14xf32>
    %1266 = tpu.matmul %1265, %1263, %cst_565 {dimension_numbers = #tpu.dot_dimension_numbers<[1], [0], [0], [1], [0, 0, 1, 1], [], []>} : vector<8x8xf32>, vector<8x14xf32>, vector<8x14xf32> -> vector<8x14xf32>
    %1267 = arith.addf %1253, %1266 : vector<8x14xf32>
    %1268 = tpu.iota {dimensions = array<i32: 0>} : vector<14x14xi32>
    %1269 = tpu.iota {dimensions = array<i32: 1>} : vector<14x14xi32>
    %c1_i32_566 = arith.constant 1 : i32
    %1270 = vector.broadcast %c1_i32_566 : i32 to vector<14x14xi32>
    %1271 = arith.muli %1268, %1270 : vector<14x14xi32>
    %c1_i32_567 = arith.constant 1 : i32
    %1272 = vector.broadcast %c1_i32_567 : i32 to vector<14x14xi32>
    %1273 = arith.addi %1271, %1272 : vector<14x14xi32>
    %1274 = arith.cmpi eq, %1269, %1273 : vector<14x14xi32>
    %1275 = arith.extui %1274 : vector<14x14xi1> to vector<14x14xi32>
    %1276 = arith.sitofp %1275 : vector<14x14xi32> to vector<14x14xf32>
    %cst_568 = arith.constant dense<0.000000e+00> : vector<8x14xf32>
    %1277 = tpu.matmul %1192, %1276, %cst_568 {dimension_numbers = #tpu.dot_dimension_numbers<[1], [0], [0], [1], [0, 0, 1, 1], [], []>} : vector<8x14xf32>, vector<14x14xf32>, vector<8x14xf32> -> vector<8x14xf32>
    %c2_569 = arith.constant 2 : index
    %c0_570 = arith.constant 0 : index
    %c0_571 = arith.constant 0 : index
    %1278 = vector.load %arg22[%c2_569, %c0_570, %c0_571] : memref<3x8x8xf32, #tpu.memory_space<vmem>>, vector<1x8x8xf32>
    %1279 = vector.shape_cast %1278 : vector<1x8x8xf32> to vector<8x8xf32>
    %cst_572 = arith.constant dense<0.000000e+00> : vector<8x14xf32>
    %1280 = tpu.matmul %1279, %1277, %cst_572 {dimension_numbers = #tpu.dot_dimension_numbers<[1], [0], [0], [1], [0, 0, 1, 1], [], []>} : vector<8x8xf32>, vector<8x14xf32>, vector<8x14xf32> -> vector<8x14xf32>
    %1281 = arith.addf %1267, %1280 : vector<8x14xf32>
    %cst_573 = arith.constant dense<0.000000e+00> : vector<8xf32>
    %1282 = vector.multi_reduction <add>, %1238, %cst_573 [1] : vector<8x14xf32> to vector<8xf32>
    %1283 = vector.shape_cast %1282 : vector<8xf32> to vector<8x1xf32>
    %1284 = arith.mulf %1238, %1238 : vector<8x14xf32>
    %cst_574 = arith.constant dense<0.000000e+00> : vector<8xf32>
    %1285 = vector.multi_reduction <add>, %1284, %cst_574 [1] : vector<8x14xf32> to vector<8xf32>
    %1286 = vector.shape_cast %1285 : vector<8xf32> to vector<8x1xf32>
    %cst_575 = arith.constant dense<0.000000e+00> : vector<8xf32>
    %1287 = vector.multi_reduction <add>, %1281, %cst_575 [1] : vector<8x14xf32> to vector<8xf32>
    %1288 = vector.shape_cast %1287 : vector<8xf32> to vector<8x1xf32>
    %1289 = arith.addf %1283, %1288 : vector<8x1xf32>
    %1290 = arith.mulf %1281, %1281 : vector<8x14xf32>
    %cst_576 = arith.constant dense<0.000000e+00> : vector<8xf32>
    %1291 = vector.multi_reduction <add>, %1290, %cst_576 [1] : vector<8x14xf32> to vector<8xf32>
    %1292 = vector.shape_cast %1291 : vector<8xf32> to vector<8x1xf32>
    %1293 = arith.addf %1286, %1292 : vector<8x1xf32>
    %cst_577 = arith.constant 0.0357142873 : f32
    %1294 = vector.broadcast %cst_577 : f32 to vector<8x1xf32>
    %1295 = arith.mulf %1289, %1294 : vector<8x1xf32>
    %cst_578 = arith.constant 0.0357142873 : f32
    %1296 = vector.broadcast %cst_578 : f32 to vector<8x1xf32>
    %1297 = arith.mulf %1293, %1296 : vector<8x1xf32>
    %1298 = arith.mulf %1295, %1295 : vector<8x1xf32>
    %1299 = arith.subf %1297, %1298 : vector<8x1xf32>
    %cst_579 = arith.constant 0.000000e+00 : f32
    %1300 = vector.broadcast %cst_579 : f32 to vector<8x1xf32>
    %1301 = arith.maximumf %1299, %1300 : vector<8x1xf32>
    %cst_580 = arith.constant 9.99999974E-6 : f32
    %1302 = vector.broadcast %cst_580 : f32 to vector<8x1xf32>
    %1303 = arith.addf %1301, %1302 : vector<8x1xf32>
    %1304 = math.rsqrt %1303 : vector<8x1xf32>
    %1305 = arith.mulf %1194, %1304 : vector<8x1xf32>
    %1306 = arith.mulf %1295, %1305 : vector<8x1xf32>
    %1307 = arith.subf %1195, %1306 : vector<8x1xf32>
    %1308 = vector.broadcast %1305 : vector<8x1xf32> to vector<8x14xf32>
    %1309 = arith.mulf %1238, %1308 : vector<8x14xf32>
    %1310 = vector.broadcast %1307 : vector<8x1xf32> to vector<8x14xf32>
    %1311 = arith.addf %1309, %1310 : vector<8x14xf32>
    %1312 = vector.broadcast %1305 : vector<8x1xf32> to vector<8x14xf32>
    %1313 = arith.mulf %1281, %1312 : vector<8x14xf32>
    %1314 = vector.broadcast %1307 : vector<8x1xf32> to vector<8x14xf32>
    %1315 = arith.addf %1313, %1314 : vector<8x14xf32>
    %cst_581 = arith.constant 0.000000e+00 : f32
    %1316 = vector.broadcast %cst_581 : f32 to vector<8x14xf32>
    %1317 = arith.maximumf %1311, %1316 : vector<8x14xf32>
    %cst_582 = arith.constant 0.000000e+00 : f32
    %1318 = vector.broadcast %cst_582 : f32 to vector<8x14xf32>
    %1319 = arith.maximumf %1315, %1318 : vector<8x14xf32>
    %c0_583 = arith.constant 0 : index
    %c0_584 = arith.constant 0 : index
    %1320 = vector.load %arg25[%c0_583, %c0_584] : memref<4x2xf32, #tpu.memory_space<vmem>>, vector<4x2xf32>
    %1321 = vector.extract_strided_slice %1320 {offsets = [0, 0], sizes = [4, 1], strides = [1, 1]} : vector<4x2xf32> to vector<4x1xf32>
    %1322 = vector.extract_strided_slice %1320 {offsets = [0, 1], sizes = [4, 1], strides = [1, 1]} : vector<4x2xf32> to vector<4x1xf32>
    %cst_585 = arith.constant 0.000000e+00 : f32
    %1323 = vector.broadcast %cst_585 : f32 to vector<4x16xf32>
    %1324 = tpu.iota {dimensions = array<i32: 0>} : vector<14x16xi32>
    %1325 = tpu.iota {dimensions = array<i32: 1>} : vector<14x16xi32>
    %c1_i32_586 = arith.constant 1 : i32
    %1326 = vector.broadcast %c1_i32_586 : i32 to vector<14x16xi32>
    %1327 = arith.muli %1324, %1326 : vector<14x16xi32>
    %c0_i32_587 = arith.constant 0 : i32
    %1328 = vector.broadcast %c0_i32_587 : i32 to vector<14x16xi32>
    %1329 = arith.addi %1327, %1328 : vector<14x16xi32>
    %1330 = arith.cmpi eq, %1325, %1329 : vector<14x16xi32>
    %1331 = arith.extui %1330 : vector<14x16xi1> to vector<14x16xi32>
    %1332 = arith.sitofp %1331 : vector<14x16xi32> to vector<14x16xf32>
    %cst_588 = arith.constant dense<0.000000e+00> : vector<8x16xf32>
    %1333 = tpu.matmul %1317, %1332, %cst_588 {dimension_numbers = #tpu.dot_dimension_numbers<[1], [0], [0], [1], [0, 0, 1, 1], [], []>} : vector<8x14xf32>, vector<14x16xf32>, vector<8x16xf32> -> vector<8x16xf32>
    %c0_589 = arith.constant 0 : index
    %c0_590 = arith.constant 0 : index
    %c0_591 = arith.constant 0 : index
    %1334 = vector.load %arg24[%c0_589, %c0_590, %c0_591] : memref<3x4x8xf32, #tpu.memory_space<vmem>>, vector<1x4x8xf32>
    %1335 = vector.shape_cast %1334 : vector<1x4x8xf32> to vector<4x8xf32>
    %cst_592 = arith.constant dense<0.000000e+00> : vector<4x16xf32>
    %1336 = tpu.matmul %1335, %1333, %cst_592 {dimension_numbers = #tpu.dot_dimension_numbers<[1], [0], [0], [1], [0, 0, 1, 1], [], []>} : vector<4x8xf32>, vector<8x16xf32>, vector<4x16xf32> -> vector<4x16xf32>
    %1337 = arith.addf %1323, %1336 : vector<4x16xf32>
    %1338 = tpu.iota {dimensions = array<i32: 0>} : vector<14x16xi32>
    %1339 = tpu.iota {dimensions = array<i32: 1>} : vector<14x16xi32>
    %c1_i32_593 = arith.constant 1 : i32
    %1340 = vector.broadcast %c1_i32_593 : i32 to vector<14x16xi32>
    %1341 = arith.muli %1338, %1340 : vector<14x16xi32>
    %c1_i32_594 = arith.constant 1 : i32
    %1342 = vector.broadcast %c1_i32_594 : i32 to vector<14x16xi32>
    %1343 = arith.addi %1341, %1342 : vector<14x16xi32>
    %1344 = arith.cmpi eq, %1339, %1343 : vector<14x16xi32>
    %1345 = arith.extui %1344 : vector<14x16xi1> to vector<14x16xi32>
    %1346 = arith.sitofp %1345 : vector<14x16xi32> to vector<14x16xf32>
    %cst_595 = arith.constant dense<0.000000e+00> : vector<8x16xf32>
    %1347 = tpu.matmul %1317, %1346, %cst_595 {dimension_numbers = #tpu.dot_dimension_numbers<[1], [0], [0], [1], [0, 0, 1, 1], [], []>} : vector<8x14xf32>, vector<14x16xf32>, vector<8x16xf32> -> vector<8x16xf32>
    %c1_596 = arith.constant 1 : index
    %c0_597 = arith.constant 0 : index
    %c0_598 = arith.constant 0 : index
    %1348 = vector.load %arg24[%c1_596, %c0_597, %c0_598] : memref<3x4x8xf32, #tpu.memory_space<vmem>>, vector<1x4x8xf32>
    %1349 = vector.shape_cast %1348 : vector<1x4x8xf32> to vector<4x8xf32>
    %cst_599 = arith.constant dense<0.000000e+00> : vector<4x16xf32>
    %1350 = tpu.matmul %1349, %1347, %cst_599 {dimension_numbers = #tpu.dot_dimension_numbers<[1], [0], [0], [1], [0, 0, 1, 1], [], []>} : vector<4x8xf32>, vector<8x16xf32>, vector<4x16xf32> -> vector<4x16xf32>
    %1351 = arith.addf %1337, %1350 : vector<4x16xf32>
    %1352 = tpu.iota {dimensions = array<i32: 0>} : vector<14x16xi32>
    %1353 = tpu.iota {dimensions = array<i32: 1>} : vector<14x16xi32>
    %c1_i32_600 = arith.constant 1 : i32
    %1354 = vector.broadcast %c1_i32_600 : i32 to vector<14x16xi32>
    %1355 = arith.muli %1352, %1354 : vector<14x16xi32>
    %c2_i32_601 = arith.constant 2 : i32
    %1356 = vector.broadcast %c2_i32_601 : i32 to vector<14x16xi32>
    %1357 = arith.addi %1355, %1356 : vector<14x16xi32>
    %1358 = arith.cmpi eq, %1353, %1357 : vector<14x16xi32>
    %1359 = arith.extui %1358 : vector<14x16xi1> to vector<14x16xi32>
    %1360 = arith.sitofp %1359 : vector<14x16xi32> to vector<14x16xf32>
    %cst_602 = arith.constant dense<0.000000e+00> : vector<8x16xf32>
    %1361 = tpu.matmul %1317, %1360, %cst_602 {dimension_numbers = #tpu.dot_dimension_numbers<[1], [0], [0], [1], [0, 0, 1, 1], [], []>} : vector<8x14xf32>, vector<14x16xf32>, vector<8x16xf32> -> vector<8x16xf32>
    %c2_603 = arith.constant 2 : index
    %c0_604 = arith.constant 0 : index
    %c0_605 = arith.constant 0 : index
    %1362 = vector.load %arg24[%c2_603, %c0_604, %c0_605] : memref<3x4x8xf32, #tpu.memory_space<vmem>>, vector<1x4x8xf32>
    %1363 = vector.shape_cast %1362 : vector<1x4x8xf32> to vector<4x8xf32>
    %cst_606 = arith.constant dense<0.000000e+00> : vector<4x16xf32>
    %1364 = tpu.matmul %1363, %1361, %cst_606 {dimension_numbers = #tpu.dot_dimension_numbers<[1], [0], [0], [1], [0, 0, 1, 1], [], []>} : vector<4x8xf32>, vector<8x16xf32>, vector<4x16xf32> -> vector<4x16xf32>
    %1365 = arith.addf %1351, %1364 : vector<4x16xf32>
    %cst_607 = arith.constant 0.000000e+00 : f32
    %1366 = vector.broadcast %cst_607 : f32 to vector<4x16xf32>
    %1367 = tpu.iota {dimensions = array<i32: 0>} : vector<14x16xi32>
    %1368 = tpu.iota {dimensions = array<i32: 1>} : vector<14x16xi32>
    %c1_i32_608 = arith.constant 1 : i32
    %1369 = vector.broadcast %c1_i32_608 : i32 to vector<14x16xi32>
    %1370 = arith.muli %1367, %1369 : vector<14x16xi32>
    %c0_i32_609 = arith.constant 0 : i32
    %1371 = vector.broadcast %c0_i32_609 : i32 to vector<14x16xi32>
    %1372 = arith.addi %1370, %1371 : vector<14x16xi32>
    %1373 = arith.cmpi eq, %1368, %1372 : vector<14x16xi32>
    %1374 = arith.extui %1373 : vector<14x16xi1> to vector<14x16xi32>
    %1375 = arith.sitofp %1374 : vector<14x16xi32> to vector<14x16xf32>
    %cst_610 = arith.constant dense<0.000000e+00> : vector<8x16xf32>
    %1376 = tpu.matmul %1319, %1375, %cst_610 {dimension_numbers = #tpu.dot_dimension_numbers<[1], [0], [0], [1], [0, 0, 1, 1], [], []>} : vector<8x14xf32>, vector<14x16xf32>, vector<8x16xf32> -> vector<8x16xf32>
    %c0_611 = arith.constant 0 : index
    %c0_612 = arith.constant 0 : index
    %c0_613 = arith.constant 0 : index
    %1377 = vector.load %arg24[%c0_611, %c0_612, %c0_613] : memref<3x4x8xf32, #tpu.memory_space<vmem>>, vector<1x4x8xf32>
    %1378 = vector.shape_cast %1377 : vector<1x4x8xf32> to vector<4x8xf32>
    %cst_614 = arith.constant dense<0.000000e+00> : vector<4x16xf32>
    %1379 = tpu.matmul %1378, %1376, %cst_614 {dimension_numbers = #tpu.dot_dimension_numbers<[1], [0], [0], [1], [0, 0, 1, 1], [], []>} : vector<4x8xf32>, vector<8x16xf32>, vector<4x16xf32> -> vector<4x16xf32>
    %1380 = arith.addf %1366, %1379 : vector<4x16xf32>
    %1381 = tpu.iota {dimensions = array<i32: 0>} : vector<14x16xi32>
    %1382 = tpu.iota {dimensions = array<i32: 1>} : vector<14x16xi32>
    %c1_i32_615 = arith.constant 1 : i32
    %1383 = vector.broadcast %c1_i32_615 : i32 to vector<14x16xi32>
    %1384 = arith.muli %1381, %1383 : vector<14x16xi32>
    %c1_i32_616 = arith.constant 1 : i32
    %1385 = vector.broadcast %c1_i32_616 : i32 to vector<14x16xi32>
    %1386 = arith.addi %1384, %1385 : vector<14x16xi32>
    %1387 = arith.cmpi eq, %1382, %1386 : vector<14x16xi32>
    %1388 = arith.extui %1387 : vector<14x16xi1> to vector<14x16xi32>
    %1389 = arith.sitofp %1388 : vector<14x16xi32> to vector<14x16xf32>
    %cst_617 = arith.constant dense<0.000000e+00> : vector<8x16xf32>
    %1390 = tpu.matmul %1319, %1389, %cst_617 {dimension_numbers = #tpu.dot_dimension_numbers<[1], [0], [0], [1], [0, 0, 1, 1], [], []>} : vector<8x14xf32>, vector<14x16xf32>, vector<8x16xf32> -> vector<8x16xf32>
    %c1_618 = arith.constant 1 : index
    %c0_619 = arith.constant 0 : index
    %c0_620 = arith.constant 0 : index
    %1391 = vector.load %arg24[%c1_618, %c0_619, %c0_620] : memref<3x4x8xf32, #tpu.memory_space<vmem>>, vector<1x4x8xf32>
    %1392 = vector.shape_cast %1391 : vector<1x4x8xf32> to vector<4x8xf32>
    %cst_621 = arith.constant dense<0.000000e+00> : vector<4x16xf32>
    %1393 = tpu.matmul %1392, %1390, %cst_621 {dimension_numbers = #tpu.dot_dimension_numbers<[1], [0], [0], [1], [0, 0, 1, 1], [], []>} : vector<4x8xf32>, vector<8x16xf32>, vector<4x16xf32> -> vector<4x16xf32>
    %1394 = arith.addf %1380, %1393 : vector<4x16xf32>
    %1395 = tpu.iota {dimensions = array<i32: 0>} : vector<14x16xi32>
    %1396 = tpu.iota {dimensions = array<i32: 1>} : vector<14x16xi32>
    %c1_i32_622 = arith.constant 1 : i32
    %1397 = vector.broadcast %c1_i32_622 : i32 to vector<14x16xi32>
    %1398 = arith.muli %1395, %1397 : vector<14x16xi32>
    %c2_i32_623 = arith.constant 2 : i32
    %1399 = vector.broadcast %c2_i32_623 : i32 to vector<14x16xi32>
    %1400 = arith.addi %1398, %1399 : vector<14x16xi32>
    %1401 = arith.cmpi eq, %1396, %1400 : vector<14x16xi32>
    %1402 = arith.extui %1401 : vector<14x16xi1> to vector<14x16xi32>
    %1403 = arith.sitofp %1402 : vector<14x16xi32> to vector<14x16xf32>
    %cst_624 = arith.constant dense<0.000000e+00> : vector<8x16xf32>
    %1404 = tpu.matmul %1319, %1403, %cst_624 {dimension_numbers = #tpu.dot_dimension_numbers<[1], [0], [0], [1], [0, 0, 1, 1], [], []>} : vector<8x14xf32>, vector<14x16xf32>, vector<8x16xf32> -> vector<8x16xf32>
    %c2_625 = arith.constant 2 : index
    %c0_626 = arith.constant 0 : index
    %c0_627 = arith.constant 0 : index
    %1405 = vector.load %arg24[%c2_625, %c0_626, %c0_627] : memref<3x4x8xf32, #tpu.memory_space<vmem>>, vector<1x4x8xf32>
    %1406 = vector.shape_cast %1405 : vector<1x4x8xf32> to vector<4x8xf32>
    %cst_628 = arith.constant dense<0.000000e+00> : vector<4x16xf32>
    %1407 = tpu.matmul %1406, %1404, %cst_628 {dimension_numbers = #tpu.dot_dimension_numbers<[1], [0], [0], [1], [0, 0, 1, 1], [], []>} : vector<4x8xf32>, vector<8x16xf32>, vector<4x16xf32> -> vector<4x16xf32>
    %1408 = arith.addf %1394, %1407 : vector<4x16xf32>
    %cst_629 = arith.constant dense<0.000000e+00> : vector<4xf32>
    %1409 = vector.multi_reduction <add>, %1365, %cst_629 [1] : vector<4x16xf32> to vector<4xf32>
    %1410 = vector.shape_cast %1409 : vector<4xf32> to vector<4x1xf32>
    %1411 = arith.mulf %1365, %1365 : vector<4x16xf32>
    %cst_630 = arith.constant dense<0.000000e+00> : vector<4xf32>
    %1412 = vector.multi_reduction <add>, %1411, %cst_630 [1] : vector<4x16xf32> to vector<4xf32>
    %1413 = vector.shape_cast %1412 : vector<4xf32> to vector<4x1xf32>
    %cst_631 = arith.constant dense<0.000000e+00> : vector<4xf32>
    %1414 = vector.multi_reduction <add>, %1408, %cst_631 [1] : vector<4x16xf32> to vector<4xf32>
    %1415 = vector.shape_cast %1414 : vector<4xf32> to vector<4x1xf32>
    %1416 = arith.addf %1410, %1415 : vector<4x1xf32>
    %1417 = arith.mulf %1408, %1408 : vector<4x16xf32>
    %cst_632 = arith.constant dense<0.000000e+00> : vector<4xf32>
    %1418 = vector.multi_reduction <add>, %1417, %cst_632 [1] : vector<4x16xf32> to vector<4xf32>
    %1419 = vector.shape_cast %1418 : vector<4xf32> to vector<4x1xf32>
    %1420 = arith.addf %1413, %1419 : vector<4x1xf32>
    %cst_633 = arith.constant 3.125000e-02 : f32
    %1421 = vector.broadcast %cst_633 : f32 to vector<4x1xf32>
    %1422 = arith.mulf %1416, %1421 : vector<4x1xf32>
    %cst_634 = arith.constant 3.125000e-02 : f32
    %1423 = vector.broadcast %cst_634 : f32 to vector<4x1xf32>
    %1424 = arith.mulf %1420, %1423 : vector<4x1xf32>
    %1425 = arith.mulf %1422, %1422 : vector<4x1xf32>
    %1426 = arith.subf %1424, %1425 : vector<4x1xf32>
    %cst_635 = arith.constant 0.000000e+00 : f32
    %1427 = vector.broadcast %cst_635 : f32 to vector<4x1xf32>
    %1428 = arith.maximumf %1426, %1427 : vector<4x1xf32>
    %cst_636 = arith.constant 9.99999974E-6 : f32
    %1429 = vector.broadcast %cst_636 : f32 to vector<4x1xf32>
    %1430 = arith.addf %1428, %1429 : vector<4x1xf32>
    %1431 = math.rsqrt %1430 : vector<4x1xf32>
    %1432 = arith.mulf %1321, %1431 : vector<4x1xf32>
    %1433 = arith.mulf %1422, %1432 : vector<4x1xf32>
    %1434 = arith.subf %1322, %1433 : vector<4x1xf32>
    %1435 = vector.broadcast %1432 : vector<4x1xf32> to vector<4x16xf32>
    %1436 = arith.mulf %1365, %1435 : vector<4x16xf32>
    %1437 = vector.broadcast %1434 : vector<4x1xf32> to vector<4x16xf32>
    %1438 = arith.addf %1436, %1437 : vector<4x16xf32>
    %1439 = vector.broadcast %1432 : vector<4x1xf32> to vector<4x16xf32>
    %1440 = arith.mulf %1408, %1439 : vector<4x16xf32>
    %1441 = vector.broadcast %1434 : vector<4x1xf32> to vector<4x16xf32>
    %1442 = arith.addf %1440, %1441 : vector<4x16xf32>
    %1443 = math.tanh %1438 : vector<4x16xf32>
    %1444 = math.tanh %1442 : vector<4x16xf32>
    %c0_637 = arith.constant 0 : index
    %c0_638 = arith.constant 0 : index
    %c0_639 = arith.constant 0 : index
    %1445 = vector.load %arg27[%c0_637, %c0_638, %c0_639] : memref<2x4x16xf32, #tpu.memory_space<vmem>>, vector<1x4x16xf32>
    %1446 = vector.shape_cast %1445 : vector<1x4x16xf32> to vector<4x16xf32>
    %1447 = vector.shape_cast %1443 : vector<4x16xf32> to vector<1x4x16xf32>
    tpu.vector_store %arg27[%c0_637, %c0_638, %c0_639], %1447 {strides = array<i32>} : memref<2x4x16xf32, #tpu.memory_space<vmem>>, vector<1x4x16xf32>,
    %c1_640 = arith.constant 1 : index
    %c0_641 = arith.constant 0 : index
    %c0_642 = arith.constant 0 : index
    %1448 = vector.load %arg27[%c1_640, %c0_641, %c0_642] : memref<2x4x16xf32, #tpu.memory_space<vmem>>, vector<1x4x16xf32>
    %1449 = vector.shape_cast %1448 : vector<1x4x16xf32> to vector<4x16xf32>
    %1450 = vector.shape_cast %1444 : vector<4x16xf32> to vector<1x4x16xf32>
    tpu.vector_store %arg27[%c1_640, %c0_641, %c0_642], %1450 {strides = array<i32>} : memref<2x4x16xf32, #tpu.memory_space<vmem>>, vector<1x4x16xf32>,
    return
  }
}

</mosaic_0001>

<bundles_post_ra>
// kernel: bogi_autoencoder_forward.1
= control target key start
LH: loop header
LB: loop body
LE: loop exit
PB: predicated region body
PF: predicated region fallthrough
CT: control target
= control target key end

     0   :  { %s13712_s0 = inlined_call_operand.hbm [shape: f32[2,4,16], index: 0, kind: input, shape index: {}]   ;;  %s13713_s1 = inlined_call_operand.vmem [shape: f32[3,8,4], index: 1, kind: input, shape index: {}]   ;;  %s13714_s2 = inlined_call_operand.vmem [shape: f32[8,2], index: 2, kind: input, shape index: {}]   ;;  %s13715_s3 = inlined_call_operand.vmem [shape: f32[3,8,8], index: 3, kind: input, shape index: {}]   ;;  %s13716_s4 = inlined_call_operand.vmem [shape: f32[8,2], index: 4, kind: input, shape index: {}]   ;;  %s13717_s5 = inlined_call_operand.vmem [shape: f32[4,8,8], index: 5, kind: input, shape index: {}]   ;;  %s13718_s6 = inlined_call_operand.vmem [shape: f32[8,2], index: 6, kind: input, shape index: {}]   ;;  %s13719_s7 = inlined_call_operand.vmem [shape: f32[3,8,8], index: 7, kind: input, shape index: {}]   ;;  %s13720_s8 = inlined_call_operand.vmem [shape: f32[8,2], index: 8, kind: input, shape index: {}]   ;;  %s13721_s9 = inlined_call_operand.vmem [shape: f32[3,8,8], index: 9, kind: input, shape index: {}]   ;;  %s13722_s10 = inlined_call_operand.vmem [shape: f32[8,2], index: 10, kind: input, shape index: {}]   ;;  %s13723_s11 = inlined_call_operand.vmem [shape: f32[1,16,8], index: 11, kind: input, shape index: {}]   ;;  %s13724_s12 = inlined_call_operand.vmem [shape: f32[16,1], index: 12, kind: input, shape index: {}]   ;;  %s13725_s13 = inlined_call_operand.hbm [shape: f32[1,8,16], index: 13, kind: input, shape index: {}]   ;;  %s13726_s14 = inlined_call_operand.vmem [shape: f32[8,1], index: 14, kind: input, shape index: {}]   ;;  %s13727_s15 = inlined_call_operand.vmem [shape: f32[8,2], index: 15, kind: input, shape index: {}]   ;;  %s13728_s16 = inlined_call_operand.vmem [shape: f32[3,8,8], index: 16, kind: input, shape index: {}]   ;;  %s13729_s17 = inlined_call_operand.vmem [shape: f32[8,2], index: 17, kind: input, shape index: {}]   ;;  %s13730_s18 = inlined_call_operand.vmem [shape: f32[3,8,8], index: 18, kind: input, shape index: {}]   ;;  %s13731_s19 = inlined_call_operand.vmem [shape: f32[8,2], index: 19, kind: input, shape index: {}]   ;;  %s13732_s20 = inlined_call_operand.vmem [shape: f32[4,8,8], index: 20, kind: input, shape index: {}]   ;;  %s13733_s21 = inlined_call_operand.vmem [shape: f32[8,2], index: 21, kind: input, shape index: {}]   ;;  %s13734_s22 = inlined_call_operand.vmem [shape: f32[3,8,8], index: 22, kind: input, shape index: {}]   ;;  %s13735_s23 = inlined_call_operand.vmem [shape: f32[8,2], index: 23, kind: input, shape index: {}]   ;;  %s13736_s24 = inlined_call_operand.vmem [shape: f32[3,4,8], index: 24, kind: input, shape index: {}]   ;;  %s13737_s25 = inlined_call_operand.vmem [shape: f32[4,2], index: 25, kind: input, shape index: {}]   ;;  %s13738_s26 = inlined_call_operand.vmem [shape: f32[2,16,7], index: 26, kind: output, shape index: {0}]   ;;  %s13739_s27 = inlined_call_operand.hbm [shape: f32[2,4,16], index: 27, kind: output, shape index: {1}]  }
   0x1   :  { %13748 = sst [smem:[#allocation11_spill]] %s13712_s0 }
   0x2   :  { %13749 = sst [smem:[#allocation12_spill]] %s13713_s1 }
   0x3   :  { %13750 = sst [smem:[#allocation13_spill]] %s13714_s2 }
   0x4   :  { %13751 = sst [smem:[#allocation14_spill]] %s13715_s3 }
   0x5   :  { %13752 = sst [smem:[#allocation15_spill]] %s13716_s4 }
   0x6   :  { %13753 = sst [smem:[#allocation16_spill]] %s13717_s5 }
   0x7   :  { %13754 = sst [smem:[#allocation17_spill]] %s13718_s6 }
   0x8   :  { %13755 = sst [smem:[#allocation18_spill]] %s13719_s7 }
   0x9   :  { %13756 = sst [smem:[#allocation19_spill]] %s13720_s8 }
   0xa   :  { %13757 = sst [smem:[#allocation20_spill]] %s13721_s9 }
   0xb   :  { %13758 = sst [smem:[#allocation21_spill]] %s13722_s10 }
   0xc   :  { %13759 = sst [smem:[#allocation22_spill]] %s13723_s11 }
   0xd   :  { %13760 = sst [smem:[#allocation23_spill]] %s13739_s27 }
   0xe   :  { %33 = vsyncpa [#allocation3], 0 }
   0xf   :  { %34 = vsyncpa [#allocation6], 0 }
  0x10   :  { %35 = vsyncpa [#allocation4], 0  ;;  %s12375_s7 = smov [#allocation2]   ;;  %s13761_s9 = sld [smem:[#allocation11_spill]] }
  0x11   :  { %s41_s4 = sshll.u32 %s12375_s7, 4  ;;  %s42_s4 = int_to_ptr.vmem [resolvable:$true] %s41_s4 }
  0x16   :  { %s12303_s5 = scalar_lea.hbm %s13761_s9, 128 }
  0x17   :  { %p12304_p0 = scmp.ne.s32.totalorder %s13761_s9, %s12303_s5  ;;  %p12307_p1 = scmp.lt.u32.totalorder %s12303_s5, %s13761_s9 }
  0x19   :  { %p12309_p2 = pnand %p12307_p1, %p12304_p0 }
  0x1b   :  { %12312 = shalt.err (!%p12309_p2)
}
  0x1c   :  { %s12313_s1 = scalar_lea.vmem %s42_s4, 128  ;;  %p12318_p4 = scmp.lt.s32.totalorder %s42_s4, %s42_s4 }
  0x1d   :  { %p12314_p3 = scmp.ne.s32.totalorder %s42_s4, %s12313_s1  ;;  %p12319_p5 = scmp.lt.s32.totalorder %s12313_s1, %s12313_s1 }
  0x1f   :  { %p12320_p6 = por %p12319_p5, %p12318_p4 }
  0x21   :  { %p12321_p7 = pnand %p12320_p6, %p12314_p3 }
  0x23   :  { %12324 = shalt.err (!%p12321_p7)
}
  0x24   :  { %s12376_s6 = smov 64   ;;  %s12377_s11 = smov 4  }
  0x25   :  { %47 = dma.hbm_to_vmem [thread:$0]  %s13761_s9, 128, %s42_s4, [#allocation3], %s12376_s6, %s12376_s6, %s12377_s11  }
  0x26   :  { %s12378_s7 = smov [#allocation5]   ;;  %s12325_s28 = scalar_lea.hbm %s13725_s13, 128 }
  0x27   :  { %s78_s8 = sshll.u32 %s12378_s7, 4  ;;  %p12326_p8 = scmp.ne.s32.totalorder %s13725_s13, %s12325_s28  ;;  %s79_s8 = int_to_ptr.vmem [resolvable:$true] %s78_s8 }
  0x28   :  { %p12329_p9 = scmp.lt.u32.totalorder %s12325_s28, %s13725_s13 }
  0x2a   :  { %p12331_p10 = pnand %p12329_p9, %p12326_p8 }
  0x2c   :  { %12334 = shalt.err (!%p12331_p10)
}
  0x2d   :  { %s12335_s27 = scalar_lea.vmem %s79_s8, 128  ;;  %p12340_p12 = scmp.lt.s32.totalorder %s79_s8, %s79_s8 }
  0x2e   :  { %p12336_p11 = scmp.ne.s32.totalorder %s79_s8, %s12335_s27  ;;  %p12341_p13 = scmp.lt.s32.totalorder %s12335_s27, %s12335_s27 }
  0x30   :  { %p12342_p0 = por %p12341_p13, %p12340_p12 }
  0x32   :  { %p12343_p1 = pnand %p12342_p0, %p12336_p11 }
  0x34   :  { %12346 = shalt.err (!%p12343_p1)
}
  0x35   :  { %81 = dma.hbm_to_vmem [thread:$0]  %s13725_s13, 128, %s79_s8, [#allocation6]  }
  0x36   :  { %12369 = dma.done.wait [#allocation3], 128  }
  0x37   :  { %12370 = vsyncadd [#allocation3], 4294967168 }
  0x38   :  { %12371 = dma.done.wait [#allocation6], 128  }
  0x39   :  { %12372 = vsyncadd [#allocation6], 4294967168  ;;  %v116_v0 = vlaneseq  ;;  %v12379_v1 = vmov 0.0|0.0   ;;  %v12380_v2 = vmov 0.0   ;;  %vm12381_vm0 = vmmov 0   ;;  %s13766_s2 = sld [smem:[#allocation12_spill]] }
  0x3a   :  { %12036 = vmatprep.subr.bf16.mxu1 %v12379_v1  ;;  %11302 = vmatprep.subr.mxu0 %v12380_v2  ;;  %v12382_v9 = vmov 1.0|1.0   ;;  %v112_v10 = vld [vmem:[#allocation2] sm:$0xf]  ;;  %vm127_vm6 = vcmask 130048   ;;  %vm285_vm11 = vcmask 1043456  }
  0x3b   :  { %v12557_v3 = vshrl.u32 %v116_v0, 7  ;;  %v12559_v4 = vand.u32 127, %v116_v0  ;;  %11292 = vmatprep.mubr.msk.f32.mxu1 %vm12381_vm0, %v12380_v2  ;;  %11304 = vmatprep.mubr.msk.f32.mxu0 %vm12381_vm0, %v12380_v2  ;;  %v114_v12 = vld [vmem:[#allocation2 + $0x4] sm:$0xf]  ;;  %vm281_vm12 = vcmask 31744   ;;  %vm1024_vm13 = vcmask 113664  }
  0x3c   :  { %v12383_v38 = vmov 0   ;;  %s13767_s0 = sld [smem:[#allocation13_spill]]  ;;  %s12384_s10 = smov 1   ;;  %v12385_v55 = vmov 1   ;;  %v12386_v60 = vmov 1.0  }
  0x3d   :  { %v12566_v5 = vadd.s32 8, %v12557_v3  ;;  %vm121_vm1 = vcmp.eq.s32.totalorder %v12557_v3, %v12559_v4  ;;  %v12571_v6 = vadd.s32 1, %v12559_v4  ;;  %v435_v7 = vadd.s32 2, %v12559_v4  ;;  %12265 = vset.pattern.permute.xlu1 %v12383_v38  ;;  %12267 = vset.pattern.permute.xlu0 %v12383_v38  ;;  %s13774_s4 = sld [smem:[#allocation14_spill]]  ;;  %s13775_s8 = sld [smem:[#allocation15_spill]] }
  0x3e   :  { %v12685_v56 = vadd.s32 4294967295, %v12559_v4  ;;  %s13784_s28 = sld [smem:[#allocation16_spill]]  ;;  %s13785_s3 = sld [smem:[#allocation17_spill]] }
  0x3f   :  { %vm122_vm2 = vcmp.eq.s32.totalorder %v12566_v5, %v12559_v4  ;;  %vm203_vm3 = vcmp.eq.s32.totalorder %v12557_v3, %v12571_v6  ;;  %vm204_vm4 = vcmp.eq.s32.totalorder %v12566_v5, %v12571_v6  ;;  %vm436_vm8 = vcmp.eq.s32.totalorder %v12557_v3, %v435_v7  ;;  %v10690_v15 = vld [vmem:[%s13766_s2 + $0x8] sm:$0xff]  ;;  %v201_v20 = vld [vmem:[%s13766_s2] sm:$0xff]  ;;  %v10700_v25 = vld [vmem:[%s13766_s2 + $0x10] sm:$0xff]  ;;  %s13786_s30 = sld [smem:[#allocation18_spill]]  ;;  %s13787_s9 = sld [smem:[#allocation19_spill]] }
  0x40   :  { %vm12586_vm5 = vmpackc.low %vm122_vm2, %vm121_vm1  ;;  %vm437_vm9 = vcmp.eq.s32.totalorder %v12566_v5, %v435_v7  ;;  %vm1074_vm14 = vcmp.eq.s32.totalorder %v12566_v5, %v12685_v56  ;;  %vm1073_vm15 = vcmp.eq.s32.totalorder %v12557_v3, %v12685_v56  ;;  %v10681_v0 = vsel %vm122_vm2, 1.0, %v12380_v2  ;;  %s13788_s2 = sld [smem:[#allocation20_spill]]  ;;  %s13790_s27 = sld [smem:[#allocation22_spill]] }
  0x41   :  { %12038 = vmatpush3.bf16.msk.msra.mxu1 %vm12586_vm5, %v12382_v9  ;;  %vm12599_vm7 = vmpackc.low %vm204_vm4, %vm203_vm3  ;;  %v10719_v59 = vsel %vm1074_vm14, 1.0, %v12380_v2  ;;  %v10686_v11 = vsel %vm204_vm4, 1.0, %v12380_v2  ;;  %vm1232_vm4 = vcmask 64512   ;;  %v12972_v56 = vsel %vm203_vm3, 1.0, %v12380_v2 }
  0x42   :  { %12039 = vmatprep.subr.bf16.mxu1 %v12379_v1  ;;  %vm12043_vm10 = vmpackc.low %vm437_vm9, %vm436_vm8  ;;  %v115_v51 = vld [vmem:[%s13767_s0] sm:$0xff]  ;;  %v12055_v61 = vpack.c.bf16 %v10719_v59, %v12386_v60  ;;  %s13789_s0 = sld [smem:[#allocation21_spill]] }
  0x43   :  { %v1071_v59 = vld [vmem:[%s13775_s8] sm:$0xff] }
  0x44   :  { %11293 = vmatmul.mubr.msk.f32.vlgmr.msra.gmra.mrb[0].mxu1 %vm127_vm6, %v112_v10 }
  0x45   :  { %12041 = vmatpush3.bf16.msk.msra.mxu1 %vm12599_vm7, %v12382_v9  ;;  %11299 = vmatprep.mubr.msk.f32.mxu1 %vm12381_vm0, %v12380_v2 }
  0x46   :  { %12042 = vmatprep.subr.bf16.mxu1 %v12379_v1 }
  0x48   :  { %11300 = vmatmul.mubr.msk.f32.vlgmr.msra.gmra.mrb[2].mxu1 %vm127_vm6, %v112_v10 }
  0x49   :  { %12044 = vmatpush3.bf16.msk.msra.mxu1 %vm12043_vm10, %v12382_v9  ;;  %11316 = vmatprep.mubr.msk.f32.mxu1 %vm12381_vm0, %v12380_v2 }
  0x4a   :  { %12045 = vmatprep.subr.bf16.mxu1 %v12379_v1 }
  0x4c   :  { %11317 = vmatmul.mubr.msk.f32.vlgmr.msra.gmra.mrb[4].mxu1 %vm127_vm6, %v112_v10  ;;  %v12059_v10 = vpack.c.bf16 %v10681_v0, %v12386_v60  ;;  %v1999_v0 = vmul.u32 2, %v12559_v4 }
  0x4d   :  { %12047 = vmatpush3.bf16.msk.msra.mxu1 %vm12586_vm5, %v12382_v9  ;;  %11328 = vmatprep.mubr.msk.f32.mxu1 %vm12381_vm0, %v12380_v2  ;;  %vm1082_vm5 = vcmask 1045504  }
  0x4e   :  { %12048 = vmatprep.subr.bf16.mxu1 %v12379_v1  ;;  %vm12717_vm8 = vmpackc.low %vm1082_vm5, %vm121_vm1  ;;  %vm2084_vm14 = vcmp.eq.s32.totalorder %v12557_v3, %v1999_v0 }
  0x4f   :  { %vm12732_vm2 = vmpackc.low %vm1082_vm5, %vm203_vm3 }
  0x50   :  { %11329 = vmatmul.mubr.msk.f32.vlgmr.msra.gmra.mrb[6].mxu1 %vm127_vm6, %v114_v12 }
  0x51   :  { %12050 = vmatpush3.bf16.msk.msra.mxu1 %vm12599_vm7, %v12382_v9  ;;  %11335 = vmatprep.mubr.msk.f32.mxu1 %vm12381_vm0, %v12380_v2  ;;  %vm12697_vm7 = vmpackc.low %vm1082_vm5, %vm1073_vm15 }
  0x52   :  { %12051 = vmatprep.subr.bf16.mxu1 %v12379_v1 }
  0x54   :  { %11336 = vmatmul.mubr.msk.f32.vlgmr.msra.gmra.mrb[8].mxu1 %vm127_vm6, %v114_v12 }
  0x55   :  { %12053 = vmatpush3.bf16.msk.msra.mxu1 %vm12043_vm10, %v12382_v9  ;;  %11352 = vmatprep.mubr.msk.f32.mxu1 %vm12381_vm0, %v12380_v2 }
  0x56   :  { %12054 = vmatprep.subr.bf16.mxu1 %v12379_v1 }
  0x58   :  { %11353 = vmatmul.mubr.msk.f32.vlgmr.msra.gmra.mrb[10].mxu1 %vm127_vm6, %v114_v12 }
  0x59   :  { %11364 = vmatprep.mubr.msk.f32.mxu1 %vm12381_vm0, %v12380_v2  ;;  %12057 = vmatpush3.bf16.msk.msra.mxu1 %vm12697_vm7, %v12055_v61 }
  0x5a   :  { %12058 = vmatprep.subr.bf16.mxu1 %v12379_v1 }
 0x117   :  { %v197_v13 = vpop.f32.mrb[0].mxu1 }
 0x118   :  { %v11294_v14 = vpop.f32.mrb[1].mxu1 }
 0x119   :  { %v12063_v14 = vpack.c.bf16 %v10686_v11, %v12386_v60 }
 0x11b   :  { %v275_v16 = vpop.f32.mrb[2].mxu1 }
 0x11c   :  { %v11301_v17 = vpop.f32.mrb[3].mxu1  ;;  %11303 = vmatpush3.msk.msra.mxu0 %vm285_vm11, %v275_v16 }
 0x11d   :  { %11305 = vmatmul.mubr.msk.f32.vlgmr.msra.gmra.mrb[0].mxu0 %vm281_vm12, %v10690_v15  ;;  %11307 = vmatprep.subr.mxu0 %v12380_v2 }
 0x11e   :  { %11308 = vmatpush3.msk.msra.mxu0 %vm285_vm11, %v197_v13  ;;  %11309 = vmatprep.mubr.msk.f32.mxu0 %vm12381_vm0, %v12380_v2 }
 0x11f   :  { %v508_v18 = vpop.f32.mrb[4].mxu1  ;;  %11319 = vmatprep.subr.mxu0 %v12380_v2 }
 0x120   :  { %v11318_v19 = vpop.f32.mrb[5].mxu1 }
 0x123   :  { %v660_v21 = vpop.f32.mrb[6].mxu1 }
 0x124   :  { %v11330_v22 = vpop.f32.mrb[7].mxu1 }
 0x125   :  { %11310 = vmatmul.mubr.msk.f32.vlgmr.msra.gmra.mrb[0].mxu0 %vm281_vm12, %v201_v20 }
 0x126   :  { %11320 = vmatpush3.msk.msra.mxu0 %vm285_vm11, %v508_v18  ;;  %11321 = vmatprep.mubr.msk.f32.mxu0 %vm12381_vm0, %v12380_v2 }
 0x127   :  { %v730_v23 = vpop.f32.mrb[8].mxu1  ;;  %11338 = vmatprep.subr.mxu0 %v12380_v2 }
 0x128   :  { %v11337_v24 = vpop.f32.mrb[9].mxu1 }
 0x12b   :  { %v946_v26 = vpop.f32.mrb[10].mxu1 }
 0x12c   :  { %v11354_v27 = vpop.f32.mrb[11].mxu1 }
 0x12d   :  { %11322 = vmatmul.mubr.msk.f32.vlgmr.msra.gmra.mrb[0].mxu0 %vm281_vm12, %v10700_v25 }
 0x12e   :  { %11339 = vmatpush3.msk.msra.mxu0 %vm285_vm11, %v730_v23  ;;  %11340 = vmatprep.mubr.msk.f32.mxu0 %vm12381_vm0, %v12380_v2 }
 0x12f   :  { %11343 = vmatprep.subr.mxu0 %v12380_v2 }
 0x131   :  { %11341 = vmatmul.mubr.msk.f32.vlgmr.msra.gmra.mrb[2].mxu0 %vm281_vm12, %v10690_v15 }
 0x132   :  { %11344 = vmatpush3.msk.msra.mxu0 %vm285_vm11, %v660_v21  ;;  %11345 = vmatprep.mubr.msk.f32.mxu0 %vm12381_vm0, %v12380_v2  ;;  %v10726_v21 = vld [vmem:[%s13774_s4 + $0x8] sm:$0xff] }
 0x133   :  { %11355 = vmatprep.subr.mxu0 %v12380_v2 }
 0x139   :  { %11346 = vmatmul.mubr.msk.f32.vlgmr.msra.gmra.mrb[2].mxu0 %vm281_vm12, %v201_v20 }
 0x13a   :  { %11356 = vmatpush3.msk.msra.mxu0 %vm285_vm11, %v946_v26  ;;  %11357 = vmatprep.mubr.msk.f32.mxu0 %vm12381_vm0, %v12380_v2  ;;  %v1156_v26 = vld [vmem:[%s13774_s4] sm:$0xff] }
 0x13b   :  { %11374 = vmatprep.subr.mxu0 %v12380_v2 }
 0x141   :  { %11358 = vmatmul.mubr.msk.f32.vlgmr.msra.gmra.mrb[2].mxu0 %vm281_vm12, %v10700_v25  ;;  %vm2085_vm12 = vcmp.eq.s32.totalorder %v12566_v5, %v1999_v0 }
 0x142   :  { %11376 = vmatprep.mubr.msk.f32.mxu0 %vm12381_vm0, %v12380_v2 }
 0x200   :  { %v586_v28 = vpop.f32.mrb[0].mxu0 }
 0x201   :  { %v11323_v29 = vpop.f32.mrb[1].mxu0  ;;  %v1025_v30 = vsel %vm1024_vm13, %v586_v28, 0.0  ;;  %v1028_v31 = vmul.f32 %v586_v28, %v586_v28 }
 0x202   :  { %1026 = vadd.xlane.f32.xlu0 %v1025_v30 }
 0x203   :  { %v1029_v32 = vsel %vm1024_vm13, %v1028_v31, 0.0  ;;  %v10732_v31 = vld [vmem:[%s13774_s4 + $0x10] sm:$0xff] }
 0x204   :  { %1030 = vadd.xlane.f32.xlu1 %v1029_v32 }
 0x214   :  { %v1019_v33 = vpop.f32.mrb[2].mxu0 }
 0x215   :  { %v11359_v34 = vpop.f32.mrb[3].mxu0  ;;  %v1032_v35 = vsel %vm1024_vm13, %v1019_v33, 0.0  ;;  %v1036_v36 = vmul.f32 %v1019_v33, %v1019_v33 }
 0x216   :  { %1033 = vadd.xlane.f32.xlu0 %v1032_v35 }
 0x217   :  { %v1037_v37 = vsel %vm1024_vm13, %v1036_v36, 0.0 }
 0x218   :  { %1038 = vadd.xlane.f32.xlu1 %v1037_v37 }
 0x28f   :  { %v1027_v39 = vpop.xlane.xlu0 %1026 }
 0x291   :  { %v1031_v40 = vpop.xlane.xlu1 %1030 }
 0x2a3   :  { %v1034_v41 = vpop.xlane.xlu0 %1033 }
 0x2a4   :  { %v1035_v42 = vadd.f32 %v1034_v41, %v1027_v39 }
 0x2a5   :  { %v1039_v43 = vpop.xlane.xlu1 %1038 }
 0x2a6   :  { %v1041_v44 = vmul.f32 0.035714287, %v1035_v42  ;;  %v1040_v45 = vadd.f32 %v1039_v43, %v1031_v40 }
 0x2a8   :  { %v1043_v46 = vmul.f32 %v1041_v44, %v1041_v44  ;;  %v1042_v47 = vmul.f32 0.035714287, %v1040_v45 }
 0x2aa   :  { %v1044_v48 = vsub.f32 %v1042_v47, %v1043_v46 }
 0x2ac   :  { %v1045_v49 = vmax.f32 %v1044_v48, 0.0 }
 0x2ae   :  { %v1046_v50 = vadd.f32 1e-05, %v1045_v49 }
 0x2b0   :  { %12277 = vrsqrt.f32 %v1046_v50 }
 0x2ba   :  { %v12278_v52 = vpop.eup %12277 }
 0x2bb   :  { %v1048_v53 = vmul.f32 %v12278_v52, %v115_v51 }
 0x2bd   :  { %1057 = vperm.xlu1 %12265, %v1048_v53   ;;  %v1049_v54 = vmul.f32 %v1048_v53, %v1041_v44 }
 0x2bf   :  { %1051 = vrot.lane.b32.xlu0 %v1049_v54, %s12384_s10 }
 0x2c1   :  { %12266 = vset.pattern.permute.xlu1 %v12385_v55 }
 0x331   :  { %v1052_v57 = vpop.permute.xlu0 %1051 }
 0x332   :  { %v1054_v58 = vsub.f32 %v115_v51, %v1052_v57 }
 0x334   :  { %1063 = vperm.xlu1 %12266, %v1054_v58  }
 0x33c   :  { %v1058_v63 = vpop.permute.xlu1 %1057 }
 0x33d   :  { %v1060_v7 = vmul.f32 %v1058_v63, %v586_v28  ;;  %v1067_v16 = vmul.f32 %v1058_v63, %v1019_v33 }
 0x3b3   :  { %v1064_v8 = vpop.permute.xlu1 %1063 }
 0x3b4   :  { %v1066_v9 = vadd.f32 %v1064_v8, %v1060_v7  ;;  %v1068_v17 = vadd.f32 %v1067_v16, %v1064_v8  ;;  %v2000_v7 = vadd.s32 4294967295, %v1999_v0  ;;  %v10752_v16 = vsel %vm2085_vm12, 1.0, %v12380_v2 }
 0x3b6   :  { %v1069_v12 = vmax.f32 %v1066_v9, 0.0  ;;  %v1070_v18 = vmax.f32 %v1068_v17, 0.0  ;;  %vm2002_vm9 = vcmp.eq.s32.totalorder %v12566_v5, %v2000_v7  ;;  %vm2001_vm10 = vcmp.eq.s32.totalorder %v12557_v3, %v2000_v7 }
 0x3b7   :  { %vm12815_vm11 = vmpackc.low %vm1082_vm5, %vm2001_vm10 }
 0x3b8   :  { %11365 = vmatmul.mubr.msk.f32.vlgmr.msra.gmra.mrb[12].mxu1 %vm1024_vm13, %v1069_v12 }
 0x3b9   :  { %12061 = vmatpush3.bf16.msk.msra.mxu1 %vm12717_vm8, %v12059_v10  ;;  %11371 = vmatprep.mubr.msk.f32.mxu1 %vm12381_vm0, %v12380_v2 }
 0x3ba   :  { %12062 = vmatprep.subr.bf16.mxu1 %v12379_v1 }
 0x3bc   :  { %11372 = vmatmul.mubr.msk.f32.vlgmr.msra.gmra.mrb[14].mxu1 %vm1024_vm13, %v1069_v12 }
 0x3bd   :  { %12065 = vmatpush3.bf16.msk.msra.mxu1 %vm12732_vm2, %v12063_v14  ;;  %11388 = vmatprep.mubr.msk.f32.mxu1 %vm12381_vm0, %v12380_v2 }
 0x3be   :  { %12066 = vmatprep.subr.bf16.mxu1 %v12379_v1 }
 0x3c0   :  { %11389 = vmatmul.mubr.msk.f32.vlgmr.msra.gmra.mrb[16].mxu1 %vm1024_vm13, %v1069_v12 }
 0x3c1   :  { %12069 = vmatpush3.bf16.msk.msra.mxu1 %vm12697_vm7, %v12055_v61  ;;  %11400 = vmatprep.mubr.msk.f32.mxu1 %vm12381_vm0, %v12380_v2 }
 0x3c2   :  { %12070 = vmatprep.subr.bf16.mxu1 %v12379_v1 }
 0x3c4   :  { %11401 = vmatmul.mubr.msk.f32.vlgmr.msra.gmra.mrb[18].mxu1 %vm1024_vm13, %v1070_v18 }
 0x3c5   :  { %12073 = vmatpush3.bf16.msk.msra.mxu1 %vm12717_vm8, %v12059_v10  ;;  %11407 = vmatprep.mubr.msk.f32.mxu1 %vm12381_vm0, %v12380_v2  ;;  %v10747_v10 = vsel %vm2002_vm9, 1.0, %v12380_v2  ;;  %vm12828_vm8 = vmpackc.low %vm1082_vm5, %vm2084_vm14 }
 0x3c6   :  { %12074 = vmatprep.subr.bf16.mxu1 %v12379_v1  ;;  %v12079_v11 = vpack.c.bf16 %v10747_v10, %v12386_v60 }
 0x3c8   :  { %11408 = vmatmul.mubr.msk.f32.vlgmr.msra.gmra.mrb[20].mxu1 %vm1024_vm13, %v1070_v18 }
 0x3c9   :  { %12077 = vmatpush3.bf16.msk.msra.mxu1 %vm12732_vm2, %v12063_v14  ;;  %11424 = vmatprep.mubr.msk.f32.mxu1 %vm12381_vm0, %v12380_v2  ;;  %v2311_v14 = vadd.s32 1, %v1999_v0 }
 0x3ca   :  { %12078 = vmatprep.subr.bf16.mxu1 %v12379_v1 }
 0x3cb   :  { %vm2313_vm7 = vcmp.eq.s32.totalorder %v12566_v5, %v2311_v14  ;;  %vm2312_vm2 = vcmp.eq.s32.totalorder %v12557_v3, %v2311_v14 }
 0x3cc   :  { %11425 = vmatmul.mubr.msk.f32.vlgmr.msra.gmra.mrb[22].mxu1 %vm1024_vm13, %v1070_v18  ;;  %v2467_v18 = vadd.s32 2, %v1999_v0  ;;  %vm12843_vm10 = vmpackc.low %vm1082_vm5, %vm2312_vm2 }
 0x3cd   :  { %11436 = vmatprep.mubr.msk.f32.mxu1 %vm12381_vm0, %v12380_v2  ;;  %12081 = vmatpush3.bf16.msk.msra.mxu1 %vm12815_vm11, %v12079_v11 }
 0x3ce   :  { %12082 = vmatprep.subr.bf16.mxu1 %v12379_v1  ;;  %vm2469_vm9 = vcmp.eq.s32.totalorder %v12566_v5, %v2467_v18  ;;  %vm2468_vm12 = vcmp.eq.s32.totalorder %v12557_v3, %v2467_v18 }
 0x3cf   :  { %vm12857_vm14 = vmpackc.low %vm1082_vm5, %vm2468_vm12 }
 0x48b   :  { %v1152_v19 = vpop.f32.mrb[12].mxu1 }
 0x48c   :  { %v11366_v20 = vpop.f32.mrb[13].mxu1 }
 0x48d   :  { %v12083_v20 = vpack.c.bf16 %v10752_v16, %v12386_v60 }
 0x48f   :  { %v1226_v22 = vpop.f32.mrb[14].mxu1 }
 0x490   :  { %v11373_v23 = vpop.f32.mrb[15].mxu1  ;;  %11375 = vmatpush3.msra.mxu0 %v1226_v22 }
 0x491   :  { %11377 = vmatmul.mubr.msk.f32.vlgmr.msra.gmra.mrb[4].mxu0 %vm1232_vm4, %v10726_v21  ;;  %11379 = vmatprep.subr.mxu0 %v12380_v2  ;;  %v10760_v23 = vsel %vm2313_vm7, 1.0, %v12380_v2  ;;  %vm3239_vm7 = vcmask 1046528  }
 0x492   :  { %11380 = vmatpush3.msra.mxu0 %v1152_v19  ;;  %11381 = vmatprep.mubr.msk.f32.mxu0 %vm12381_vm0, %v12380_v2 }
 0x493   :  { %v1448_v24 = vpop.f32.mrb[16].mxu1  ;;  %11391 = vmatprep.subr.mxu0 %v12380_v2 }
 0x494   :  { %v11390_v25 = vpop.f32.mrb[17].mxu1 }
 0x497   :  { %v1597_v27 = vpop.f32.mrb[18].mxu1 }
 0x498   :  { %v11402_v28 = vpop.f32.mrb[19].mxu1 }
 0x499   :  { %11382 = vmatmul.mubr.msk.f32.vlgmr.msra.gmra.mrb[4].mxu0 %vm1232_vm4, %v1156_v26 }
 0x49a   :  { %11392 = vmatpush3.msra.mxu0 %v1448_v24  ;;  %11393 = vmatprep.mubr.msk.f32.mxu0 %vm12381_vm0, %v12380_v2  ;;  %v12087_v24 = vpack.c.bf16 %v10760_v23, %v12386_v60 }
 0x49b   :  { %v1667_v29 = vpop.f32.mrb[20].mxu1  ;;  %11410 = vmatprep.subr.mxu0 %v12380_v2 }
 0x49c   :  { %v11409_v30 = vpop.f32.mrb[21].mxu1 }
 0x49f   :  { %v1877_v32 = vpop.f32.mrb[22].mxu1 }
 0x4a0   :  { %v11426_v33 = vpop.f32.mrb[23].mxu1 }
 0x4a1   :  { %11394 = vmatmul.mubr.msk.f32.vlgmr.msra.gmra.mrb[4].mxu0 %vm1232_vm4, %v10732_v31 }
 0x4a2   :  { %11411 = vmatpush3.msra.mxu0 %v1667_v29  ;;  %11412 = vmatprep.mubr.msk.f32.mxu0 %vm12381_vm0, %v12380_v2 }
 0x4a3   :  { %11415 = vmatprep.subr.mxu0 %v12380_v2 }
 0x4a5   :  { %11413 = vmatmul.mubr.msk.f32.vlgmr.msra.gmra.mrb[6].mxu0 %vm1232_vm4, %v10726_v21 }
 0x4a6   :  { %11416 = vmatpush3.msra.mxu0 %v1597_v27  ;;  %11417 = vmatprep.mubr.msk.f32.mxu0 %vm12381_vm0, %v12380_v2 }
 0x4a7   :  { %11427 = vmatprep.subr.mxu0 %v12380_v2 }
 0x4ad   :  { %11418 = vmatmul.mubr.msk.f32.vlgmr.msra.gmra.mrb[6].mxu0 %vm1232_vm4, %v1156_v26  ;;  %v10767_v26 = vsel %vm2469_vm9, 1.0, %v12380_v2 }
 0x4ae   :  { %11428 = vmatpush3.msra.mxu0 %v1877_v32  ;;  %11429 = vmatprep.mubr.msk.f32.mxu0 %vm12381_vm0, %v12380_v2  ;;  %v12091_v27 = vpack.c.bf16 %v10767_v26, %v12386_v60  ;;  %v12951_v26 = vsel %vm1073_vm15, 1.0, %v12380_v2 }
 0x4af   :  { %11446 = vmatprep.subr.mxu0 %v12380_v2 }
 0x4b5   :  { %11430 = vmatmul.mubr.msk.f32.vlgmr.msra.gmra.mrb[6].mxu0 %vm1232_vm4, %v10732_v31 }
 0x4b6   :  { %11448 = vmatprep.mubr.msk.f32.mxu0 %vm12381_vm0, %v12380_v2 }
 0x574   :  { %v1523_v34 = vpop.f32.mrb[4].mxu0 }
 0x575   :  { %v11395_v35 = vpop.f32.mrb[5].mxu0  ;;  %v1952_v36 = vsel %vm1024_vm13, %v1523_v34, 0.0  ;;  %v1955_v37 = vmul.f32 %v1523_v34, %v1523_v34 }
 0x576   :  { %1953 = vadd.xlane.f32.xlu1 %v1952_v36 }
 0x577   :  { %v1956_v39 = vsel %vm1024_vm13, %v1955_v37, 0.0 }
 0x578   :  { %1957 = vadd.xlane.f32.xlu0 %v1956_v39 }
 0x588   :  { %v12798_v40 = vpop.f32.mrb[6].mxu0 }
 0x589   :  { %v11431_v41 = vpop.f32.mrb[7].mxu0  ;;  %v1959_v42 = vsel %vm1024_vm13, %v12798_v40, 0.0  ;;  %v1963_v43 = vmul.f32 %v12798_v40, %v12798_v40 }
 0x58a   :  { %1960 = vadd.xlane.f32.xlu0 %v1959_v42 }
 0x58b   :  { %v1964_v44 = vsel %vm1024_vm13, %v1963_v43, 0.0 }
 0x58e   :  { %1965 = vadd.xlane.f32.xlu0 %v1964_v44 }
 0x603   :  { %v1954_v46 = vpop.xlane.xlu1 %1953 }
 0x605   :  { %v1958_v45 = vpop.xlane.xlu0 %1957 }
 0x617   :  { %v1961_v47 = vpop.xlane.xlu0 %1960 }
 0x618   :  { %v1962_v48 = vadd.f32 %v1961_v47, %v1954_v46 }
 0x61a   :  { %v1968_v49 = vmul.f32 0.035714287, %v1962_v48 }
 0x61b   :  { %v1966_v50 = vpop.xlane.xlu0 %1965 }
 0x61c   :  { %v1967_v51 = vadd.f32 %v1966_v50, %v1958_v45  ;;  %v1970_v52 = vmul.f32 %v1968_v49, %v1968_v49  ;;  %v10764_v45 = vld [vmem:[%s13784_s28 + $0x10] sm:$0xff]  ;;  %v10771_v50 = vld [vmem:[%s13784_s28 + $0x18] sm:$0xff] }
 0x61e   :  { %v1969_v53 = vmul.f32 0.035714287, %v1967_v51 }
 0x620   :  { %v1971_v54 = vsub.f32 %v1969_v53, %v1970_v52 }
 0x622   :  { %v1972_v57 = vmax.f32 %v1971_v54, 0.0 }
 0x624   :  { %v1973_v58 = vadd.f32 1e-05, %v1972_v57 }
 0x626   :  { %12279 = vrsqrt.f32 %v1973_v58 }
 0x630   :  { %v12280_v61 = vpop.eup %12279 }
 0x631   :  { %v1975_v62 = vmul.f32 %v12280_v61, %v1071_v59 }
 0x633   :  { %1984 = vperm.xlu0 %12267, %v1975_v62   ;;  %v1976_v63 = vmul.f32 %v1975_v62, %v1968_v49 }
 0x635   :  { %1978 = vrot.lane.b32.xlu1 %v1976_v63, %s12384_s10 }
 0x6a7   :  { %v1979_v8 = vpop.permute.xlu1 %1978 }
 0x6a8   :  { %v1981_v9 = vsub.f32 %v1071_v59, %v1979_v8 }
 0x6aa   :  { %1990 = vperm.xlu1 %12266, %v1981_v9  }
 0x6b2   :  { %v1985_v13 = vpop.permute.xlu0 %1984 }
 0x6b3   :  { %v1987_v15 = vmul.f32 %v1985_v13, %v1523_v34  ;;  %v1994_v29 = vmul.f32 %v1985_v13, %v12798_v40  ;;  %v10756_v34 = vld [vmem:[%s13784_s28 + $0x8] sm:$0xff]  ;;  %v2083_v40 = vld [vmem:[%s13784_s28] sm:$0xff] }
 0x729   :  { %v1991_v17 = vpop.permute.xlu1 %1990 }
 0x72a   :  { %v1993_v19 = vadd.f32 %v1991_v17, %v1987_v15  ;;  %v1995_v30 = vadd.f32 %v1994_v29, %v1991_v17 }
 0x72c   :  { %v1996_v21 = vmax.f32 %v1993_v19, 0.0  ;;  %v1997_v31 = vmax.f32 %v1995_v30, 0.0 }
 0x72e   :  { %11437 = vmatmul.mubr.msk.f32.vlgmr.msra.gmra.mrb[24].mxu1 %vm1024_vm13, %v1996_v21 }
 0x72f   :  { %12085 = vmatpush3.bf16.msk.msra.mxu1 %vm12828_vm8, %v12083_v20  ;;  %11443 = vmatprep.mubr.msk.f32.mxu1 %vm12381_vm0, %v12380_v2 }
 0x730   :  { %12086 = vmatprep.subr.bf16.mxu1 %v12379_v1 }
 0x732   :  { %11444 = vmatmul.mubr.msk.f32.vlgmr.msra.gmra.mrb[26].mxu1 %vm1024_vm13, %v1996_v21 }
 0x733   :  { %12089 = vmatpush3.bf16.msk.msra.mxu1 %vm12843_vm10, %v12087_v24  ;;  %11460 = vmatprep.mubr.msk.f32.mxu1 %vm12381_vm0, %v12380_v2 }
 0x734   :  { %12090 = vmatprep.subr.bf16.mxu1 %v12379_v1 }
 0x736   :  { %11461 = vmatmul.mubr.msk.f32.vlgmr.msra.gmra.mrb[28].mxu1 %vm1024_vm13, %v1996_v21 }
 0x737   :  { %12093 = vmatpush3.bf16.msk.msra.mxu1 %vm12857_vm14, %v12091_v27  ;;  %11472 = vmatprep.mubr.msk.f32.mxu1 %vm12381_vm0, %v12380_v2 }
 0x738   :  { %12094 = vmatprep.subr.bf16.mxu1 %v12379_v1 }
 0x73a   :  { %11473 = vmatmul.mubr.msk.f32.vlgmr.msra.gmra.mrb[30].mxu1 %vm1024_vm13, %v1996_v21 }
 0x73b   :  { %12097 = vmatpush3.bf16.msk.msra.mxu1 %vm12815_vm11, %v12079_v11  ;;  %11484 = vmatprep.mubr.msk.f32.mxu1 %vm12381_vm0, %v12380_v2  ;;  %vm3188_vm11 = vcmask 56320  }
 0x73c   :  { %12098 = vmatprep.subr.bf16.mxu1 %v12379_v1 }
 0x73e   :  { %11485 = vmatmul.mubr.msk.f32.vlgmr.msra.gmra.mrb[32].mxu1 %vm1024_vm13, %v1997_v31 }
 0x73f   :  { %12101 = vmatpush3.bf16.msk.msra.mxu1 %vm12828_vm8, %v12083_v20  ;;  %11491 = vmatprep.mubr.msk.f32.mxu1 %vm12381_vm0, %v12380_v2  ;;  %v1998_v20 = vld [vmem:[%s13785_s3] sm:$0xff] }
 0x740   :  { %12102 = vmatprep.subr.bf16.mxu1 %v12379_v1 }
 0x742   :  { %11492 = vmatmul.mubr.msk.f32.vlgmr.msra.gmra.mrb[34].mxu1 %vm1024_vm13, %v1997_v31 }
 0x743   :  { %12105 = vmatpush3.bf16.msk.msra.mxu1 %vm12843_vm10, %v12087_v24  ;;  %11508 = vmatprep.mubr.msk.f32.mxu1 %vm12381_vm0, %v12380_v2 }
 0x744   :  { %12106 = vmatprep.subr.bf16.mxu1 %v12379_v1 }
 0x746   :  { %11509 = vmatmul.mubr.msk.f32.vlgmr.msra.gmra.mrb[36].mxu1 %vm1024_vm13, %v1997_v31 }
 0x747   :  { %12109 = vmatpush3.bf16.msk.msra.mxu1 %vm12857_vm14, %v12091_v27  ;;  %11520 = vmatprep.mubr.msk.f32.mxu1 %vm12381_vm0, %v12380_v2  ;;  %vm8887_vm14 = vcmp.eq.s32.totalorder %v12559_v4, %v12566_v5 }
 0x748   :  { %11528 = vmatprep.subr.mxu1 %v12380_v2 }
 0x74a   :  { %11521 = vmatmul.mubr.msk.f32.vlgmr.msra.gmra.mrb[38].mxu1 %vm1024_vm13, %v1997_v31  ;;  %v12960_v31 = vsel %vm121_vm1, 1.0, %v12380_v2  ;;  %vm5386_vm1 = vcmp.eq.s32.totalorder %v12559_v4, %v12557_v3 }
 0x74b   :  { %11530 = vmatprep.mubr.msk.f32.mxu1 %vm12381_vm0, %v12380_v2  ;;  %11529 = vmatpush3.msk.msra.mxu1 %vm3239_vm7, %v12951_v26 }
 0x74c   :  { %11533 = vmatprep.subr.mxu1 %v12380_v2 }
 0x801   :  { %v2079_v32 = vpop.f32.mrb[24].mxu1 }
 0x802   :  { %v11438_v33 = vpop.f32.mrb[25].mxu1 }
 0x805   :  { %v2159_v35 = vpop.f32.mrb[26].mxu1 }
 0x806   :  { %v11445_v36 = vpop.f32.mrb[27].mxu1  ;;  %11447 = vmatpush3.msra.mxu0 %v2159_v35 }
 0x807   :  { %11449 = vmatmul.mubr.msk.f32.vlgmr.msra.gmra.mrb[8].mxu0 %vm1232_vm4, %v10756_v34  ;;  %11451 = vmatprep.subr.mxu0 %v12380_v2 }
 0x808   :  { %11452 = vmatpush3.msra.mxu0 %v2079_v32  ;;  %11453 = vmatprep.mubr.msk.f32.mxu0 %vm12381_vm0, %v12380_v2 }
 0x809   :  { %v2387_v37 = vpop.f32.mrb[28].mxu1  ;;  %11463 = vmatprep.subr.mxu0 %v12380_v2 }
 0x80a   :  { %v11462_v39 = vpop.f32.mrb[29].mxu1 }
 0x80d   :  { %v2543_v41 = vpop.f32.mrb[30].mxu1 }
 0x80e   :  { %v11474_v42 = vpop.f32.mrb[31].mxu1 }
 0x80f   :  { %11454 = vmatmul.mubr.msk.f32.vlgmr.msra.gmra.mrb[8].mxu0 %vm1232_vm4, %v2083_v40 }
 0x810   :  { %11464 = vmatpush3.msra.mxu0 %v2387_v37  ;;  %11465 = vmatprep.mubr.msk.f32.mxu0 %vm12381_vm0, %v12380_v2  ;;  %v10793_v37 = vld [vmem:[%s13786_s30 + $0x8] sm:$0xff] }
 0x811   :  { %v2692_v43 = vpop.f32.mrb[32].mxu1  ;;  %11475 = vmatprep.subr.mxu0 %v12380_v2 }
 0x812   :  { %v11486_v44 = vpop.f32.mrb[33].mxu1 }
 0x815   :  { %v2762_v46 = vpop.f32.mrb[34].mxu1 }
 0x816   :  { %v11493_v47 = vpop.f32.mrb[35].mxu1 }
 0x817   :  { %11466 = vmatmul.mubr.msk.f32.vlgmr.msra.gmra.mrb[8].mxu0 %vm1232_vm4, %v10764_v45 }
 0x818   :  { %11476 = vmatpush3.msra.mxu0 %v2543_v41  ;;  %11477 = vmatprep.mubr.msk.f32.mxu0 %vm12381_vm0, %v12380_v2 }
 0x819   :  { %v2972_v48 = vpop.f32.mrb[36].mxu1  ;;  %11494 = vmatprep.subr.mxu0 %v12380_v2 }
 0x81a   :  { %v11510_v49 = vpop.f32.mrb[37].mxu1 }
 0x81d   :  { %v3113_v51 = vpop.f32.mrb[38].mxu1 }
 0x81e   :  { %v11522_v52 = vpop.f32.mrb[39].mxu1 }
 0x81f   :  { %11478 = vmatmul.mubr.msk.f32.vlgmr.msra.gmra.mrb[8].mxu0 %vm1232_vm4, %v10771_v50 }
 0x820   :  { %11495 = vmatpush3.msra.mxu0 %v2762_v46  ;;  %11496 = vmatprep.mubr.msk.f32.mxu0 %vm12381_vm0, %v12380_v2 }
 0x821   :  { %11499 = vmatprep.subr.mxu0 %v12380_v2 }
 0x823   :  { %11497 = vmatmul.mubr.msk.f32.vlgmr.msra.gmra.mrb[10].mxu0 %vm1232_vm4, %v10756_v34 }
 0x824   :  { %11500 = vmatpush3.msra.mxu0 %v2692_v43  ;;  %11501 = vmatprep.mubr.msk.f32.mxu0 %vm12381_vm0, %v12380_v2  ;;  %v3313_v43 = vld [vmem:[%s13786_s30] sm:$0xff] }
 0x825   :  { %11511 = vmatprep.subr.mxu0 %v12380_v2 }
 0x82b   :  { %11502 = vmatmul.mubr.msk.f32.vlgmr.msra.gmra.mrb[10].mxu0 %vm1232_vm4, %v2083_v40 }
 0x82c   :  { %11512 = vmatpush3.msra.mxu0 %v2972_v48  ;;  %11513 = vmatprep.mubr.msk.f32.mxu0 %vm12381_vm0, %v12380_v2  ;;  %v10798_v48 = vld [vmem:[%s13786_s30 + $0x10] sm:$0xff] }
 0x82d   :  { %11523 = vmatprep.subr.mxu0 %v12380_v2 }
 0x833   :  { %11514 = vmatmul.mubr.msk.f32.vlgmr.msra.gmra.mrb[10].mxu0 %vm1232_vm4, %v10764_v45 }
 0x834   :  { %11524 = vmatpush3.msra.mxu0 %v3113_v51  ;;  %11525 = vmatprep.mubr.msk.f32.mxu0 %vm12381_vm0, %v12380_v2 }
 0x835   :  { %11538 = vmatprep.subr.mxu0 %v12380_v2 }
 0x83b   :  { %11526 = vmatmul.mubr.msk.f32.vlgmr.msra.gmra.mrb[10].mxu0 %vm1232_vm4, %v10771_v50 }
 0x83c   :  { %11540 = vmatprep.mubr.msk.f32.mxu0 %vm12381_vm0, %v12380_v2 }
 0x8f2   :  { %v2618_v53 = vpop.f32.mrb[8].mxu0 }
 0x8f3   :  { %v11479_v54 = vpop.f32.mrb[9].mxu0  ;;  %v3189_v57 = vsel %vm3188_vm11, %v2618_v53, 0.0  ;;  %v3192_v58 = vmul.f32 %v2618_v53, %v2618_v53 }
 0x8f4   :  { %3190 = vadd.xlane.f32.xlu1 %v3189_v57 }
 0x8f5   :  { %v3193_v59 = vsel %vm3188_vm11, %v3192_v58, 0.0 }
 0x8f8   :  { %3194 = vadd.xlane.f32.xlu1 %v3193_v59 }
 0x90e   :  { %v3183_v61 = vpop.f32.mrb[10].mxu0 }
 0x90f   :  { %v11527_v62 = vpop.f32.mrb[11].mxu0  ;;  %v3196_v63 = vsel %vm3188_vm11, %v3183_v61, 0.0  ;;  %v3200_v0 = vmul.f32 %v3183_v61, %v3183_v61 }
 0x910   :  { %3197 = vadd.xlane.f32.xlu0 %v3196_v63 }
 0x911   :  { %v3201_v7 = vsel %vm3188_vm11, %v3200_v0, 0.0 }
 0x912   :  { %3202 = vadd.xlane.f32.xlu1 %v3201_v7 }
 0x981   :  { %v3191_v8 = vpop.xlane.xlu1 %3190 }
 0x985   :  { %v3195_v9 = vpop.xlane.xlu1 %3194 }
 0x99d   :  { %v3198_v10 = vpop.xlane.xlu0 %3197 }
 0x99e   :  { %v3199_v11 = vadd.f32 %v3198_v10, %v3191_v8 }
 0x99f   :  { %v3203_v12 = vpop.xlane.xlu1 %3202 }
 0x9a0   :  { %v3205_v13 = vmul.f32 0.071428575, %v3199_v11  ;;  %v3204_v14 = vadd.f32 %v3203_v12, %v3195_v9 }
 0x9a2   :  { %v3207_v15 = vmul.f32 %v3205_v13, %v3205_v13  ;;  %v3206_v16 = vmul.f32 0.071428575, %v3204_v14 }
 0x9a4   :  { %v3208_v17 = vsub.f32 %v3206_v16, %v3207_v15 }
 0x9a6   :  { %v3209_v18 = vmax.f32 %v3208_v17, 0.0 }
 0x9a8   :  { %v3210_v19 = vadd.f32 1e-05, %v3209_v18  ;;  %v3235_v18 = vld [vmem:[%s13787_s9] sm:$0xff] }
 0x9aa   :  { %12281 = vrsqrt.f32 %v3210_v19 }
 0x9b4   :  { %v12282_v21 = vpop.eup %12281 }
 0x9b5   :  { %v3212_v22 = vmul.f32 %v12282_v21, %v1998_v20 }
 0x9b7   :  { %3221 = vperm.xlu0 %12267, %v3212_v22   ;;  %v3213_v23 = vmul.f32 %v3212_v22, %v3205_v13 }
 0x9b9   :  { %3215 = vrot.lane.b32.xlu1 %v3213_v23, %s12384_s10 }
 0xa2b   :  { %v3216_v24 = vpop.permute.xlu1 %3215 }
 0xa2c   :  { %v3218_v25 = vsub.f32 %v1998_v20, %v3216_v24 }
 0xa2e   :  { %3227 = vperm.xlu1 %12266, %v3218_v25  }
 0xa36   :  { %v3222_v27 = vpop.permute.xlu0 %3221 }
 0xa37   :  { %v3224_v28 = vmul.f32 %v3222_v27, %v2618_v53  ;;  %v3231_v33 = vmul.f32 %v3222_v27, %v3183_v61 }
 0xaad   :  { %v3228_v29 = vpop.permute.xlu1 %3227 }
 0xaae   :  { %v3230_v30 = vadd.f32 %v3228_v29, %v3224_v28  ;;  %v3232_v34 = vadd.f32 %v3231_v33, %v3228_v29 }
 0xab0   :  { %v3233_v32 = vmax.f32 %v3230_v30, 0.0  ;;  %v3234_v6 = vmax.f32 %v3232_v34, 0.0 }
 0xab2   :  { %11531 = vmatmul.mubr.msk.f32.vlgmr.msra.gmra.mrb[40].mxu1 %vm3188_vm11, %v3233_v32 }
 0xab3   :  { %11534 = vmatpush3.msk.msra.mxu1 %vm3239_vm7, %v12960_v31  ;;  %11535 = vmatprep.mubr.msk.f32.mxu1 %vm12381_vm0, %v12380_v2 }
 0xab4   :  { %11548 = vmatprep.subr.mxu1 %v12380_v2 }
 0xab6   :  { %11536 = vmatmul.mubr.msk.f32.vlgmr.msra.gmra.mrb[42].mxu1 %vm3188_vm11, %v3233_v32 }
 0xab7   :  { %11549 = vmatpush3.msk.msra.mxu1 %vm3239_vm7, %v12972_v56  ;;  %11550 = vmatprep.mubr.msk.f32.mxu1 %vm12381_vm0, %v12380_v2 }
 0xab8   :  { %11558 = vmatprep.subr.mxu1 %v12380_v2 }
 0xaba   :  { %11551 = vmatmul.mubr.msk.f32.vlgmr.msra.gmra.mrb[44].mxu1 %vm3188_vm11, %v3233_v32 }
 0xabb   :  { %11559 = vmatpush3.msk.msra.mxu1 %vm3239_vm7, %v12951_v26  ;;  %11560 = vmatprep.mubr.msk.f32.mxu1 %vm12381_vm0, %v12380_v2 }
 0xabc   :  { %11563 = vmatprep.subr.mxu1 %v12380_v2 }
 0xabe   :  { %11561 = vmatmul.mubr.msk.f32.vlgmr.msra.gmra.mrb[46].mxu1 %vm3188_vm11, %v3234_v6 }
 0xabf   :  { %11564 = vmatpush3.msk.msra.mxu1 %vm3239_vm7, %v12960_v31  ;;  %11565 = vmatprep.mubr.msk.f32.mxu1 %vm12381_vm0, %v12380_v2 }
 0xac0   :  { %11578 = vmatprep.subr.mxu1 %v12380_v2 }
 0xac2   :  { %11566 = vmatmul.mubr.msk.f32.vlgmr.msra.gmra.mrb[48].mxu1 %vm3188_vm11, %v3234_v6 }
 0xac3   :  { %11579 = vmatpush3.msk.msra.mxu1 %vm3239_vm7, %v12972_v56  ;;  %11580 = vmatprep.mubr.msk.f32.mxu1 %vm12381_vm0, %v12380_v2 }
 0xac4   :  { %11588 = vmatprep.subr.mxu1 %v12380_v2 }
 0xac6   :  { %11581 = vmatmul.mubr.msk.f32.vlgmr.msra.gmra.mrb[50].mxu1 %vm3188_vm11, %v3234_v6  ;;  %v10813_v6 = vld [vmem:[%s13788_s2 + $0x8] sm:$0xff] }
 0xac7   :  { %11589 = vmatpush3.msk.msra.mxu1 %vm3239_vm7, %v12951_v26  ;;  %11590 = vmatprep.mubr.msk.f32.mxu1 %vm12381_vm0, %v12380_v2 }
 0xac8   :  { %11593 = vmatprep.subr.mxu1 %v12380_v2 }
 0xb85   :  { %v3309_v35 = vpop.f32.mrb[40].mxu1 }
 0xb86   :  { %v11532_v36 = vpop.f32.mrb[41].mxu1 }
 0xb89   :  { %v3383_v39 = vpop.f32.mrb[42].mxu1 }
 0xb8a   :  { %v11537_v40 = vpop.f32.mrb[43].mxu1  ;;  %11539 = vmatpush3.msra.mxu0 %v3383_v39  ;;  %v4228_v39 = vld [vmem:[%s13788_s2] sm:$0xff] }
 0xb8b   :  { %11541 = vmatmul.mubr.msk.f32.vlgmr.msra.gmra.mrb[12].mxu0 %vm1232_vm4, %v10793_v37  ;;  %11543 = vmatprep.subr.mxu0 %v12380_v2 }
 0xb8c   :  { %11544 = vmatpush3.msra.mxu0 %v3309_v35  ;;  %11545 = vmatprep.mubr.msk.f32.mxu0 %vm12381_vm0, %v12380_v2 }
 0xb8d   :  { %v3604_v41 = vpop.f32.mrb[44].mxu1  ;;  %11553 = vmatprep.subr.mxu0 %v12380_v2 }
 0xb8e   :  { %v11552_v42 = vpop.f32.mrb[45].mxu1 }
 0xb91   :  { %v3753_v44 = vpop.f32.mrb[46].mxu1 }
 0xb92   :  { %v11562_v45 = vpop.f32.mrb[47].mxu1 }
 0xb93   :  { %11546 = vmatmul.mubr.msk.f32.vlgmr.msra.gmra.mrb[12].mxu0 %vm1232_vm4, %v3313_v43 }
 0xb94   :  { %11554 = vmatpush3.msra.mxu0 %v3604_v41  ;;  %11555 = vmatprep.mubr.msk.f32.mxu0 %vm12381_vm0, %v12380_v2 }
 0xb95   :  { %v3823_v46 = vpop.f32.mrb[48].mxu1  ;;  %11568 = vmatprep.subr.mxu0 %v12380_v2 }
 0xb96   :  { %v11567_v47 = vpop.f32.mrb[49].mxu1 }
 0xb99   :  { %v4033_v49 = vpop.f32.mrb[50].mxu1 }
 0xb9a   :  { %v11582_v50 = vpop.f32.mrb[51].mxu1 }
 0xb9b   :  { %11556 = vmatmul.mubr.msk.f32.vlgmr.msra.gmra.mrb[12].mxu0 %vm1232_vm4, %v10798_v48 }
 0xb9c   :  { %11569 = vmatpush3.msra.mxu0 %v3823_v46  ;;  %11570 = vmatprep.mubr.msk.f32.mxu0 %vm12381_vm0, %v12380_v2 }
 0xb9d   :  { %11573 = vmatprep.subr.mxu0 %v12380_v2 }
 0xb9f   :  { %11571 = vmatmul.mubr.msk.f32.vlgmr.msra.gmra.mrb[14].mxu0 %vm1232_vm4, %v10793_v37 }
 0xba0   :  { %11574 = vmatpush3.msra.mxu0 %v3753_v44  ;;  %11575 = vmatprep.mubr.msk.f32.mxu0 %vm12381_vm0, %v12380_v2  ;;  %v10818_v44 = vld [vmem:[%s13788_s2 + $0x10] sm:$0xff] }
 0xba1   :  { %11583 = vmatprep.subr.mxu0 %v12380_v2 }
 0xba7   :  { %11576 = vmatmul.mubr.msk.f32.vlgmr.msra.gmra.mrb[14].mxu0 %vm1232_vm4, %v3313_v43 }
 0xba8   :  { %11584 = vmatpush3.msra.mxu0 %v4033_v49  ;;  %11585 = vmatprep.mubr.msk.f32.mxu0 %vm12381_vm0, %v12380_v2 }
 0xba9   :  { %11598 = vmatprep.subr.mxu0 %v12380_v2 }
 0xbaf   :  { %11586 = vmatmul.mubr.msk.f32.vlgmr.msra.gmra.mrb[14].mxu0 %vm1232_vm4, %v10798_v48 }
 0xbb0   :  { %11600 = vmatprep.mubr.msk.f32.mxu0 %vm12381_vm0, %v12380_v2 }
 0xc6e   :  { %v3679_v51 = vpop.f32.mrb[12].mxu0 }
 0xc6f   :  { %v11557_v52 = vpop.f32.mrb[13].mxu0  ;;  %v4108_v53 = vsel %vm3188_vm11, %v3679_v51, 0.0  ;;  %v4111_v54 = vmul.f32 %v3679_v51, %v3679_v51 }
 0xc70   :  { %4109 = vadd.xlane.f32.xlu1 %v4108_v53 }
 0xc71   :  { %v4112_v57 = vsel %vm3188_vm11, %v4111_v54, 0.0 }
 0xc74   :  { %4113 = vadd.xlane.f32.xlu1 %v4112_v57 }
 0xc82   :  { %v4103_v58 = vpop.f32.mrb[14].mxu0 }
 0xc83   :  { %v11587_v59 = vpop.f32.mrb[15].mxu0  ;;  %v4115_v61 = vsel %vm3188_vm11, %v4103_v58, 0.0  ;;  %v4119_v62 = vmul.f32 %v4103_v58, %v4103_v58 }
 0xc84   :  { %4116 = vadd.xlane.f32.xlu0 %v4115_v61 }
 0xc85   :  { %v4120_v63 = vsel %vm3188_vm11, %v4119_v62, 0.0 }
 0xc86   :  { %4121 = vadd.xlane.f32.xlu1 %v4120_v63 }
 0xcfd   :  { %v4110_v0 = vpop.xlane.xlu1 %4109 }
 0xd01   :  { %v4114_v7 = vpop.xlane.xlu1 %4113 }
 0xd11   :  { %v4117_v8 = vpop.xlane.xlu0 %4116 }
 0xd12   :  { %v4118_v9 = vadd.f32 %v4117_v8, %v4110_v0 }
 0xd13   :  { %v4122_v10 = vpop.xlane.xlu1 %4121 }
 0xd14   :  { %v4124_v11 = vmul.f32 0.071428575, %v4118_v9  ;;  %v4123_v12 = vadd.f32 %v4122_v10, %v4114_v7 }
 0xd16   :  { %v4126_v13 = vmul.f32 %v4124_v11, %v4124_v11  ;;  %v4125_v14 = vmul.f32 0.071428575, %v4123_v12 }
 0xd18   :  { %v4127_v15 = vsub.f32 %v4125_v14, %v4126_v13  ;;  %v4154_v13 = vld [vmem:[%s13789_s0] sm:$0xff] }
 0xd1a   :  { %v4128_v16 = vmax.f32 %v4127_v15, 0.0 }
 0xd1c   :  { %v4129_v17 = vadd.f32 1e-05, %v4128_v16 }
 0xd1e   :  { %12283 = vrsqrt.f32 %v4129_v17  ;;  %v5063_v17 = vld [vmem:[%s13724_s12] sm:$0xff] }
 0xd28   :  { %v12284_v19 = vpop.eup %12283 }
 0xd29   :  { %v4131_v20 = vmul.f32 %v12284_v19, %v3235_v18 }
 0xd2b   :  { %4140 = vperm.xlu0 %12267, %v4131_v20   ;;  %v4132_v21 = vmul.f32 %v4131_v20, %v4124_v11 }
 0xd2d   :  { %4134 = vrot.lane.b32.xlu1 %v4132_v21, %s12384_s10 }
 0xd9f   :  { %v4135_v22 = vpop.permute.xlu1 %4134 }
 0xda0   :  { %v4137_v23 = vsub.f32 %v3235_v18, %v4135_v22  ;;  %v5384_v18 = vld [vmem:[%s13726_s14] sm:$0xff] }
 0xda2   :  { %4146 = vperm.xlu1 %12266, %v4137_v23  }
 0xda6   :  { %12268 = vset.pattern.permute.xlu1 %v12383_v38 }
 0xdaa   :  { %v4141_v24 = vpop.permute.xlu0 %4140 }
 0xdab   :  { %v4143_v25 = vmul.f32 %v4141_v24, %v3679_v51  ;;  %v4150_v30 = vmul.f32 %v4141_v24, %v4103_v58 }
 0xe21   :  { %v4147_v27 = vpop.permute.xlu1 %4146 }
 0xe22   :  { %v4149_v28 = vadd.f32 %v4147_v27, %v4143_v25  ;;  %v4151_v32 = vadd.f32 %v4150_v30, %v4147_v27  ;;  %v5138_v30 = vld [vmem:[%s13790_s27] sm:$0xff] }
 0xe24   :  { %v4152_v29 = vmax.f32 %v4149_v28, 0.0  ;;  %v4153_v33 = vmax.f32 %v4151_v32, 0.0  ;;  %v5064_v32 = vld [vmem:[%s13724_s12 + $0x8] sm:$0xff] }
 0xe26   :  { %11591 = vmatmul.mubr.msk.f32.vlgmr.msra.gmra.mrb[52].mxu1 %vm3188_vm11, %v4152_v29 }
 0xe27   :  { %11594 = vmatpush3.msk.msra.mxu1 %vm3239_vm7, %v12960_v31  ;;  %11595 = vmatprep.mubr.msk.f32.mxu1 %vm12381_vm0, %v12380_v2 }
 0xe28   :  { %11608 = vmatprep.subr.mxu1 %v12380_v2 }
 0xe2a   :  { %11596 = vmatmul.mubr.msk.f32.vlgmr.msra.gmra.mrb[54].mxu1 %vm3188_vm11, %v4152_v29 }
 0xe2b   :  { %11609 = vmatpush3.msk.msra.mxu1 %vm3239_vm7, %v12972_v56  ;;  %11610 = vmatprep.mubr.msk.f32.mxu1 %vm12381_vm0, %v12380_v2 }
 0xe2c   :  { %11618 = vmatprep.subr.mxu1 %v12380_v2 }
 0xe2e   :  { %11611 = vmatmul.mubr.msk.f32.vlgmr.msra.gmra.mrb[56].mxu1 %vm3188_vm11, %v4152_v29 }
 0xe2f   :  { %11619 = vmatpush3.msk.msra.mxu1 %vm3239_vm7, %v12951_v26  ;;  %11620 = vmatprep.mubr.msk.f32.mxu1 %vm12381_vm0, %v12380_v2 }
 0xe30   :  { %11623 = vmatprep.subr.mxu1 %v12380_v2 }
 0xe32   :  { %11621 = vmatmul.mubr.msk.f32.vlgmr.msra.gmra.mrb[58].mxu1 %vm3188_vm11, %v4153_v33 }
 0xe33   :  { %11624 = vmatpush3.msk.msra.mxu1 %vm3239_vm7, %v12960_v31  ;;  %11625 = vmatprep.mubr.msk.f32.mxu1 %vm12381_vm0, %v12380_v2 }
 0xe34   :  { %11638 = vmatprep.subr.mxu1 %v12380_v2 }
 0xe36   :  { %11626 = vmatmul.mubr.msk.f32.vlgmr.msra.gmra.mrb[60].mxu1 %vm3188_vm11, %v4153_v33 }
 0xe37   :  { %11639 = vmatpush3.msk.msra.mxu1 %vm3239_vm7, %v12972_v56  ;;  %11640 = vmatprep.mubr.msk.f32.mxu1 %vm12381_vm0, %v12380_v2 }
 0xe38   :  { %11648 = vmatprep.subr.mxu1 %v12380_v2 }
 0xe3a   :  { %11641 = vmatmul.mubr.msk.f32.vlgmr.msra.gmra.mrb[62].mxu1 %vm3188_vm11, %v4153_v33 }
 0xe3b   :  { %11649 = vmatpush3.msk.msra.mxu1 %vm3239_vm7, %v12960_v31  ;;  %11650 = vmatprep.mubr.msk.f32.mxu1 %vm12381_vm0, %v12380_v2 }
 0xef9   :  { %v4224_v26 = vpop.f32.mrb[52].mxu1 }
 0xefa   :  { %v11592_v34 = vpop.f32.mrb[53].mxu1 }
 0xefb   :  { %v5139_v34 = vld [vmem:[%s13790_s27 + $0x8] sm:$0xff] }
 0xefd   :  { %v4295_v56 = vpop.f32.mrb[54].mxu1 }
 0xefe   :  { %v11597_v35 = vpop.f32.mrb[55].mxu1  ;;  %11599 = vmatpush3.msra.mxu0 %v4295_v56 }
 0xeff   :  { %11601 = vmatmul.mubr.msk.f32.vlgmr.msra.gmra.mrb[16].mxu0 %vm1232_vm4, %v10813_v6  ;;  %11603 = vmatprep.subr.mxu0 %v12380_v2  ;;  %v13156_v35 = vsel %vm5386_vm1, 1.0, %v12380_v2 }
 0xf00   :  { %11604 = vmatpush3.msra.mxu0 %v4224_v26  ;;  %11605 = vmatprep.mubr.msk.f32.mxu0 %vm12381_vm0, %v12380_v2 }
 0xf01   :  { %v4513_v36 = vpop.f32.mrb[56].mxu1  ;;  %11613 = vmatprep.subr.mxu0 %v12380_v2 }
 0xf02   :  { %v11612_v37 = vpop.f32.mrb[57].mxu1 }
 0xf05   :  { %v4662_v40 = vpop.f32.mrb[58].mxu1 }
 0xf06   :  { %v11622_v41 = vpop.f32.mrb[59].mxu1 }
 0xf07   :  { %11606 = vmatmul.mubr.msk.f32.vlgmr.msra.gmra.mrb[16].mxu0 %vm1232_vm4, %v4228_v39 }
 0xf08   :  { %11614 = vmatpush3.msra.mxu0 %v4513_v36  ;;  %11615 = vmatprep.mubr.msk.f32.mxu0 %vm12381_vm0, %v12380_v2 }
 0xf09   :  { %v4732_v42 = vpop.f32.mrb[60].mxu1  ;;  %11628 = vmatprep.subr.mxu0 %v12380_v2 }
 0xf0a   :  { %v11627_v43 = vpop.f32.mrb[61].mxu1 }
 0xf0d   :  { %v4942_v45 = vpop.f32.mrb[62].mxu1 }
 0xf0e   :  { %v11642_v46 = vpop.f32.mrb[63].mxu1 }
 0xf0f   :  { %11616 = vmatmul.mubr.msk.f32.vlgmr.msra.gmra.mrb[16].mxu0 %vm1232_vm4, %v10818_v44 }
 0xf10   :  { %11629 = vmatpush3.msra.mxu0 %v4732_v42  ;;  %11630 = vmatprep.mubr.msk.f32.mxu0 %vm12381_vm0, %v12380_v2 }
 0xf11   :  { %11633 = vmatprep.subr.mxu0 %v12380_v2 }
 0xf13   :  { %11631 = vmatmul.mubr.msk.f32.vlgmr.msra.gmra.mrb[18].mxu0 %vm1232_vm4, %v10813_v6 }
 0xf14   :  { %11634 = vmatpush3.msra.mxu0 %v4662_v40  ;;  %11635 = vmatprep.mubr.msk.f32.mxu0 %vm12381_vm0, %v12380_v2 }
 0xf15   :  { %11643 = vmatprep.subr.mxu0 %v12380_v2 }
 0xf1b   :  { %11636 = vmatmul.mubr.msk.f32.vlgmr.msra.gmra.mrb[18].mxu0 %vm1232_vm4, %v4228_v39 }
 0xf1c   :  { %11644 = vmatpush3.msra.mxu0 %v4942_v45  ;;  %11645 = vmatprep.mubr.msk.f32.mxu0 %vm12381_vm0, %v12380_v2 }
 0xf1d   :  { %11658 = vmatprep.subr.mxu0 %v12380_v2 }
 0xf23   :  { %11646 = vmatmul.mubr.msk.f32.vlgmr.msra.gmra.mrb[18].mxu0 %vm1232_vm4, %v10818_v44 }
 0xf24   :  { %11659 = vmatpush3.msk.msra.mxu0 %vm3239_vm7, %v12960_v31  ;;  %11660 = vmatprep.mubr.msk.f32.mxu0 %vm12381_vm0, %v12380_v2 }
 0xf25   :  { %11668 = vmatprep.subr.msk.mxu0 %vm3239_vm7, %v13156_v35 }
 0xfe2   :  { %v4588_v47 = vpop.f32.mrb[16].mxu0 }
 0xfe3   :  { %v11617_v48 = vpop.f32.mrb[17].mxu0  ;;  %v5017_v49 = vsel %vm3188_vm11, %v4588_v47, 0.0  ;;  %v5020_v54 = vmul.f32 %v4588_v47, %v4588_v47 }
 0xfe4   :  { %5018 = vadd.xlane.f32.xlu1 %v5017_v49 }
 0xfe5   :  { %v5021_v31 = vsel %vm3188_vm11, %v5020_v54, 0.0 }
 0xff6   :  { %v5012_v50 = vpop.f32.mrb[18].mxu0 }
 0xff7   :  { %v11647_v51 = vpop.f32.mrb[19].mxu0  ;;  %v5024_v52 = vsel %vm3188_vm11, %v5012_v50, 0.0  ;;  %v5028_v53 = vmul.f32 %v5012_v50, %v5012_v50 }
 0xff8   :  { %5025 = vadd.xlane.f32.xlu0 %v5024_v52  ;;  %v5473_v51 = vld [vmem:[#allocation5] sm:$0xff] }
 0xff9   :  { %v5029_v57 = vsel %vm3188_vm11, %v5028_v53, 0.0 }
 0xffa   :  { %5030 = vadd.xlane.f32.xlu1 %v5029_v57 }
 0xffc   :  { %5022 = vadd.xlane.f32.xlu0 %v5021_v31 }
0x1071   :  { %v5019_v58 = vpop.xlane.xlu1 %5018 }
0x1085   :  { %v5026_v59 = vpop.xlane.xlu0 %5025 }
0x1086   :  { %v5027_v61 = vadd.f32 %v5026_v59, %v5019_v58 }
0x1087   :  { %v5031_v63 = vpop.xlane.xlu1 %5030 }
0x1088   :  { %v5033_v62 = vmul.f32 0.071428575, %v5027_v61 }
0x1089   :  { %v5023_v0 = vpop.xlane.xlu0 %5022 }
0x108a   :  { %v5032_v7 = vadd.f32 %v5031_v63, %v5023_v0  ;;  %v5035_v8 = vmul.f32 %v5033_v62, %v5033_v62 }
0x108c   :  { %v5034_v9 = vmul.f32 0.071428575, %v5032_v7 }
0x108e   :  { %v5036_v10 = vsub.f32 %v5034_v9, %v5035_v8 }
0x1090   :  { %v5037_v11 = vmax.f32 %v5036_v10, 0.0 }
0x1092   :  { %v5038_v12 = vadd.f32 1e-05, %v5037_v11 }
0x1094   :  { %12285 = vrsqrt.f32 %v5038_v12 }
0x109e   :  { %v12286_v14 = vpop.eup %12285 }
0x109f   :  { %v5040_v15 = vmul.f32 %v12286_v14, %v4154_v13 }
0x10a1   :  { %5049 = vperm.xlu1 %12268, %v5040_v15   ;;  %v5041_v16 = vmul.f32 %v5040_v15, %v5033_v62 }
0x10a3   :  { %5043 = vrot.lane.b32.xlu0 %v5041_v16, %s12384_s10 }
0x10a5   :  { %12269 = vset.pattern.permute.xlu1 %v12385_v55 }
0x10a7   :  { %5142 = vperm.xlu0 %12267, %v5063_v17  }
0x10ab   :  { %5476 = vperm.xlu0 %12267, %v5384_v18  }
0x1115   :  { %v5044_v19 = vpop.permute.xlu0 %5043 }
0x1116   :  { %v5046_v20 = vsub.f32 %v4154_v13, %v5044_v19 }
0x1118   :  { %5055 = vperm.xlu1 %12269, %v5046_v20  }
0x111c   :  { %12270 = vset.pattern.permute.xlu1 %v12383_v38 }
0x111d   :  { %5147 = vperm.xlu1 %12270, %v5064_v32  }
0x1120   :  { %v5050_v21 = vpop.permute.xlu1 %5049 }
0x1121   :  { %v5052_v22 = vmul.f32 %v5050_v21, %v4588_v47  ;;  %v5059_v23 = vmul.f32 %v5050_v21, %v5012_v50 }
0x1126   :  { %v5143_v39 = vpop.permute.xlu0 %5142 }
0x112a   :  { %v5477_v54 = vpop.permute.xlu0 %5476 }
0x1197   :  { %v5056_v24 = vpop.permute.xlu1 %5055 }
0x1198   :  { %v5058_v25 = vadd.f32 %v5056_v24, %v5052_v22  ;;  %v5060_v27 = vadd.f32 %v5059_v23, %v5056_v24  ;;  %v5385_v23 = vld [vmem:[%s13727_s15] sm:$0xff] }
0x119a   :  { %v5061_v28 = vmax.f32 %v5058_v25, 0.0  ;;  %v5062_v29 = vmax.f32 %v5060_v27, 0.0 }
0x119c   :  { %11651 = vmatmul.mubr.msk.f32.vlgmr.msra.gmra.mrb[64].mxu1 %vm3188_vm11, %v5061_v28  ;;  %11661 = vmatmul.mubr.msk.f32.vlgmr.msra.gmra.mrb[20].mxu0 %vm3188_vm11, %v5062_v29  ;;  %v5148_v36 = vpop.permute.xlu1 %5147 }
0x119d   :  { %11655 = vmatprep.mubr.msk.f32.mxu1 %vm1232_vm4, %v5138_v30  ;;  %11669 = vmatpush3.msk.msra.mxu0 %vm3239_vm7, %v13156_v35 }
0x119e   :  { %11680 = vmatprep.subr.msk.mxu0 %vm3239_vm7, %v13156_v35 }
0x126f   :  { %v5134_v33 = vpop.f32.mrb[64].mxu1  ;;  %v5300_v26 = vpop.f32.mrb[20].mxu0 }
0x1270   :  { %v11652_v6 = vpop.f32.mrb[65].mxu1  ;;  %11653 = vmatprep.subr.mxu1 %v5134_v33  ;;  %v11662_v56 = vpop.f32.mrb[21].mxu0 }
0x1271   :  { %11654 = vmatpush3.msra.mxu1 %v5134_v33 }
0x1272   :  { %11656 = vmatmul.mubr.msk.f32.vlgmr.msra.gmra.mrb[66].mxu1 %vm1232_vm4, %v5139_v34  ;;  %11663 = vmatprep.subr.mxu1 %v5300_v26 }
0x1273   :  { %11664 = vmatpush3.msra.mxu1 %v5300_v26  ;;  %11665 = vmatprep.mubr.msk.f32.mxu1 %vm1232_vm4, %v5138_v30  ;;  %v13210_v30 = vadd.s32 4294967295, %v12557_v3  ;;  %v13224_v26 = vadd.s32 1, %v12557_v3 }
0x1274   :  { %12110 = vmatprep.subr.bf16.mxu1 %v12379_v1 }
0x1275   :  { %vm5751_vm3 = vcmp.eq.s32.totalorder %v12559_v4, %v13210_v30  ;;  %v10925_v30 = vsel %vm8887_vm14, 1.0, %v12380_v2 }
0x1276   :  { %11666 = vmatmul.mubr.msk.f32.vlgmr.msra.gmra.mrb[68].mxu1 %vm1232_vm4, %v5139_v34  ;;  %v13218_v32 = vsel %vm5751_vm3, 1.0, %v12380_v2  ;;  %vm13493_vm12 = vmpackc.low %vm1082_vm5, %vm5751_vm3 }
0x1277   :  { %11677 = vmatprep.mubr.msk.f32.mxu1 %vm12381_vm0, %v12380_v2 }
0x1345   :  { %v11657_v37 = vpop.f32.mrb[66].mxu1 }
0x1346   :  { %v5228_v40 = vadd.f32 %v11657_v37, %v5148_v36  ;;  %v5222_v41 = vpop.f32.mrb[67].mxu1 }
0x1347   :  { %v5223_v42 = vadd.f32 %v5222_v41, %v5143_v39 }
0x1348   :  { %5380 = vst.msk [vmem:[%s13738_s26 + $0x8] sm:$0xff] %vm3188_vm11, %v5228_v40 }
0x1349   :  { %5379 = vst.msk [vmem:[%s13738_s26] sm:$0xff] %vm3188_vm11, %v5223_v42  ;;  %v11667_v43 = vpop.f32.mrb[68].mxu1  ;;  %11670 = vmatprep.mubr.msk.f32.mxu0 %vm3188_vm11, %v5223_v42  ;;  %v10853_v42 = vld [vmem:[%s13728_s16 + $0x8] sm:$0xff] }
0x134a   :  { %v5376_v44 = vadd.f32 %v11667_v43, %v5148_v36  ;;  %v5370_v45 = vpop.f32.mrb[69].mxu1  ;;  %11671 = vmatmul.mubr.msk.f32.vlgmr.msra.gmra.mrb[22].mxu0 %vm3188_vm11, %v5228_v40 }
0x134b   :  { %v5371_v46 = vadd.f32 %v5370_v45, %v5143_v39  ;;  %11681 = vmatpush3.msk.msra.mxu0 %vm3239_vm7, %v13156_v35 }
0x134c   :  { %10838 = vst.msk [vmem:[%s13738_s26 + $0x18] sm:$0xff] %vm3188_vm11, %v5376_v44  ;;  %11692 = vmatprep.subr.mxu0 %v12380_v2 }
0x134d   :  { %10837 = vst.msk [vmem:[%s13738_s26 + $0x10] sm:$0xff] %vm3188_vm11, %v5371_v46  ;;  %11682 = vmatprep.mubr.msk.f32.mxu0 %vm3188_vm11, %v5371_v46 }
0x134e   :  { %11683 = vmatmul.mubr.msk.f32.vlgmr.msra.gmra.mrb[24].mxu0 %vm3188_vm11, %v5376_v44 }
0x134f   :  { %11694 = vmatprep.mubr.msk.f32.mxu0 %vm12381_vm0, %v12380_v2  ;;  %11693 = vmatpush3.msk.msra.mxu0 %vm3239_vm7, %v13218_v32 }
0x1350   :  { %11702 = vmatprep.subr.mxu0 %v12380_v2 }
0x141d   :  { %v11672_v47 = vpop.f32.mrb[22].mxu0 }
0x141e   :  { %v5464_v48 = vpop.f32.mrb[23].mxu0 }
0x141f   :  { %v12111_v49 = vpack.c.bf16 %v11672_v47, %v5464_v48 }
0x1421   :  { %12112 = vmatpush3.bf16.msra.mxu1 %v12111_v49  ;;  %v11684_v50 = vpop.f32.mrb[24].mxu0  ;;  %v5830_v49 = vld [vmem:[%s13728_s16] sm:$0xff] }
0x1422   :  { %v5624_v52 = vpop.f32.mrb[25].mxu0  ;;  %12113 = vmatprep.subr.bf16.mxu1 %v12379_v1 }
0x1423   :  { %v12114_v53 = vpack.c.bf16 %v11684_v50, %v5624_v52 }
0x1424   :  { %11678 = vmatmul.mubr.msk.f32.vlgmr.msra.gmra.mrb[70].mxu1 %vm127_vm6, %v5473_v51 }
0x1425   :  { %12115 = vmatpush3.bf16.msra.mxu1 %v12114_v53  ;;  %11689 = vmatprep.mubr.msk.f32.mxu1 %vm12381_vm0, %v12380_v2 }
0x1426   :  { %11697 = vmatprep.subr.mxu1 %v12380_v2 }
0x1428   :  { %11690 = vmatmul.mubr.msk.f32.vlgmr.msra.gmra.mrb[72].mxu1 %vm127_vm6, %v5473_v51  ;;  %vm6050_vm6 = vcmp.eq.s32.totalorder %v12559_v4, %v13224_v26 }
0x1429   :  { %11698 = vmatpush3.msk.msra.mxu1 %vm3239_vm7, %v13156_v35  ;;  %11699 = vmatprep.mubr.msk.f32.mxu1 %vm12381_vm0, %v12380_v2  ;;  %v13232_v37 = vsel %vm6050_vm6, 1.0, %v12380_v2 }
0x142a   :  { %11712 = vmatprep.subr.mxu1 %v12380_v2 }
0x14f7   :  { %v5548_v57 = vpop.f32.mrb[70].mxu1 }
0x14f8   :  { %v5549_v31 = vadd.f32 %v5548_v57, %v5477_v54  ;;  %v11679_v58 = vpop.f32.mrb[71].mxu1 }
0x14fa   :  { %v5703_v59 = vsel %vm3188_vm11, %v5549_v31, 0.0  ;;  %v5706_v8 = vmul.f32 %v5549_v31, %v5549_v31 }
0x14fb   :  { %5704 = vadd.xlane.f32.xlu1 %v5703_v59  ;;  %v5699_v61 = vpop.f32.mrb[72].mxu1 }
0x14fc   :  { %v5700_v62 = vadd.f32 %v5699_v61, %v5477_v54  ;;  %v11691_v63 = vpop.f32.mrb[73].mxu1  ;;  %v5707_v10 = vsel %vm3188_vm11, %v5706_v8, 0.0  ;;  %v10859_v54 = vld [vmem:[%s13728_s16 + $0x10] sm:$0xff] }
0x14fe   :  { %v5710_v0 = vsel %vm3188_vm11, %v5700_v62, 0.0  ;;  %v5714_v7 = vmul.f32 %v5700_v62, %v5700_v62 }
0x14ff   :  { %5711 = vadd.xlane.f32.xlu0 %v5710_v0 }
0x1500   :  { %v5715_v9 = vsel %vm3188_vm11, %v5714_v7, 0.0 }
0x1501   :  { %5716 = vadd.xlane.f32.xlu1 %v5715_v9 }
0x1503   :  { %5708 = vadd.xlane.f32.xlu0 %v5707_v10 }
0x1588   :  { %v5705_v11 = vpop.xlane.xlu1 %5704 }
0x158c   :  { %v5712_v12 = vpop.xlane.xlu0 %5711 }
0x158d   :  { %v5713_v13 = vadd.f32 %v5712_v12, %v5705_v11 }
0x158e   :  { %v5717_v15 = vpop.xlane.xlu1 %5716 }
0x158f   :  { %v5719_v14 = vmul.f32 0.071428575, %v5713_v13 }
0x1590   :  { %v5709_v16 = vpop.xlane.xlu0 %5708 }
0x1591   :  { %v5718_v17 = vadd.f32 %v5717_v15, %v5709_v16  ;;  %v5721_v18 = vmul.f32 %v5719_v14, %v5719_v14 }
0x1593   :  { %v5720_v19 = vmul.f32 0.071428575, %v5718_v17 }
0x1595   :  { %v5722_v20 = vsub.f32 %v5720_v19, %v5721_v18 }
0x1597   :  { %v5723_v21 = vmax.f32 %v5722_v20, 0.0 }
0x1599   :  { %v5724_v22 = vadd.f32 1e-05, %v5723_v21 }
0x159b   :  { %12287 = vrsqrt.f32 %v5724_v22 }
0x15a5   :  { %v12288_v24 = vpop.eup %12287 }
0x15a6   :  { %v5726_v25 = vmul.f32 %v12288_v24, %v5385_v23 }
0x15a8   :  { %5735 = vperm.xlu1 %12270, %v5726_v25   ;;  %v5727_v27 = vmul.f32 %v5726_v25, %v5719_v14 }
0x15aa   :  { %5729 = vrot.lane.b32.xlu0 %v5727_v27, %s12384_s10 }
0x15ac   :  { %12271 = vset.pattern.permute.xlu1 %v12385_v55 }
0x161c   :  { %v5730_v28 = vpop.permute.xlu0 %5729 }
0x161d   :  { %v5732_v29 = vsub.f32 %v5385_v23, %v5730_v28  ;;  %v5749_v23 = vld [vmem:[%s13729_s17] sm:$0xff] }
0x161f   :  { %5741 = vperm.xlu1 %12271, %v5732_v29  }
0x1627   :  { %v5736_v33 = vpop.permute.xlu1 %5735 }
0x1628   :  { %v5738_v34 = vmul.f32 %v5736_v33, %v5549_v31  ;;  %v5745_v39 = vmul.f32 %v5736_v33, %v5700_v62 }
0x169e   :  { %v5742_v6 = vpop.permute.xlu1 %5741 }
0x169f   :  { %v5744_v56 = vadd.f32 %v5742_v6, %v5738_v34  ;;  %v5746_v40 = vadd.f32 %v5745_v39, %v5742_v6 }
0x16a1   :  { %v5747_v36 = vmax.f32 %v5744_v56, 0.0  ;;  %v5748_v41 = vmax.f32 %v5746_v40, 0.0 }
0x16a3   :  { %11695 = vmatmul.mubr.msk.f32.vlgmr.msra.gmra.mrb[26].mxu0 %vm3188_vm11, %v5747_v36  ;;  %11700 = vmatmul.mubr.msk.f32.vlgmr.msra.gmra.mrb[74].mxu1 %vm3188_vm11, %v5747_v36 }
0x16a4   :  { %11713 = vmatpush3.msk.msra.mxu1 %vm3239_vm7, %v13232_v37  ;;  %11714 = vmatprep.mubr.msk.f32.mxu1 %vm12381_vm0, %v12380_v2 }
0x16a5   :  { %11722 = vmatprep.subr.mxu1 %v12380_v2  ;;  %11704 = vmatprep.mubr.msk.f32.mxu0 %vm12381_vm0, %v12380_v2 }
0x16a7   :  { %11715 = vmatmul.mubr.msk.f32.vlgmr.msra.gmra.mrb[76].mxu1 %vm3188_vm11, %v5747_v36 }
0x16a8   :  { %11723 = vmatpush3.msk.msra.mxu1 %vm3239_vm7, %v13218_v32  ;;  %11724 = vmatprep.mubr.msk.f32.mxu1 %vm12381_vm0, %v12380_v2 }
0x16a9   :  { %11727 = vmatprep.subr.mxu1 %v12380_v2 }
0x16ab   :  { %11725 = vmatmul.mubr.msk.f32.vlgmr.msra.gmra.mrb[78].mxu1 %vm3188_vm11, %v5748_v41 }
0x16ac   :  { %11728 = vmatpush3.msk.msra.mxu1 %vm3239_vm7, %v13156_v35  ;;  %11729 = vmatprep.mubr.msk.f32.mxu1 %vm12381_vm0, %v12380_v2 }
0x16ad   :  { %11742 = vmatprep.subr.mxu1 %v12380_v2 }
0x16af   :  { %11730 = vmatmul.mubr.msk.f32.vlgmr.msra.gmra.mrb[80].mxu1 %vm3188_vm11, %v5748_v41 }
0x16b0   :  { %11743 = vmatpush3.msk.msra.mxu1 %vm3239_vm7, %v13232_v37  ;;  %11744 = vmatprep.mubr.msk.f32.mxu1 %vm12381_vm0, %v12380_v2 }
0x16b1   :  { %11752 = vmatprep.subr.mxu1 %v12380_v2 }
0x16b3   :  { %11745 = vmatmul.mubr.msk.f32.vlgmr.msra.gmra.mrb[82].mxu1 %vm3188_vm11, %v5748_v41 }
0x16b4   :  { %11753 = vmatpush3.msk.msra.mxu1 %vm3239_vm7, %v13218_v32  ;;  %11754 = vmatprep.mubr.msk.f32.mxu1 %vm12381_vm0, %v12380_v2 }
0x16b5   :  { %11757 = vmatprep.subr.mxu1 %v12380_v2 }
0x1776   :  { %v5826_v43 = vpop.f32.mrb[26].mxu0  ;;  %v5897_v44 = vpop.f32.mrb[74].mxu1 }
0x1777   :  { %v11696_v45 = vpop.f32.mrb[27].mxu0  ;;  %v11701_v46 = vpop.f32.mrb[75].mxu1  ;;  %11703 = vmatpush3.msra.mxu0 %v5897_v44 }
0x1778   :  { %11705 = vmatmul.mubr.msk.f32.vlgmr.msra.gmra.mrb[28].mxu0 %vm1232_vm4, %v10853_v42  ;;  %11707 = vmatprep.subr.mxu0 %v12380_v2  ;;  %v6746_v46 = vld [vmem:[%s13730_s18] sm:$0xff] }
0x1779   :  { %11708 = vmatpush3.msra.mxu0 %v5826_v43  ;;  %11709 = vmatprep.mubr.msk.f32.mxu0 %vm12381_vm0, %v12380_v2 }
0x177a   :  { %v6122_v47 = vpop.f32.mrb[76].mxu1  ;;  %11717 = vmatprep.subr.mxu0 %v12380_v2 }
0x177b   :  { %v11716_v48 = vpop.f32.mrb[77].mxu1 }
0x177e   :  { %v6271_v50 = vpop.f32.mrb[78].mxu1 }
0x177f   :  { %v11726_v51 = vpop.f32.mrb[79].mxu1 }
0x1780   :  { %11710 = vmatmul.mubr.msk.f32.vlgmr.msra.gmra.mrb[28].mxu0 %vm1232_vm4, %v5830_v49  ;;  %v10879_v51 = vld [vmem:[%s13730_s18 + $0x10] sm:$0xff] }
0x1781   :  { %11718 = vmatpush3.msra.mxu0 %v6122_v47  ;;  %11719 = vmatprep.mubr.msk.f32.mxu0 %vm12381_vm0, %v12380_v2 }
0x1782   :  { %v6341_v52 = vpop.f32.mrb[80].mxu1  ;;  %11732 = vmatprep.subr.mxu0 %v12380_v2 }
0x1783   :  { %v11731_v53 = vpop.f32.mrb[81].mxu1 }
0x1786   :  { %v6551_v57 = vpop.f32.mrb[82].mxu1 }
0x1787   :  { %v11746_v31 = vpop.f32.mrb[83].mxu1 }
0x1788   :  { %11720 = vmatmul.mubr.msk.f32.vlgmr.msra.gmra.mrb[28].mxu0 %vm1232_vm4, %v10859_v54 }
0x1789   :  { %11733 = vmatpush3.msra.mxu0 %v6341_v52  ;;  %11734 = vmatprep.mubr.msk.f32.mxu0 %vm12381_vm0, %v12380_v2 }
0x178a   :  { %11737 = vmatprep.subr.mxu0 %v12380_v2 }
0x178c   :  { %11735 = vmatmul.mubr.msk.f32.vlgmr.msra.gmra.mrb[30].mxu0 %vm1232_vm4, %v10853_v42  ;;  %v10874_v42 = vld [vmem:[%s13730_s18 + $0x8] sm:$0xff] }
0x178d   :  { %11738 = vmatpush3.msra.mxu0 %v6271_v50  ;;  %11739 = vmatprep.mubr.msk.f32.mxu0 %vm12381_vm0, %v12380_v2 }
0x178e   :  { %11747 = vmatprep.subr.mxu0 %v12380_v2 }
0x1794   :  { %11740 = vmatmul.mubr.msk.f32.vlgmr.msra.gmra.mrb[30].mxu0 %vm1232_vm4, %v5830_v49 }
0x1795   :  { %11748 = vmatpush3.msra.mxu0 %v6551_v57  ;;  %11749 = vmatprep.mubr.msk.f32.mxu0 %vm12381_vm0, %v12380_v2 }
0x1796   :  { %11762 = vmatprep.subr.mxu0 %v12380_v2 }
0x179c   :  { %11750 = vmatmul.mubr.msk.f32.vlgmr.msra.gmra.mrb[30].mxu0 %vm1232_vm4, %v10859_v54 }
0x179d   :  { %11764 = vmatprep.mubr.msk.f32.mxu0 %vm12381_vm0, %v12380_v2 }
0x185b   :  { %v6197_v58 = vpop.f32.mrb[28].mxu0 }
0x185c   :  { %v11721_v59 = vpop.f32.mrb[29].mxu0  ;;  %v6626_v61 = vsel %vm3188_vm11, %v6197_v58, 0.0  ;;  %v6629_v62 = vmul.f32 %v6197_v58, %v6197_v58 }
0x185d   :  { %6627 = vadd.xlane.f32.xlu0 %v6626_v61 }
0x185e   :  { %v6630_v63 = vsel %vm3188_vm11, %v6629_v62, 0.0 }
0x1861   :  { %6631 = vadd.xlane.f32.xlu0 %v6630_v63 }
0x186f   :  { %v6621_v0 = vpop.f32.mrb[30].mxu0 }
0x1870   :  { %v11751_v7 = vpop.f32.mrb[31].mxu0  ;;  %v6633_v8 = vsel %vm3188_vm11, %v6621_v0, 0.0  ;;  %v6637_v9 = vmul.f32 %v6621_v0, %v6621_v0 }
0x1871   :  { %6634 = vadd.xlane.f32.xlu1 %v6633_v8 }
0x1872   :  { %v6638_v10 = vsel %vm3188_vm11, %v6637_v9, 0.0 }
0x1873   :  { %6639 = vadd.xlane.f32.xlu0 %v6638_v10 }
0x18ea   :  { %v6628_v11 = vpop.xlane.xlu0 %6627 }
0x18ee   :  { %v6632_v12 = vpop.xlane.xlu0 %6631 }
0x18fe   :  { %v6635_v13 = vpop.xlane.xlu1 %6634 }
0x18ff   :  { %v6636_v14 = vadd.f32 %v6635_v13, %v6628_v11 }
0x1900   :  { %v6640_v15 = vpop.xlane.xlu0 %6639 }
0x1901   :  { %v6642_v16 = vmul.f32 0.071428575, %v6636_v14  ;;  %v6641_v17 = vadd.f32 %v6640_v15, %v6632_v12 }
0x1903   :  { %v6644_v18 = vmul.f32 %v6642_v16, %v6642_v16  ;;  %v6643_v19 = vmul.f32 0.071428575, %v6641_v17 }
0x1905   :  { %v6645_v20 = vsub.f32 %v6643_v19, %v6644_v18 }
0x1907   :  { %v6646_v21 = vmax.f32 %v6645_v20, 0.0  ;;  %v6672_v20 = vld [vmem:[%s13731_s19] sm:$0xff] }
0x1909   :  { %v6647_v22 = vadd.f32 1e-05, %v6646_v21 }
0x190b   :  { %12289 = vrsqrt.f32 %v6647_v22 }
0x1915   :  { %v12290_v24 = vpop.eup %12289 }
0x1916   :  { %v6649_v25 = vmul.f32 %v12290_v24, %v5749_v23 }
0x1918   :  { %6658 = vperm.xlu0 %12267, %v6649_v25   ;;  %v6650_v27 = vmul.f32 %v6649_v25, %v6642_v16 }
0x191a   :  { %6652 = vrot.lane.b32.xlu1 %v6650_v27, %s12384_s10  ;;  %v7582_v27 = vmul.u32 2, %v12557_v3 }
0x191c   :  { %vm7664_vm8 = vcmp.eq.s32.totalorder %v12559_v4, %v7582_v27 }
0x198c   :  { %v6653_v28 = vpop.permute.xlu1 %6652 }
0x198d   :  { %v6655_v29 = vsub.f32 %v5749_v23, %v6653_v28  ;;  %v7583_v28 = vadd.s32 4294967295, %v7582_v27 }
0x198f   :  { %6664 = vperm.xlu1 %12271, %v6655_v29   ;;  %vm7584_vm15 = vcmp.eq.s32.totalorder %v12559_v4, %v7583_v28 }
0x1990   :  { %v10890_v29 = vsel %vm7584_vm15, 1.0, %v12380_v2 }
0x1993   :  { %12272 = vset.pattern.permute.xlu1 %v12383_v38 }
0x1997   :  { %v6659_v33 = vpop.permute.xlu0 %6658 }
0x1998   :  { %v6661_v34 = vmul.f32 %v6659_v33, %v6197_v58  ;;  %v6668_v39 = vmul.f32 %v6659_v33, %v6621_v0 }
0x1a0e   :  { %v6665_v6 = vpop.permute.xlu1 %6664 }
0x1a0f   :  { %v6667_v56 = vadd.f32 %v6665_v6, %v6661_v34  ;;  %v6669_v40 = vadd.f32 %v6668_v39, %v6665_v6 }
0x1a11   :  { %v6670_v36 = vmax.f32 %v6667_v56, 0.0  ;;  %v6671_v41 = vmax.f32 %v6669_v40, 0.0  ;;  %v7888_v56 = vadd.s32 1, %v7582_v27  ;;  %v10893_v40 = vsel %vm7664_vm8, 1.0, %v12380_v2 }
0x1a13   :  { %11755 = vmatmul.mubr.msk.f32.vlgmr.msra.gmra.mrb[84].mxu1 %vm3188_vm11, %v6670_v36  ;;  %vm7889_vm2 = vcmp.eq.s32.totalorder %v12559_v4, %v7888_v56 }
0x1a14   :  { %11758 = vmatpush3.msk.msra.mxu1 %vm3239_vm7, %v13156_v35  ;;  %11759 = vmatprep.mubr.msk.f32.mxu1 %vm12381_vm0, %v12380_v2 }
0x1a15   :  { %11772 = vmatprep.subr.mxu1 %v12380_v2 }
0x1a17   :  { %11760 = vmatmul.mubr.msk.f32.vlgmr.msra.gmra.mrb[86].mxu1 %vm3188_vm11, %v6670_v36 }
0x1a18   :  { %11773 = vmatpush3.msk.msra.mxu1 %vm3239_vm7, %v13232_v37  ;;  %11774 = vmatprep.mubr.msk.f32.mxu1 %vm12381_vm0, %v12380_v2 }
0x1a19   :  { %11782 = vmatprep.subr.mxu1 %v12380_v2 }
0x1a1b   :  { %11775 = vmatmul.mubr.msk.f32.vlgmr.msra.gmra.mrb[88].mxu1 %vm3188_vm11, %v6670_v36 }
0x1a1c   :  { %11783 = vmatpush3.msk.msra.mxu1 %vm3239_vm7, %v13218_v32  ;;  %11784 = vmatprep.mubr.msk.f32.mxu1 %vm12381_vm0, %v12380_v2 }
0x1a1d   :  { %11787 = vmatprep.subr.mxu1 %v12380_v2 }
0x1a1f   :  { %11785 = vmatmul.mubr.msk.f32.vlgmr.msra.gmra.mrb[90].mxu1 %vm3188_vm11, %v6671_v41 }
0x1a20   :  { %11788 = vmatpush3.msk.msra.mxu1 %vm3239_vm7, %v13156_v35  ;;  %11789 = vmatprep.mubr.msk.f32.mxu1 %vm12381_vm0, %v12380_v2 }
0x1a21   :  { %11802 = vmatprep.subr.mxu1 %v12380_v2 }
0x1a23   :  { %11790 = vmatmul.mubr.msk.f32.vlgmr.msra.gmra.mrb[92].mxu1 %vm3188_vm11, %v6671_v41 }
0x1a24   :  { %11803 = vmatpush3.msk.msra.mxu1 %vm3239_vm7, %v13232_v37  ;;  %11804 = vmatprep.mubr.msk.f32.mxu1 %vm12381_vm0, %v12380_v2 }
0x1a25   :  { %11812 = vmatprep.subr.mxu1 %v12380_v2 }
0x1a27   :  { %11805 = vmatmul.mubr.msk.f32.vlgmr.msra.gmra.mrb[94].mxu1 %vm3188_vm11, %v6671_v41  ;;  %v8041_v41 = vadd.s32 2, %v7582_v27 }
0x1a28   :  { %11814 = vmatprep.mubr.msk.f32.mxu1 %vm12381_vm0, %v12380_v2  ;;  %11813 = vmatpush3.msk.msra.mxu1 %vm3239_vm7, %v10890_v29 }
0x1a29   :  { %11817 = vmatprep.subr.mxu1 %v12380_v2  ;;  %vm8042_vm9 = vcmp.eq.s32.totalorder %v12559_v4, %v8041_v41 }
0x1ae6   :  { %v6742_v35 = vpop.f32.mrb[84].mxu1 }
0x1ae7   :  { %v11756_v32 = vpop.f32.mrb[85].mxu1 }
0x1ae8   :  { %v10904_v32 = vsel %vm8042_vm9, 1.0, %v12380_v2 }
0x1aea   :  { %v6813_v43 = vpop.f32.mrb[86].mxu1 }
0x1aeb   :  { %v11761_v44 = vpop.f32.mrb[87].mxu1  ;;  %11763 = vmatpush3.msra.mxu0 %v6813_v43 }
0x1aec   :  { %11765 = vmatmul.mubr.msk.f32.vlgmr.msra.gmra.mrb[32].mxu0 %vm1232_vm4, %v10874_v42  ;;  %11767 = vmatprep.subr.mxu0 %v12380_v2 }
0x1aed   :  { %11768 = vmatpush3.msra.mxu0 %v6742_v35  ;;  %11769 = vmatprep.mubr.msk.f32.mxu0 %vm12381_vm0, %v12380_v2  ;;  %v10899_v35 = vsel %vm7889_vm2, 1.0, %v12380_v2 }
0x1aee   :  { %v7031_v37 = vpop.f32.mrb[88].mxu1  ;;  %11777 = vmatprep.subr.mxu0 %v12380_v2 }
0x1aef   :  { %v11776_v45 = vpop.f32.mrb[89].mxu1 }
0x1af2   :  { %v7180_v47 = vpop.f32.mrb[90].mxu1 }
0x1af3   :  { %v11786_v48 = vpop.f32.mrb[91].mxu1 }
0x1af4   :  { %11770 = vmatmul.mubr.msk.f32.vlgmr.msra.gmra.mrb[32].mxu0 %vm1232_vm4, %v6746_v46 }
0x1af5   :  { %11778 = vmatpush3.msra.mxu0 %v7031_v37  ;;  %11779 = vmatprep.mubr.msk.f32.mxu0 %vm12381_vm0, %v12380_v2 }
0x1af6   :  { %v7250_v49 = vpop.f32.mrb[92].mxu1  ;;  %11792 = vmatprep.subr.mxu0 %v12380_v2 }
0x1af7   :  { %v11791_v50 = vpop.f32.mrb[93].mxu1 }
0x1afa   :  { %v7460_v52 = vpop.f32.mrb[94].mxu1 }
0x1afb   :  { %v11806_v53 = vpop.f32.mrb[95].mxu1 }
0x1afc   :  { %11780 = vmatmul.mubr.msk.f32.vlgmr.msra.gmra.mrb[32].mxu0 %vm1232_vm4, %v10879_v51 }
0x1afd   :  { %11793 = vmatpush3.msra.mxu0 %v7250_v49  ;;  %11794 = vmatprep.mubr.msk.f32.mxu0 %vm12381_vm0, %v12380_v2 }
0x1afe   :  { %11797 = vmatprep.subr.mxu0 %v12380_v2 }
0x1b00   :  { %11795 = vmatmul.mubr.msk.f32.vlgmr.msra.gmra.mrb[34].mxu0 %vm1232_vm4, %v10874_v42 }
0x1b01   :  { %11798 = vmatpush3.msra.mxu0 %v7180_v47  ;;  %11799 = vmatprep.mubr.msk.f32.mxu0 %vm12381_vm0, %v12380_v2 }
0x1b02   :  { %11807 = vmatprep.subr.mxu0 %v12380_v2 }
0x1b08   :  { %11800 = vmatmul.mubr.msk.f32.vlgmr.msra.gmra.mrb[34].mxu0 %vm1232_vm4, %v6746_v46  ;;  %v10896_v46 = vld [vmem:[%s13732_s20 + $0x8] sm:$0xff] }
0x1b09   :  { %11808 = vmatpush3.msra.mxu0 %v7460_v52  ;;  %11809 = vmatprep.mubr.msk.f32.mxu0 %vm12381_vm0, %v12380_v2 }
0x1b0a   :  { %11822 = vmatprep.subr.mxu0 %v12380_v2 }
0x1b10   :  { %11810 = vmatmul.mubr.msk.f32.vlgmr.msra.gmra.mrb[34].mxu0 %vm1232_vm4, %v10879_v51  ;;  %v7663_v51 = vld [vmem:[%s13732_s20] sm:$0xff] }
0x1b11   :  { %11824 = vmatprep.mubr.msk.f32.mxu0 %vm12381_vm0, %v12380_v2 }
0x1bcf   :  { %v7106_v54 = vpop.f32.mrb[32].mxu0 }
0x1bd0   :  { %v11781_v57 = vpop.f32.mrb[33].mxu0  ;;  %v7535_v31 = vsel %vm3188_vm11, %v7106_v54, 0.0  ;;  %v7538_v63 = vmul.f32 %v7106_v54, %v7106_v54 }
0x1bd1   :  { %7536 = vadd.xlane.f32.xlu1 %v7535_v31  ;;  %v10902_v31 = vld [vmem:[%s13732_s20 + $0x10] sm:$0xff] }
0x1bd2   :  { %v7539_v7 = vsel %vm3188_vm11, %v7538_v63, 0.0  ;;  %v10907_v63 = vld [vmem:[%s13732_s20 + $0x18] sm:$0xff] }
0x1be3   :  { %v7530_v58 = vpop.f32.mrb[34].mxu0 }
0x1be4   :  { %v11811_v59 = vpop.f32.mrb[35].mxu0  ;;  %v7542_v61 = vsel %vm3188_vm11, %v7530_v58, 0.0  ;;  %v7546_v62 = vmul.f32 %v7530_v58, %v7530_v58 }
0x1be5   :  { %7543 = vadd.xlane.f32.xlu0 %v7542_v61 }
0x1be6   :  { %v7547_v0 = vsel %vm3188_vm11, %v7546_v62, 0.0 }
0x1be7   :  { %7548 = vadd.xlane.f32.xlu1 %v7547_v0 }
0x1be9   :  { %7540 = vadd.xlane.f32.xlu0 %v7539_v7 }
0x1c5e   :  { %v7537_v8 = vpop.xlane.xlu1 %7536 }
0x1c72   :  { %v7544_v9 = vpop.xlane.xlu0 %7543 }
0x1c73   :  { %v7545_v10 = vadd.f32 %v7544_v9, %v7537_v8 }
0x1c74   :  { %v7549_v12 = vpop.xlane.xlu1 %7548 }
0x1c75   :  { %v7551_v11 = vmul.f32 0.071428575, %v7545_v10 }
0x1c76   :  { %v7541_v13 = vpop.xlane.xlu0 %7540 }
0x1c77   :  { %v7550_v14 = vadd.f32 %v7549_v12, %v7541_v13  ;;  %v7553_v15 = vmul.f32 %v7551_v11, %v7551_v11 }
0x1c79   :  { %v7552_v16 = vmul.f32 0.071428575, %v7550_v14 }
0x1c7b   :  { %v7554_v17 = vsub.f32 %v7552_v16, %v7553_v15 }
0x1c7d   :  { %v7555_v18 = vmax.f32 %v7554_v17, 0.0 }
0x1c7f   :  { %v7556_v19 = vadd.f32 1e-05, %v7555_v18 }
0x1c81   :  { %12291 = vrsqrt.f32 %v7556_v19 }
0x1c8b   :  { %v12292_v21 = vpop.eup %12291 }
0x1c8c   :  { %v7558_v22 = vmul.f32 %v12292_v21, %v6672_v20 }
0x1c8e   :  { %7567 = vperm.xlu1 %12272, %v7558_v22   ;;  %v7559_v23 = vmul.f32 %v7558_v22, %v7551_v11 }
0x1c90   :  { %7561 = vrot.lane.b32.xlu0 %v7559_v23, %s12384_s10 }
0x1c92   :  { %12273 = vset.pattern.permute.xlu1 %v12385_v55 }
0x1d02   :  { %v7562_v24 = vpop.permute.xlu0 %7561 }
0x1d03   :  { %v7564_v25 = vsub.f32 %v6672_v20, %v7562_v24 }
0x1d05   :  { %7573 = vperm.xlu1 %12273, %v7564_v25  }
0x1d0d   :  { %v7568_v33 = vpop.permute.xlu1 %7567 }
0x1d0e   :  { %v7570_v34 = vmul.f32 %v7568_v33, %v7106_v54  ;;  %v7577_v42 = vmul.f32 %v7568_v33, %v7530_v58 }
0x1d84   :  { %v7574_v6 = vpop.permute.xlu1 %7573 }
0x1d85   :  { %v7576_v36 = vadd.f32 %v7574_v6, %v7570_v34  ;;  %v7578_v43 = vadd.f32 %v7577_v42, %v7574_v6  ;;  %v7581_v34 = vld [vmem:[%s13733_s21] sm:$0xff] }
0x1d87   :  { %v7579_v39 = vmax.f32 %v7576_v36, 0.0  ;;  %v7580_v44 = vmax.f32 %v7578_v43, 0.0 }
0x1d89   :  { %11815 = vmatmul.mubr.msk.f32.vlgmr.msra.gmra.mrb[96].mxu1 %vm3188_vm11, %v7579_v39 }
0x1d8a   :  { %11818 = vmatpush3.msk.msra.mxu1 %vm3239_vm7, %v10893_v40  ;;  %11819 = vmatprep.mubr.msk.f32.mxu1 %vm12381_vm0, %v12380_v2 }
0x1d8b   :  { %11832 = vmatprep.subr.mxu1 %v12380_v2 }
0x1d8d   :  { %11820 = vmatmul.mubr.msk.f32.vlgmr.msra.gmra.mrb[98].mxu1 %vm3188_vm11, %v7579_v39 }
0x1d8e   :  { %11833 = vmatpush3.msk.msra.mxu1 %vm3239_vm7, %v10899_v35  ;;  %11834 = vmatprep.mubr.msk.f32.mxu1 %vm12381_vm0, %v12380_v2 }
0x1d8f   :  { %11842 = vmatprep.subr.mxu1 %v12380_v2 }
0x1d91   :  { %11835 = vmatmul.mubr.msk.f32.vlgmr.msra.gmra.mrb[100].mxu1 %vm3188_vm11, %v7579_v39 }
0x1d92   :  { %11843 = vmatpush3.msk.msra.mxu1 %vm3239_vm7, %v10904_v32  ;;  %11844 = vmatprep.mubr.msk.f32.mxu1 %vm12381_vm0, %v12380_v2 }
0x1d93   :  { %11852 = vmatprep.subr.mxu1 %v12380_v2 }
0x1d95   :  { %11845 = vmatmul.mubr.msk.f32.vlgmr.msra.gmra.mrb[102].mxu1 %vm3188_vm11, %v7579_v39  ;;  %v8806_v39 = vadd.s32 4294967295, %v12566_v5 }
0x1d96   :  { %11853 = vmatpush3.msk.msra.mxu1 %vm3239_vm7, %v10890_v29  ;;  %11854 = vmatprep.mubr.msk.f32.mxu1 %vm12381_vm0, %v12380_v2 }
0x1d97   :  { %11857 = vmatprep.subr.mxu1 %v12380_v2  ;;  %vm8807_vm10 = vcmp.eq.s32.totalorder %v12559_v4, %v8806_v39 }
0x1d99   :  { %11855 = vmatmul.mubr.msk.f32.vlgmr.msra.gmra.mrb[104].mxu1 %vm3188_vm11, %v7580_v44 }
0x1d9a   :  { %11858 = vmatpush3.msk.msra.mxu1 %vm3239_vm7, %v10893_v40  ;;  %11859 = vmatprep.mubr.msk.f32.mxu1 %vm12381_vm0, %v12380_v2 }
0x1d9b   :  { %11872 = vmatprep.subr.mxu1 %v12380_v2 }
0x1d9d   :  { %11860 = vmatmul.mubr.msk.f32.vlgmr.msra.gmra.mrb[106].mxu1 %vm3188_vm11, %v7580_v44 }
0x1d9e   :  { %11873 = vmatpush3.msk.msra.mxu1 %vm3239_vm7, %v10899_v35  ;;  %11874 = vmatprep.mubr.msk.f32.mxu1 %vm12381_vm0, %v12380_v2  ;;  %v10921_v35 = vsel %vm8807_vm10, 1.0, %v12380_v2 }
0x1d9f   :  { %11882 = vmatprep.subr.mxu1 %v12380_v2 }
0x1da1   :  { %11875 = vmatmul.mubr.msk.f32.vlgmr.msra.gmra.mrb[108].mxu1 %vm3188_vm11, %v7580_v44 }
0x1da2   :  { %11883 = vmatpush3.msk.msra.mxu1 %vm3239_vm7, %v10904_v32  ;;  %11884 = vmatprep.mubr.msk.f32.mxu1 %vm12381_vm0, %v12380_v2  ;;  %v12117_v32 = vpack.c.bf16 %v10921_v35, %v12386_v60  ;;  %vm13513_vm7 = vmpackc.low %vm1082_vm5, %vm5386_vm1 }
0x1da3   :  { %12116 = vmatprep.subr.bf16.mxu1 %v12379_v1  ;;  %vm13532_vm1 = vmpackc.low %vm1082_vm5, %vm6050_vm6 }
0x1da5   :  { %11885 = vmatmul.mubr.msk.f32.vlgmr.msra.gmra.mrb[110].mxu1 %vm3188_vm11, %v7580_v44  ;;  %v9111_v44 = vadd.s32 1, %v12566_v5 }
0x1da6   :  { %11896 = vmatprep.mubr.msk.f32.mxu1 %vm12381_vm0, %v12380_v2  ;;  %12119 = vmatpush3.bf16.msk.msra.mxu1 %vm13493_vm12, %v12117_v32 }
0x1da7   :  { %12120 = vmatprep.subr.bf16.mxu1 %v12379_v1  ;;  %vm9112_vm11 = vcmp.eq.s32.totalorder %v12559_v4, %v9111_v44 }
0x1e5c   :  { %v7659_v37 = vpop.f32.mrb[96].mxu1 }
0x1e5d   :  { %v11816_v45 = vpop.f32.mrb[97].mxu1 }
0x1e60   :  { %v7736_v47 = vpop.f32.mrb[98].mxu1 }
0x1e61   :  { %v11821_v48 = vpop.f32.mrb[99].mxu1  ;;  %11823 = vmatpush3.msra.mxu0 %v7736_v47  ;;  %v13507_v47 = vpack.c.bf16 %v10925_v30, %v12386_v60 }
0x1e62   :  { %11825 = vmatmul.mubr.msk.f32.vlgmr.msra.gmra.mrb[36].mxu0 %vm1232_vm4, %v10896_v46  ;;  %11827 = vmatprep.subr.mxu0 %v12380_v2 }
0x1e63   :  { %11828 = vmatpush3.msra.mxu0 %v7659_v37  ;;  %11829 = vmatprep.mubr.msk.f32.mxu0 %vm12381_vm0, %v12380_v2 }
0x1e64   :  { %v7961_v49 = vpop.f32.mrb[100].mxu1  ;;  %11837 = vmatprep.subr.mxu0 %v12380_v2 }
0x1e65   :  { %v11836_v50 = vpop.f32.mrb[101].mxu1 }
0x1e68   :  { %v8114_v52 = vpop.f32.mrb[102].mxu1 }
0x1e69   :  { %v11846_v53 = vpop.f32.mrb[103].mxu1 }
0x1e6a   :  { %11830 = vmatmul.mubr.msk.f32.vlgmr.msra.gmra.mrb[36].mxu0 %vm1232_vm4, %v7663_v51 }
0x1e6b   :  { %11838 = vmatpush3.msra.mxu0 %v7961_v49  ;;  %11839 = vmatprep.mubr.msk.f32.mxu0 %vm12381_vm0, %v12380_v2  ;;  %v10932_v49 = vsel %vm9112_vm11, 1.0, %v12380_v2 }
0x1e6c   :  { %v8263_v54 = vpop.f32.mrb[104].mxu1  ;;  %11847 = vmatprep.subr.mxu0 %v12380_v2  ;;  %v13525_v50 = vpack.c.bf16 %v10932_v49, %v12386_v60 }
0x1e6d   :  { %v11856_v57 = vpop.f32.mrb[105].mxu1 }
0x1e70   :  { %v8333_v58 = vpop.f32.mrb[106].mxu1 }
0x1e71   :  { %v11861_v59 = vpop.f32.mrb[107].mxu1 }
0x1e72   :  { %11840 = vmatmul.mubr.msk.f32.vlgmr.msra.gmra.mrb[36].mxu0 %vm1232_vm4, %v10902_v31 }
0x1e73   :  { %11848 = vmatpush3.msra.mxu0 %v8114_v52  ;;  %11849 = vmatprep.mubr.msk.f32.mxu0 %vm12381_vm0, %v12380_v2 }
0x1e74   :  { %v8543_v61 = vpop.f32.mrb[108].mxu1  ;;  %11862 = vmatprep.subr.mxu0 %v12380_v2 }
0x1e75   :  { %v11876_v62 = vpop.f32.mrb[109].mxu1 }
0x1e78   :  { %v8684_v0 = vpop.f32.mrb[110].mxu1 }
0x1e79   :  { %v11886_v7 = vpop.f32.mrb[111].mxu1 }
0x1e7a   :  { %11850 = vmatmul.mubr.msk.f32.vlgmr.msra.gmra.mrb[36].mxu0 %vm1232_vm4, %v10907_v63 }
0x1e7b   :  { %11863 = vmatpush3.msra.mxu0 %v8333_v58  ;;  %11864 = vmatprep.mubr.msk.f32.mxu0 %vm12381_vm0, %v12380_v2 }
0x1e7c   :  { %11867 = vmatprep.subr.mxu0 %v12380_v2 }
0x1e7e   :  { %11865 = vmatmul.mubr.msk.f32.vlgmr.msra.gmra.mrb[38].mxu0 %vm1232_vm4, %v10896_v46 }
0x1e7f   :  { %11868 = vmatpush3.msra.mxu0 %v8263_v54  ;;  %11869 = vmatprep.mubr.msk.f32.mxu0 %vm12381_vm0, %v12380_v2 }
0x1e80   :  { %11877 = vmatprep.subr.mxu0 %v12380_v2 }
0x1e86   :  { %11870 = vmatmul.mubr.msk.f32.vlgmr.msra.gmra.mrb[38].mxu0 %vm1232_vm4, %v7663_v51 }
0x1e87   :  { %11878 = vmatpush3.msra.mxu0 %v8543_v61  ;;  %11879 = vmatprep.mubr.msk.f32.mxu0 %vm12381_vm0, %v12380_v2 }
0x1e88   :  { %11887 = vmatprep.subr.mxu0 %v12380_v2 }
0x1e8e   :  { %11880 = vmatmul.mubr.msk.f32.vlgmr.msra.gmra.mrb[38].mxu0 %vm1232_vm4, %v10902_v31  ;;  %v10929_v31 = vld [vmem:[%s13734_s22 + $0x8] sm:$0xff] }
0x1e8f   :  { %11888 = vmatpush3.msra.mxu0 %v8684_v0  ;;  %11889 = vmatprep.mubr.msk.f32.mxu0 %vm12381_vm0, %v12380_v2 }
0x1e90   :  { %11906 = vmatprep.subr.mxu0 %v12380_v2 }
0x1e96   :  { %11890 = vmatmul.mubr.msk.f32.vlgmr.msra.gmra.mrb[38].mxu0 %vm1232_vm4, %v10907_v63  ;;  %v8886_v63 = vld [vmem:[%s13734_s22] sm:$0xff] }
0x1e97   :  { %11908 = vmatprep.mubr.msk.f32.mxu0 %vm12381_vm0, %v12380_v2 }
0x1f4d   :  { %v8189_v8 = vpop.f32.mrb[36].mxu0 }
0x1f4e   :  { %v11851_v9 = vpop.f32.mrb[37].mxu0  ;;  %v8759_v10 = vsel %vm1024_vm13, %v8189_v8, 0.0  ;;  %v8762_v11 = vmul.f32 %v8189_v8, %v8189_v8 }
0x1f4f   :  { %8760 = vadd.xlane.f32.xlu0 %v8759_v10  ;;  %v10936_v10 = vld [vmem:[%s13734_s22 + $0x10] sm:$0xff] }
0x1f50   :  { %v8763_v12 = vsel %vm1024_vm13, %v8762_v11, 0.0 }
0x1f53   :  { %8764 = vadd.xlane.f32.xlu0 %v8763_v12 }
0x1f69   :  { %v8754_v13 = vpop.f32.mrb[38].mxu0 }
0x1f6a   :  { %v11891_v14 = vpop.f32.mrb[39].mxu0  ;;  %v8766_v15 = vsel %vm1024_vm13, %v8754_v13, 0.0  ;;  %v8770_v16 = vmul.f32 %v8754_v13, %v8754_v13 }
0x1f6b   :  { %8767 = vadd.xlane.f32.xlu1 %v8766_v15 }
0x1f6c   :  { %v8771_v17 = vsel %vm1024_vm13, %v8770_v16, 0.0 }
0x1f6d   :  { %8772 = vadd.xlane.f32.xlu0 %v8771_v17 }
0x1fdc   :  { %v8761_v18 = vpop.xlane.xlu0 %8760 }
0x1fe0   :  { %v8765_v19 = vpop.xlane.xlu0 %8764 }
0x1ff8   :  { %v8768_v20 = vpop.xlane.xlu1 %8767 }
0x1ff9   :  { %v8769_v21 = vadd.f32 %v8768_v20, %v8761_v18 }
0x1ffa   :  { %v8773_v22 = vpop.xlane.xlu0 %8772 }
0x1ffb   :  { %v8775_v23 = vmul.f32 0.035714287, %v8769_v21  ;;  %v8774_v24 = vadd.f32 %v8773_v22, %v8765_v19 }
0x1ffd   :  { %v8777_v25 = vmul.f32 %v8775_v23, %v8775_v23  ;;  %v8776_v27 = vmul.f32 0.035714287, %v8774_v24 }
0x1fff   :  { %v8778_v28 = vsub.f32 %v8776_v27, %v8777_v25 }
0x2001   :  { %v8779_v29 = vmax.f32 %v8778_v28, 0.0 }
0x2003   :  { %v8780_v33 = vadd.f32 1e-05, %v8779_v29 }
0x2005   :  { %12293 = vrsqrt.f32 %v8780_v33 }
0x200f   :  { %v12294_v6 = vpop.eup %12293 }
0x2010   :  { %v8782_v56 = vmul.f32 %v12294_v6, %v7581_v34 }
0x2012   :  { %8791 = vperm.xlu0 %12267, %v8782_v56   ;;  %v8783_v36 = vmul.f32 %v8782_v56, %v8775_v23 }
0x2014   :  { %8785 = vrot.lane.b32.xlu1 %v8783_v36, %s12384_s10 }
0x2086   :  { %v8786_v40 = vpop.permute.xlu1 %8785 }
0x2087   :  { %v8788_v41 = vsub.f32 %v7581_v34, %v8786_v40  ;;  %v8805_v40 = vld [vmem:[%s13735_s23] sm:$0xff] }
0x2089   :  { %8797 = vperm.xlu1 %12273, %v8788_v41  }
0x208d   :  { %12274 = vset.pattern.permute.xlu1 %v12383_v38 }
0x2091   :  { %v8792_v43 = vpop.permute.xlu0 %8791 }
0x2092   :  { %v8794_v37 = vmul.f32 %v8792_v43, %v8189_v8  ;;  %v8801_v52 = vmul.f32 %v8792_v43, %v8754_v13 }
0x2108   :  { %v8798_v45 = vpop.permute.xlu1 %8797 }
0x2109   :  { %v8800_v46 = vadd.f32 %v8798_v45, %v8794_v37  ;;  %v8802_v53 = vadd.f32 %v8801_v52, %v8798_v45  ;;  %v10028_v37 = vadd.s32 2, %v12566_v5 }
0x210b   :  { %v8803_v48 = vmax.f32 %v8800_v46, 0.0  ;;  %v8804_v26 = vmax.f32 %v8802_v53, 0.0  ;;  %v10027_v46 = vadd.s32 2, %v12557_v3  ;;  %vm10030_vm3 = vcmp.eq.s32.totalorder %v12559_v4, %v10028_v37 }
0x210c   :  { %v10960_v52 = vsel %vm10030_vm3, 1.0, %v12380_v2 }
0x210d   :  { %11897 = vmatmul.mubr.msk.f32.vlgmr.msra.gmra.mrb[112].mxu1 %vm1024_vm13, %v8803_v48  ;;  %vm10029_vm6 = vcmp.eq.s32.totalorder %v12559_v4, %v10027_v46  ;;  %v12149_v5 = vpack.c.bf16 %v10960_v52, %v12386_v60 }
0x210e   :  { %12123 = vmatpush3.bf16.msk.msra.mxu1 %vm13513_vm7, %v13507_v47  ;;  %11903 = vmatprep.mubr.msk.f32.mxu1 %vm12381_vm0, %v12380_v2  ;;  %vm13626_vm15 = vmpackc.low %vm1082_vm5, %vm10029_vm6 }
0x210f   :  { %12124 = vmatprep.subr.bf16.mxu1 %v12379_v1 }
0x2111   :  { %11904 = vmatmul.mubr.msk.f32.vlgmr.msra.gmra.mrb[114].mxu1 %vm1024_vm13, %v8803_v48 }
0x2112   :  { %12127 = vmatpush3.bf16.msk.msra.mxu1 %vm13532_vm1, %v13525_v50  ;;  %11920 = vmatprep.mubr.msk.f32.mxu1 %vm12381_vm0, %v12380_v2 }
0x2113   :  { %12128 = vmatprep.subr.bf16.mxu1 %v12379_v1 }
0x2115   :  { %11921 = vmatmul.mubr.msk.f32.vlgmr.msra.gmra.mrb[116].mxu1 %vm1024_vm13, %v8803_v48 }
0x2116   :  { %12131 = vmatpush3.bf16.msk.msra.mxu1 %vm13493_vm12, %v12117_v32  ;;  %11932 = vmatprep.mubr.msk.f32.mxu1 %vm12381_vm0, %v12380_v2 }
0x2117   :  { %12132 = vmatprep.subr.bf16.mxu1 %v12379_v1 }
0x2119   :  { %11933 = vmatmul.mubr.msk.f32.vlgmr.msra.gmra.mrb[118].mxu1 %vm1024_vm13, %v8804_v26 }
0x211a   :  { %12135 = vmatpush3.bf16.msk.msra.mxu1 %vm13513_vm7, %v13507_v47  ;;  %11939 = vmatprep.mubr.msk.f32.mxu1 %vm12381_vm0, %v12380_v2 }
0x211b   :  { %12136 = vmatprep.subr.bf16.mxu1 %v12379_v1 }
0x211d   :  { %11940 = vmatmul.mubr.msk.f32.vlgmr.msra.gmra.mrb[120].mxu1 %vm1024_vm13, %v8804_v26 }
0x211e   :  { %12139 = vmatpush3.bf16.msk.msra.mxu1 %vm13532_vm1, %v13525_v50  ;;  %11956 = vmatprep.mubr.msk.f32.mxu1 %vm12381_vm0, %v12380_v2 }
0x211f   :  { %12140 = vmatprep.subr.bf16.mxu1 %v12379_v1 }
0x2121   :  { %11957 = vmatmul.mubr.msk.f32.vlgmr.msra.gmra.mrb[122].mxu1 %vm1024_vm13, %v8804_v26 }
0x2122   :  { %12143 = vmatpush3.bf16.msk.msra.mxu1 %vm13513_vm7, %v13507_v47  ;;  %11968 = vmatprep.mubr.msk.f32.mxu1 %vm12381_vm0, %v12380_v2 }
0x2123   :  { %12144 = vmatprep.subr.bf16.mxu1 %v12379_v1 }
0x21e0   :  { %v8882_v54 = vpop.f32.mrb[112].mxu1 }
0x21e1   :  { %v11898_v57 = vpop.f32.mrb[113].mxu1 }
0x21e2   :  { %v9808_v57 = vld [vmem:[%s13736_s24] sm:$0xf] }
0x21e4   :  { %v8959_v58 = vpop.f32.mrb[114].mxu1 }
0x21e5   :  { %v11905_v59 = vpop.f32.mrb[115].mxu1  ;;  %11907 = vmatpush3.msra.mxu0 %v8959_v58 }
0x21e6   :  { %11909 = vmatmul.mubr.msk.f32.vlgmr.msra.gmra.mrb[40].mxu0 %vm1232_vm4, %v10929_v31  ;;  %11911 = vmatprep.subr.mxu0 %v12380_v2 }
0x21e7   :  { %11912 = vmatpush3.msra.mxu0 %v8882_v54  ;;  %11913 = vmatprep.mubr.msk.f32.mxu0 %vm12381_vm0, %v12380_v2 }
0x21e8   :  { %v9184_v61 = vpop.f32.mrb[116].mxu1  ;;  %11923 = vmatprep.subr.mxu0 %v12380_v2 }
0x21e9   :  { %v11922_v62 = vpop.f32.mrb[117].mxu1 }
0x21ea   :  { %v10964_v62 = vld [vmem:[%s13736_s24 + $0x8] sm:$0xf] }
0x21ec   :  { %v9333_v0 = vpop.f32.mrb[118].mxu1 }
0x21ed   :  { %v11934_v7 = vpop.f32.mrb[119].mxu1 }
0x21ee   :  { %11914 = vmatmul.mubr.msk.f32.vlgmr.msra.gmra.mrb[40].mxu0 %vm1232_vm4, %v8886_v63 }
0x21ef   :  { %11924 = vmatpush3.msra.mxu0 %v9184_v61  ;;  %11925 = vmatprep.mubr.msk.f32.mxu0 %vm12381_vm0, %v12380_v2 }
0x21f0   :  { %v9403_v8 = vpop.f32.mrb[120].mxu1  ;;  %11942 = vmatprep.subr.mxu0 %v12380_v2 }
0x21f1   :  { %v11941_v9 = vpop.f32.mrb[121].mxu1 }
0x21f4   :  { %v9613_v11 = vpop.f32.mrb[122].mxu1 }
0x21f5   :  { %v11958_v12 = vpop.f32.mrb[123].mxu1 }
0x21f6   :  { %11926 = vmatmul.mubr.msk.f32.vlgmr.msra.gmra.mrb[40].mxu0 %vm1232_vm4, %v10936_v10 }
0x21f7   :  { %11943 = vmatpush3.msra.mxu0 %v9403_v8  ;;  %11944 = vmatprep.mubr.msk.f32.mxu0 %vm12381_vm0, %v12380_v2 }
0x21f8   :  { %11947 = vmatprep.subr.mxu0 %v12380_v2 }
0x21fa   :  { %11945 = vmatmul.mubr.msk.f32.vlgmr.msra.gmra.mrb[42].mxu0 %vm1232_vm4, %v10929_v31 }
0x21fb   :  { %11948 = vmatpush3.msra.mxu0 %v9333_v0  ;;  %11949 = vmatprep.mubr.msk.f32.mxu0 %vm12381_vm0, %v12380_v2 }
0x21fc   :  { %11959 = vmatprep.subr.mxu0 %v12380_v2 }
0x2202   :  { %11950 = vmatmul.mubr.msk.f32.vlgmr.msra.gmra.mrb[42].mxu0 %vm1232_vm4, %v8886_v63 }
0x2203   :  { %11960 = vmatpush3.msra.mxu0 %v9613_v11  ;;  %11961 = vmatprep.mubr.msk.f32.mxu0 %vm12381_vm0, %v12380_v2 }
0x2204   :  { %11978 = vmatprep.subr.mxu0 %v12380_v2 }
0x220a   :  { %11962 = vmatmul.mubr.msk.f32.vlgmr.msra.gmra.mrb[42].mxu0 %vm1232_vm4, %v10936_v10 }
0x220b   :  { %11980 = vmatprep.mubr.msk.f32.mxu0 %vm12381_vm0, %v12380_v2 }
0x22c9   :  { %v9259_v13 = vpop.f32.mrb[40].mxu0 }
0x22ca   :  { %v11927_v14 = vpop.f32.mrb[41].mxu0  ;;  %v9688_v15 = vsel %vm1024_vm13, %v9259_v13, 0.0  ;;  %v9691_v20 = vmul.f32 %v9259_v13, %v9259_v13 }
0x22cb   :  { %9689 = vadd.xlane.f32.xlu1 %v9688_v15 }
0x22cc   :  { %v9692_v22 = vsel %vm1024_vm13, %v9691_v20, 0.0 }
0x22dd   :  { %v9683_v16 = vpop.f32.mrb[42].mxu0 }
0x22de   :  { %v11963_v17 = vpop.f32.mrb[43].mxu0  ;;  %v9695_v18 = vsel %vm1024_vm13, %v9683_v16, 0.0  ;;  %v9699_v19 = vmul.f32 %v9683_v16, %v9683_v16 }
0x22df   :  { %9696 = vadd.xlane.f32.xlu0 %v9695_v18 }
0x22e0   :  { %v9700_v21 = vsel %vm1024_vm13, %v9699_v19, 0.0 }
0x22e1   :  { %9701 = vadd.xlane.f32.xlu1 %v9700_v21 }
0x22e3   :  { %9693 = vadd.xlane.f32.xlu0 %v9692_v22 }
0x2358   :  { %v9690_v23 = vpop.xlane.xlu1 %9689 }
0x236c   :  { %v9697_v24 = vpop.xlane.xlu0 %9696 }
0x236d   :  { %v9698_v25 = vadd.f32 %v9697_v24, %v9690_v23 }
0x236e   :  { %v9702_v28 = vpop.xlane.xlu1 %9701 }
0x236f   :  { %v9704_v27 = vmul.f32 0.035714287, %v9698_v25 }
0x2370   :  { %v9694_v29 = vpop.xlane.xlu0 %9693 }
0x2371   :  { %v9703_v33 = vadd.f32 %v9702_v28, %v9694_v29  ;;  %v9706_v34 = vmul.f32 %v9704_v27, %v9704_v27  ;;  %v9734_v29 = vld [vmem:[%s13737_s25] sm:$0xf]  ;;  %s12387_s25 = smov [#allocation7]  }
0x2372   :  { %s10665_s0 = sshll.u32 %s12387_s25, 4  ;;  %s10666_s0 = int_to_ptr.vmem [resolvable:$true] %s10665_s0 }
0x2373   :  { %v9705_v6 = vmul.f32 0.035714287, %v9703_v33  ;;  %p12352_p3 = scmp.lt.s32.totalorder %s10666_s0, %s10666_s0 }
0x2375   :  { %v9707_v56 = vsub.f32 %v9705_v6, %v9706_v34 }
0x2377   :  { %v9708_v36 = vmax.f32 %v9707_v56, 0.0 }
0x2379   :  { %v9709_v39 = vadd.f32 1e-05, %v9708_v36 }
0x237b   :  { %12295 = vrsqrt.f32 %v9709_v39 }
0x2385   :  { %v12296_v41 = vpop.eup %12295 }
0x2386   :  { %v9711_v35 = vmul.f32 %v12296_v41, %v8805_v40 }
0x2388   :  { %9720 = vperm.xlu1 %12274, %v9711_v35   ;;  %v9712_v32 = vmul.f32 %v9711_v35, %v9704_v27 }
0x238a   :  { %9714 = vrot.lane.b32.xlu0 %v9712_v32, %s12384_s10 }
0x238c   :  { %12275 = vset.pattern.permute.xlu1 %v12385_v55 }
0x23fc   :  { %v9715_v42 = vpop.permute.xlu0 %9714 }
0x23fd   :  { %v9717_v43 = vsub.f32 %v8805_v40, %v9715_v42 }
0x23ff   :  { %9726 = vperm.xlu1 %12275, %v9717_v43  }
0x2407   :  { %v9721_v44 = vpop.permute.xlu1 %9720 }
0x2408   :  { %v9723_v30 = vmul.f32 %v9721_v44, %v9259_v13  ;;  %v9730_v53 = vmul.f32 %v9721_v44, %v9683_v16 }
0x247e   :  { %v9727_v45 = vpop.permute.xlu1 %9726 }
0x247f   :  { %v9729_v48 = vadd.f32 %v9727_v45, %v9723_v30  ;;  %v9731_v4 = vadd.f32 %v9730_v53, %v9727_v45 }
0x2481   :  { %v9732_v49 = vmax.f32 %v9729_v48, 0.0  ;;  %v9733_v60 = vmax.f32 %v9731_v4, 0.0 }
0x2483   :  { %11969 = vmatmul.mubr.msk.f32.vlgmr.msra.gmra.mrb[124].mxu1 %vm1024_vm13, %v9732_v49 }
0x2484   :  { %12147 = vmatpush3.bf16.msk.msra.mxu1 %vm13532_vm1, %v13525_v50  ;;  %11975 = vmatprep.mubr.msk.f32.mxu1 %vm12381_vm0, %v12380_v2 }
0x2485   :  { %12148 = vmatprep.subr.bf16.mxu1 %v12379_v1 }
0x2487   :  { %11976 = vmatmul.mubr.msk.f32.vlgmr.msra.gmra.mrb[126].mxu1 %vm1024_vm13, %v9732_v49 }
0x2488   :  { %12151 = vmatpush3.bf16.msk.msra.mxu1 %vm13626_vm15, %v12149_v5  ;;  %11992 = vmatprep.mubr.msk.f32.mxu1 %vm12381_vm0, %v12380_v2 }
0x2489   :  { %12152 = vmatprep.subr.bf16.mxu1 %v12379_v1 }
0x248b   :  { %11993 = vmatmul.mubr.msk.f32.vlgmr.msra.gmra.mrb[128].mxu1 %vm1024_vm13, %v9732_v49 }
0x248c   :  { %12155 = vmatpush3.bf16.msk.msra.mxu1 %vm13513_vm7, %v13507_v47  ;;  %12004 = vmatprep.mubr.msk.f32.mxu1 %vm12381_vm0, %v12380_v2 }
0x248d   :  { %12156 = vmatprep.subr.bf16.mxu1 %v12379_v1 }
0x248f   :  { %12005 = vmatmul.mubr.msk.f32.vlgmr.msra.gmra.mrb[130].mxu1 %vm1024_vm13, %v9733_v60 }
0x2490   :  { %12159 = vmatpush3.bf16.msk.msra.mxu1 %vm13532_vm1, %v13525_v50  ;;  %12011 = vmatprep.mubr.msk.f32.mxu1 %vm12381_vm0, %v12380_v2  ;;  %v10956_v50 = vld [vmem:[%s13736_s24 + $0x4] sm:$0xf] }
0x2491   :  { %12160 = vmatprep.subr.bf16.mxu1 %v12379_v1 }
0x2493   :  { %12012 = vmatmul.mubr.msk.f32.vlgmr.msra.gmra.mrb[132].mxu1 %vm1024_vm13, %v9733_v60 }
0x2494   :  { %12163 = vmatpush3.bf16.msk.msra.mxu1 %vm13626_vm15, %v12149_v5  ;;  %12028 = vmatprep.mubr.msk.f32.mxu1 %vm12381_vm0, %v12380_v2 }
0x2497   :  { %12029 = vmatmul.mubr.msk.f32.vlgmr.msra.gmra.mrb[134].mxu1 %vm1024_vm13, %v9733_v60  ;;  %vm10608_vm13 = vcmask 125952  }
0x2556   :  { %v9804_v47 = vpop.f32.mrb[124].mxu1 }
0x2557   :  { %v11970_v38 = vpop.f32.mrb[125].mxu1 }
0x255a   :  { %v9875_v51 = vpop.f32.mrb[126].mxu1 }
0x255b   :  { %v11977_v26 = vpop.f32.mrb[127].mxu1  ;;  %11979 = vmatpush3.msra.mxu0 %v9875_v51 }
0x255c   :  { %11981 = vmatmul.mubr.msk.f32.vlgmr.msra.gmra.mrb[44].mxu0 %vm1232_vm4, %v10956_v50  ;;  %11983 = vmatprep.subr.mxu0 %v12380_v2 }
0x255d   :  { %11984 = vmatpush3.msra.mxu0 %v9804_v47  ;;  %11985 = vmatprep.mubr.msk.f32.mxu0 %vm12381_vm0, %v12380_v2 }
0x255e   :  { %v10104_v1 = vpop.f32.mrb[128].mxu1  ;;  %11995 = vmatprep.subr.mxu0 %v12380_v2 }
0x255f   :  { %v11994_v54 = vpop.f32.mrb[129].mxu1 }
0x2562   :  { %v10253_v31 = vpop.f32.mrb[130].mxu1 }
0x2563   :  { %v12006_v58 = vpop.f32.mrb[131].mxu1 }
0x2564   :  { %11986 = vmatmul.mubr.msk.f32.vlgmr.msra.gmra.mrb[44].mxu0 %vm1232_vm4, %v9808_v57 }
0x2565   :  { %11996 = vmatpush3.msra.mxu0 %v10104_v1  ;;  %11997 = vmatprep.mubr.msk.f32.mxu0 %vm12381_vm0, %v12380_v2 }
0x2566   :  { %v10323_v59 = vpop.f32.mrb[132].mxu1  ;;  %12014 = vmatprep.subr.mxu0 %v12380_v2 }
0x2567   :  { %v12013_v61 = vpop.f32.mrb[133].mxu1 }
0x256a   :  { %v10533_v63 = vpop.f32.mrb[134].mxu1 }
0x256b   :  { %v12030_v0 = vpop.f32.mrb[135].mxu1 }
0x256c   :  { %11998 = vmatmul.mubr.msk.f32.vlgmr.msra.gmra.mrb[44].mxu0 %vm1232_vm4, %v10964_v62 }
0x256d   :  { %12015 = vmatpush3.msra.mxu0 %v10323_v59  ;;  %12016 = vmatprep.mubr.msk.f32.mxu0 %vm12381_vm0, %v12380_v2 }
0x256e   :  { %12019 = vmatprep.subr.mxu0 %v12380_v2 }
0x2570   :  { %12017 = vmatmul.mubr.msk.f32.vlgmr.msra.gmra.mrb[46].mxu0 %vm1232_vm4, %v10956_v50 }
0x2571   :  { %12020 = vmatpush3.msra.mxu0 %v10253_v31  ;;  %12021 = vmatprep.mubr.msk.f32.mxu0 %vm12381_vm0, %v12380_v2 }
0x2572   :  { %12031 = vmatprep.subr.mxu0 %v12380_v2 }
0x2578   :  { %12022 = vmatmul.mubr.msk.f32.vlgmr.msra.gmra.mrb[46].mxu0 %vm1232_vm4, %v9808_v57 }
0x2579   :  { %12032 = vmatpush3.msra.mxu0 %v10533_v63  ;;  %12033 = vmatprep.mubr.msk.f32.mxu0 %vm12381_vm0, %v12380_v2 }
0x2580   :  { %12034 = vmatmul.mubr.msk.f32.vlgmr.msra.gmra.mrb[46].mxu0 %vm1232_vm4, %v10964_v62 }
0x263f   :  { %v10179_v7 = vpop.f32.mrb[44].mxu0 }
0x2640   :  { %v11999_v8 = vpop.f32.mrb[45].mxu0  ;;  %v10609_v9 = vsel %vm10608_vm13, %v10179_v7, 0.0  ;;  %v10612_v10 = vmul.f32 %v10179_v7, %v10179_v7 }
0x2641   :  { %10610 = vadd.xlane.f32.xlu0 %v10609_v9 }
0x2642   :  { %v10613_v11 = vsel %vm10608_vm13, %v10612_v10, 0.0 }
0x2645   :  { %10614 = vadd.xlane.f32.xlu0 %v10613_v11 }
0x2653   :  { %v10603_v12 = vpop.f32.mrb[46].mxu0 }
0x2654   :  { %v12035_v13 = vpop.f32.mrb[47].mxu0  ;;  %v10616_v14 = vsel %vm10608_vm13, %v10603_v12, 0.0  ;;  %v10620_v15 = vmul.f32 %v10603_v12, %v10603_v12 }
0x2655   :  { %10617 = vadd.xlane.f32.xlu1 %v10616_v14 }
0x2656   :  { %v10621_v2 = vsel %vm10608_vm13, %v10620_v15, 0.0 }
0x2657   :  { %10622 = vadd.xlane.f32.xlu0 %v10621_v2 }
0x26ce   :  { %v10611_v16 = vpop.xlane.xlu0 %10610 }
0x26d2   :  { %v10615_v17 = vpop.xlane.xlu0 %10614 }
0x26e2   :  { %v10618_v18 = vpop.xlane.xlu1 %10617 }
0x26e3   :  { %v10619_v19 = vadd.f32 %v10618_v18, %v10611_v16 }
0x26e4   :  { %v10623_v20 = vpop.xlane.xlu0 %10622 }
0x26e5   :  { %v10625_v21 = vmul.f32 0.03125, %v10619_v19  ;;  %v10624_v22 = vadd.f32 %v10623_v20, %v10615_v17 }
0x26e7   :  { %v10627_v23 = vmul.f32 %v10625_v21, %v10625_v21  ;;  %v10626_v24 = vmul.f32 0.03125, %v10624_v22 }
0x26e9   :  { %v10628_v25 = vsub.f32 %v10626_v24, %v10627_v23 }
0x26eb   :  { %v10629_v27 = vmax.f32 %v10628_v25, 0.0 }
0x26ed   :  { %v10630_v28 = vadd.f32 1e-05, %v10629_v27 }
0x26ef   :  { %12297 = vrsqrt.f32 %v10630_v28 }
0x26f9   :  { %v12298_v33 = vpop.eup %12297 }
0x26fa   :  { %v10632_v34 = vmul.f32 %v12298_v33, %v9734_v29 }
0x26fc   :  { %10641 = vperm.xlu0 %12267, %v10632_v34   ;;  %v10633_v6 = vmul.f32 %v10632_v34, %v10625_v21 }
0x26fe   :  { %10635 = vrot.lane.b32.xlu1 %v10633_v6, %s12384_s10  ;;  %s12347_s10 = scalar_lea.vmem %s10666_s0, 128 }
0x26ff   :  { %p12348_p2 = scmp.ne.s32.totalorder %s10666_s0, %s12347_s10  ;;  %p12353_p4 = scmp.lt.s32.totalorder %s12347_s10, %s12347_s10 }
0x2700   :  { %12276 = vset.pattern.permute.xlu0 %v12385_v55 }
0x2701   :  { %p12354_p5 = por %p12353_p4, %p12352_p3 }
0x2703   :  { %p12355_p6 = pnand %p12354_p5, %p12348_p2 }
0x2770   :  { %v10636_v56 = vpop.permute.xlu1 %10635 }
0x2771   :  { %v10638_v36 = vsub.f32 %v9734_v29, %v10636_v56 }
0x2773   :  { %10647 = vperm.xlu1 %12275, %v10638_v36  }
0x277b   :  { %v10642_v39 = vpop.permute.xlu0 %10641 }
0x277c   :  { %v10644_v40 = vmul.f32 %v10642_v39, %v10179_v7  ;;  %v10651_v41 = vmul.f32 %v10642_v39, %v10603_v12 }
0x27f2   :  { %v10648_v35 = vpop.permute.xlu1 %10647 }
0x27f3   :  { %v10650_v32 = vadd.f32 %v10648_v35, %v10644_v40  ;;  %v10652_v42 = vadd.f32 %v10651_v41, %v10648_v35 }
0x27f5   :  { %12299 = vtanh.f32 %v10650_v32 }
0x27f6   :  { %12301 = vtanh.f32 %v10652_v42 }
0x27ff   :  { %v12300_v43 = vpop.eup %12299 }
0x2800   :  { %v12302_v44 = vpop.eup %12301  ;;  %10655 = vst.msk [vmem:[#allocation7] sm:$0xf] %vm10608_vm13, %v12300_v43 }
0x2801   :  { %10657 = vst.msk [vmem:[#allocation7 + $0x4] sm:$0xf] %vm10608_vm13, %v12302_v44 }
0x2802   :  { %12358 = shalt.err (!%p12355_p6)
}
0x2803   :  { %s13799_s1 = sld [smem:[#allocation23_spill]] }
0x2809   :  { %s12359_s4 = scalar_lea.hbm %s13799_s1, 128 }
0x280a   :  { %p12360_p7 = scmp.ne.s32.totalorder %s13799_s1, %s12359_s4  ;;  %p12363_p8 = scmp.lt.u32.totalorder %s12359_s4, %s13799_s1 }
0x280c   :  { %p12365_p9 = pnand %p12363_p8, %p12360_p7 }
0x280e   :  { %12368 = shalt.err (!%p12365_p9)
}
0x280f   :  { %10671 = dma.vmem_to_hbm [thread:$0]  %s10666_s0, 128, %s13799_s1, [#allocation4], %s12376_s6, %s12376_s6, %s12377_s11  }
0x2810   :  { %12373 = dma.done.wait [#allocation4], 128  }
0x2811   :  { %12374 = vsyncadd [#allocation4], 4294967168 }
0x2812   :  { %10677 = vsyncpa [#allocation3], 1 }
0x2813   :  { %10678 = vsyncpa [#allocation6], 1 }
0x2814   :  { %10679 = vsyncpa [#allocation4], 1 }

</bundles_post_ra>
